<compile_context>
chip_gen: v6e
topology: v6e:2x2x1
jax: 0.10.0
libtpu: 0.0.40
codegen_flags: <defaults>
</compile_context>

<pallas_src>
import functools
import math

import jax
import jax.numpy as jnp
from jax.experimental import pallas as pl
from jax.experimental.pallas import tpu as pltpu

LN_EPS = 1e-5


def _layer_norm_f32(x, gamma, beta, eps):
    """Row-wise LayerNorm in f32 (biased variance, PyTorch semantics)."""
    m = jnp.mean(x, axis=-1, keepdims=True)
    xc = x - m
    var = jnp.mean(xc * xc, axis=-1, keepdims=True)
    return xc * jax.lax.rsqrt(var + eps) * gamma + beta


def _stack_kernel(x_ref,
                  g1_ref, b1_ref,
                  wq_ref, wk_ref, wv_ref, bq_ref, bk_ref, bv_ref,
                  wo_ref, bo_ref,
                  g2_ref, b2_ref, w1_ref, bf1_ref, w2_ref, bf2_ref,
                  gf_ref, bf_ref,
                  out_ref, *, num_layers, num_heads, head_dim, eps):
    """One batch element through the full encoder stack + final LayerNorm."""
    x = x_ref[0].astype(jnp.float32)                                   # (S, D)
    inv_sqrt_d = 1.0 / math.sqrt(head_dim)

    for l in range(num_layers):                                        # static unroll
        # ---- pre-norm 1 + multi-head self-attention + residual -------------
        h = _layer_norm_f32(x, g1_ref[l].astype(jnp.float32),
                            b1_ref[l].astype(jnp.float32), eps)

        attn_out = bo_ref[l].astype(jnp.float32)                       # (1, D)
        for hh in range(num_heads):                                    # static unroll
            q = jnp.dot(h, wq_ref[l, hh].astype(jnp.float32),
                        preferred_element_type=jnp.float32) + bq_ref[l, hh].astype(jnp.float32)
            k = jnp.dot(h, wk_ref[l, hh].astype(jnp.float32),
                        preferred_element_type=jnp.float32) + bk_ref[l, hh].astype(jnp.float32)
            v = jnp.dot(h, wv_ref[l, hh].astype(jnp.float32),
                        preferred_element_type=jnp.float32) + bv_ref[l, hh].astype(jnp.float32)
            # q @ k^T without an explicit transpose (contract last dims).
            logits = jax.lax.dot_general(
                q, k, (((1,), (1,)), ((), ())),
                preferred_element_type=jnp.float32) * inv_sqrt_d       # (S, S)
            logits = logits - jnp.max(logits, axis=-1, keepdims=True)
            p = jnp.exp(logits)
            attn = p * pl.reciprocal(jnp.sum(p, axis=-1, keepdims=True))
            vals = jnp.dot(attn, v, preferred_element_type=jnp.float32)  # (S, hd)
            # Per-head slice of o_proj folded in: sum_h vals_h @ Wo_h
            attn_out = attn_out + jnp.dot(vals, wo_ref[l, hh].astype(jnp.float32),
                                          preferred_element_type=jnp.float32)
        x = x + attn_out

        # ---- pre-norm 2 + MLP + residual ------------------------------------
        h = _layer_norm_f32(x, g2_ref[l].astype(jnp.float32),
                            b2_ref[l].astype(jnp.float32), eps)
        h = jnp.dot(h, w1_ref[l].astype(jnp.float32),
                    preferred_element_type=jnp.float32) + bf1_ref[l].astype(jnp.float32)
        h = jnp.maximum(h, 0.0)                                        # ReLU
        mlp = jnp.dot(h, w2_ref[l].astype(jnp.float32),
                      preferred_element_type=jnp.float32) + bf2_ref[l].astype(jnp.float32)
        x = x + mlp

    # ---- final LayerNorm -----------------------------------------------------
    out_ref[0] = _layer_norm_f32(
        x, gf_ref[...].astype(jnp.float32), bf_ref[...].astype(jnp.float32), eps
    ).astype(out_ref.dtype)


def prepare_stack_params(layer_params, num_heads):
    """Convert per-layer PyTorch-layout weights into per-head, layer-stacked arrays."""
    def per_layer(p):
        E = p["w_o"].shape[0]
        hd = E // num_heads
        # qkv_proj.weight is (3E, E); PyTorch reshapes the 3E axis as (H, 3, hd).
        w = p["w_qkv"].reshape(num_heads, 3, hd, E)
        b = p["b_qkv"].reshape(num_heads, 3, hd)
        return {
            "g1": p["ln1_g"][None, :], "b1": p["ln1_b"][None, :],
            "wq": jnp.transpose(w[:, 0], (0, 2, 1)),                    # (H, E, hd)
            "wk": jnp.transpose(w[:, 1], (0, 2, 1)),
            "wv": jnp.transpose(w[:, 2], (0, 2, 1)),
            "bq": b[:, 0][:, None, :],                                  # (H, 1, hd)
            "bk": b[:, 1][:, None, :],
            "bv": b[:, 2][:, None, :],
            # o_proj.weight is (E, E); per-head input slice h*hd:(h+1)*hd, transposed.
            "wo": jnp.transpose(p["w_o"].reshape(E, num_heads, hd), (1, 2, 0)),  # (H, hd, E)
            "bo": p["b_o"][None, :],
            "g2": p["ln2_g"][None, :], "b2": p["ln2_b"][None, :],
            "w1t": p["w_lin1"].T, "bf1": p["b_lin1"][None, :],
            "w2t": p["w_lin2"].T, "bf2": p["b_lin2"][None, :],
        }

    per = [per_layer(p) for p in layer_params]
    keys = per[0].keys()
    return {k: jnp.stack([pl_[k] for pl_ in per], axis=0) for k in keys}   # leading L axis


def relational_reasoning_forward(x, layer_params, norm_g, norm_b, *, num_heads,
                                 eps=LN_EPS):
    """Fused forward of the whole RelationalReasoning module (eval mode)."""
    # TODO(synk): nn.Dropout is identity in eval-mode forward; training-mode
    # stochastic dropout (stateful RNG) is not implemented here.
    B, S, D = x.shape
    L = len(layer_params)
    hd = D // num_heads
    F = layer_params[0]["w_lin1"].shape[0]

    sp = prepare_stack_params(layer_params, num_heads)
    gf = norm_g[None, :]
    bf = norm_b[None, :]

    block_b = 1
    grid = (pl.cdiv(B, block_b),)
    xspec = pl.BlockSpec((block_b, S, D), lambda b: (b, 0, 0))

    def const_spec(arr):
        zeros = (0,) * arr.ndim
        return pl.BlockSpec(arr.shape, lambda b, z=zeros: z)

    ordered = [sp["g1"], sp["b1"],
               sp["wq"], sp["wk"], sp["wv"], sp["bq"], sp["bk"], sp["bv"],
               sp["wo"], sp["bo"],
               sp["g2"], sp["b2"], sp["w1t"], sp["bf1"], sp["w2t"], sp["bf2"],
               gf, bf]

    # Cost hint so XLA schedules neighbours around the call sensibly.
    flops = B * L * (8 * S * D * D + 4 * S * S * D + 4 * S * D * F) + 6 * B * S * D
    transc = B * (L * (num_heads * S * S + 4 * S) + 2 * S)
    weight_bytes = sum(int(v.size) * v.dtype.itemsize for v in ordered)
    bytes_accessed = 2 * B * S * D * x.dtype.itemsize + weight_bytes

    kernel = functools.partial(_stack_kernel, num_layers=L, num_heads=num_heads,
                               head_dim=hd, eps=eps)
    return pl.pallas_call(
        kernel,
        out_shape=jax.ShapeDtypeStruct((B, S, D), x.dtype),
        grid=grid,
        in_specs=[xspec] + [const_spec(a) for a in ordered],
        out_specs=xspec,
        compiler_params=pltpu.CompilerParams(
            dimension_semantics=("parallel",),
            vmem_limit_bytes=32 * 1024 * 1024),
        cost_estimate=pl.CostEstimate(flops=flops, transcendentals=transc,
                                      bytes_accessed=bytes_accessed),
    )(x, *ordered)


# ------------------------- pure-JAX reference (PyTorch semantics) ------------
def _ref_layer_norm(x, g, b, eps=LN_EPS):
    m = jnp.mean(x, axis=-1, keepdims=True)
    v = jnp.mean((x - m) ** 2, axis=-1, keepdims=True)
    return (x - m) * jax.lax.rsqrt(v + eps) * g + b


def _ref_encoder_block(x, p, num_heads):
    B, S, E = x.shape
    hd = E // num_heads
    h = _ref_layer_norm(x, p["ln1_g"], p["ln1_b"])
    qkv = jnp.einsum("bse,fe->bsf", h, p["w_qkv"], precision="highest") + p["b_qkv"]
    qkv = qkv.reshape(B, S, num_heads, 3 * hd).transpose(0, 2, 1, 3)
    q, k, v = jnp.split(qkv, 3, axis=-1)
    logits = jnp.einsum("bhsd,bhtd->bhst", q, k, precision="highest") / math.sqrt(hd)
    attn = jax.nn.softmax(logits, axis=-1)
    vals = jnp.einsum("bhst,bhtd->bhsd", attn, v, precision="highest")
    vals = vals.transpose(0, 2, 1, 3).reshape(B, S, E)
    attn_out = jnp.einsum("bse,fe->bsf", vals, p["w_o"], precision="highest") + p["b_o"]
    x = x + attn_out
    h = _ref_layer_norm(x, p["ln2_g"], p["ln2_b"])
    h = jnp.maximum(
        jnp.einsum("bsd,fd->bsf", h, p["w_lin1"], precision="highest") + p["b_lin1"], 0.0)
    mlp = jnp.einsum("bsf,df->bsd", h, p["w_lin2"], precision="highest") + p["b_lin2"]
    return x + mlp


def _ref_forward(x, layer_params, norm_g, norm_b, num_heads):
    for p in layer_params:
        x = _ref_encoder_block(x, p, num_heads)
    return _ref_layer_norm(x, norm_g, norm_b)


if __name__ == "__main__":
    B, S, D = 2, 8, 32
    NUM_HEADS, DIM_FF, NUM_LAYERS = 4, 64, 2

    key = jax.random.PRNGKey(0)
    key, kx = jax.random.split(key)
    x = jax.random.normal(kx, (B, S, D), dtype=jnp.float32)

    layer_params = []
    for _ in range(NUM_LAYERS):
        key, *ks = jax.random.split(key, 13)
        layer_params.append({
            "ln1_g": 1.0 + 0.1 * jax.random.normal(ks[0], (D,), jnp.float32),
            "ln1_b": 0.1 * jax.random.normal(ks[1], (D,), jnp.float32),
            "w_qkv": jax.random.normal(ks[2], (3 * D, D), jnp.float32) / math.sqrt(D),
            "b_qkv": 0.1 * jax.random.normal(ks[3], (3 * D,), jnp.float32),
            "w_o": jax.random.normal(ks[4], (D, D), jnp.float32) / math.sqrt(D),
            "b_o": 0.1 * jax.random.normal(ks[5], (D,), jnp.float32),
            "ln2_g": 1.0 + 0.1 * jax.random.normal(ks[6], (D,), jnp.float32),
            "ln2_b": 0.1 * jax.random.normal(ks[7], (D,), jnp.float32),
            "w_lin1": jax.random.normal(ks[8], (DIM_FF, D), jnp.float32) / math.sqrt(D),
            "b_lin1": 0.1 * jax.random.normal(ks[9], (DIM_FF,), jnp.float32),
            "w_lin2": jax.random.normal(ks[10], (D, DIM_FF), jnp.float32) / math.sqrt(DIM_FF),
            "b_lin2": 0.1 * jax.random.normal(ks[11], (D,), jnp.float32),
        })
    key, kg, kb = jax.random.split(key, 3)
    norm_g = 1.0 + 0.1 * jax.random.normal(kg, (D,), jnp.float32)
    norm_b = 0.1 * jax.random.normal(kb, (D,), jnp.float32)

    out = relational_reasoning_forward(x, layer_params, norm_g, norm_b,
                                       num_heads=NUM_HEADS)
    jax.block_until_ready(out)

    ref = _ref_forward(x, layer_params, norm_g, norm_b, NUM_HEADS)
    assert out.shape == ref.shape == (B, S, D)
    max_err = float(jnp.max(jnp.abs(out - ref)))
    assert jnp.allclose(out, ref, atol=2e-3, rtol=2e-3), f"max_err={max_err}"

    print("KERNEL_OK")
</pallas_src>

<mosaic_0001>
module attributes {stable_mosaic.version = 11 : i64} {
  func.func @_stack_kernel(%arg0: i32, %arg1: memref<1x8x32xf32, #tpu.memory_space<vmem>>, %arg2: memref<2x1x32xf32, #tpu.memory_space<vmem>>, %arg3: memref<2x1x32xf32, #tpu.memory_space<vmem>>, %arg4: memref<2x4x32x8xf32, #tpu.memory_space<vmem>>, %arg5: memref<2x4x32x8xf32, #tpu.memory_space<vmem>>, %arg6: memref<2x4x32x8xf32, #tpu.memory_space<vmem>>, %arg7: memref<2x4x1x8xf32, #tpu.memory_space<vmem>>, %arg8: memref<2x4x1x8xf32, #tpu.memory_space<vmem>>, %arg9: memref<2x4x1x8xf32, #tpu.memory_space<vmem>>, %arg10: memref<2x4x8x32xf32, #tpu.memory_space<vmem>>, %arg11: memref<2x1x32xf32, #tpu.memory_space<vmem>>, %arg12: memref<2x1x32xf32, #tpu.memory_space<vmem>>, %arg13: memref<2x1x32xf32, #tpu.memory_space<vmem>>, %arg14: memref<2x32x64xf32, #tpu.memory_space<vmem>>, %arg15: memref<2x1x64xf32, #tpu.memory_space<vmem>>, %arg16: memref<2x64x32xf32, #tpu.memory_space<vmem>>, %arg17: memref<2x1x32xf32, #tpu.memory_space<vmem>>, %arg18: memref<1x32xf32, #tpu.memory_space<vmem>>, %arg19: memref<1x32xf32, #tpu.memory_space<vmem>>, %arg20: memref<1x8x32xf32, #tpu.memory_space<vmem>>) attributes {dimension_semantics = [#tpu.dimension_semantics<parallel>], iteration_bounds = array<i64: 2>, scalar_prefetch = 0 : i64, scratch_operands = 0 : i64, tpu.core_type = #tpu.core_type<tc>, window_params = [{transform_indices = @transform_0, window_bounds = array<i64: 1, 8, 32>}, {pipeline_mode = #tpu.pipeline_mode<synchronous>, transform_indices = @transform_1, window_bounds = array<i64: 2, 1, 32>}, {pipeline_mode = #tpu.pipeline_mode<synchronous>, transform_indices = @transform_2, window_bounds = array<i64: 2, 1, 32>}, {pipeline_mode = #tpu.pipeline_mode<synchronous>, transform_indices = @transform_3, window_bounds = array<i64: 2, 4, 32, 8>}, {pipeline_mode = #tpu.pipeline_mode<synchronous>, transform_indices = @transform_4, window_bounds = array<i64: 2, 4, 32, 8>}, {pipeline_mode = #tpu.pipeline_mode<synchronous>, transform_indices = @transform_5, window_bounds = array<i64: 2, 4, 32, 8>}, {pipeline_mode = #tpu.pipeline_mode<synchronous>, transform_indices = @transform_6, window_bounds = array<i64: 2, 4, 1, 8>}, {pipeline_mode = #tpu.pipeline_mode<synchronous>, transform_indices = @transform_7, window_bounds = array<i64: 2, 4, 1, 8>}, {pipeline_mode = #tpu.pipeline_mode<synchronous>, transform_indices = @transform_8, window_bounds = array<i64: 2, 4, 1, 8>}, {pipeline_mode = #tpu.pipeline_mode<synchronous>, transform_indices = @transform_9, window_bounds = array<i64: 2, 4, 8, 32>}, {pipeline_mode = #tpu.pipeline_mode<synchronous>, transform_indices = @transform_10, window_bounds = array<i64: 2, 1, 32>}, {pipeline_mode = #tpu.pipeline_mode<synchronous>, transform_indices = @transform_11, window_bounds = array<i64: 2, 1, 32>}, {pipeline_mode = #tpu.pipeline_mode<synchronous>, transform_indices = @transform_12, window_bounds = array<i64: 2, 1, 32>}, {pipeline_mode = #tpu.pipeline_mode<synchronous>, transform_indices = @transform_13, window_bounds = array<i64: 2, 32, 64>}, {pipeline_mode = #tpu.pipeline_mode<synchronous>, transform_indices = @transform_14, window_bounds = array<i64: 2, 1, 64>}, {pipeline_mode = #tpu.pipeline_mode<synchronous>, transform_indices = @transform_15, window_bounds = array<i64: 2, 64, 32>}, {pipeline_mode = #tpu.pipeline_mode<synchronous>, transform_indices = @transform_16, window_bounds = array<i64: 2, 1, 32>}, {pipeline_mode = #tpu.pipeline_mode<synchronous>, transform_indices = @transform_17, window_bounds = array<i64: 1, 32>}, {pipeline_mode = #tpu.pipeline_mode<synchronous>, transform_indices = @transform_18, window_bounds = array<i64: 1, 32>}, {transform_indices = @transform_19, window_bounds = array<i64: 1, 8, 32>}]} {
    %c0 = arith.constant 0 : index
    %c0_0 = arith.constant 0 : index
    %c0_1 = arith.constant 0 : index
    %0 = vector.load %arg1[%c0, %c0_0, %c0_1] : memref<1x8x32xf32, #tpu.memory_space<vmem>>, vector<1x8x32xf32>
    %1 = vector.shape_cast %0 : vector<1x8x32xf32> to vector<8x32xf32>
    %c0_2 = arith.constant 0 : index
    %c0_3 = arith.constant 0 : index
    %c0_4 = arith.constant 0 : index
    %2 = vector.load %arg2[%c0_2, %c0_3, %c0_4] : memref<2x1x32xf32, #tpu.memory_space<vmem>>, vector<1x1x32xf32>
    %3 = vector.shape_cast %2 : vector<1x1x32xf32> to vector<1x32xf32>
    %c0_5 = arith.constant 0 : index
    %c0_6 = arith.constant 0 : index
    %c0_7 = arith.constant 0 : index
    %4 = vector.load %arg3[%c0_5, %c0_6, %c0_7] : memref<2x1x32xf32, #tpu.memory_space<vmem>>, vector<1x1x32xf32>
    %5 = vector.shape_cast %4 : vector<1x1x32xf32> to vector<1x32xf32>
    %cst = arith.constant dense<0.000000e+00> : vector<8xf32>
    %6 = vector.multi_reduction <add>, %1, %cst [1] : vector<8x32xf32> to vector<8xf32>
    %7 = vector.shape_cast %6 : vector<8xf32> to vector<8x1xf32>
    %cst_8 = arith.constant 3.200000e+01 : f32
    %8 = vector.broadcast %cst_8 : f32 to vector<8x1xf32>
    %9 = arith.divf %7, %8 : vector<8x1xf32>
    %10 = vector.broadcast %9 : vector<8x1xf32> to vector<8x32xf32>
    %11 = arith.subf %1, %10 : vector<8x32xf32>
    %12 = arith.mulf %11, %11 : vector<8x32xf32>
    %cst_9 = arith.constant dense<0.000000e+00> : vector<8xf32>
    %13 = vector.multi_reduction <add>, %12, %cst_9 [1] : vector<8x32xf32> to vector<8xf32>
    %14 = vector.shape_cast %13 : vector<8xf32> to vector<8x1xf32>
    %cst_10 = arith.constant 3.200000e+01 : f32
    %15 = vector.broadcast %cst_10 : f32 to vector<8x1xf32>
    %16 = arith.divf %14, %15 : vector<8x1xf32>
    %cst_11 = arith.constant 9.99999974E-6 : f32
    %17 = vector.broadcast %cst_11 : f32 to vector<8x1xf32>
    %18 = arith.addf %16, %17 : vector<8x1xf32>
    %19 = math.rsqrt %18 : vector<8x1xf32>
    %20 = vector.broadcast %19 : vector<8x1xf32> to vector<8x32xf32>
    %21 = arith.mulf %11, %20 : vector<8x32xf32>
    %22 = vector.broadcast %3 : vector<1x32xf32> to vector<8x32xf32>
    %23 = arith.mulf %21, %22 : vector<8x32xf32>
    %24 = vector.broadcast %5 : vector<1x32xf32> to vector<8x32xf32>
    %25 = arith.addf %23, %24 : vector<8x32xf32>
    %c0_12 = arith.constant 0 : index
    %c0_13 = arith.constant 0 : index
    %c0_14 = arith.constant 0 : index
    %26 = vector.load %arg11[%c0_12, %c0_13, %c0_14] : memref<2x1x32xf32, #tpu.memory_space<vmem>>, vector<1x1x32xf32>
    %27 = vector.shape_cast %26 : vector<1x1x32xf32> to vector<1x32xf32>
    %c0_15 = arith.constant 0 : index
    %c0_16 = arith.constant 0 : index
    %c0_17 = arith.constant 0 : index
    %c0_18 = arith.constant 0 : index
    %28 = vector.load %arg4[%c0_15, %c0_16, %c0_17, %c0_18] : memref<2x4x32x8xf32, #tpu.memory_space<vmem>>, vector<1x1x32x8xf32>
    %29 = vector.shape_cast %28 : vector<1x1x32x8xf32> to vector<32x8xf32>
    %cst_19 = arith.constant dense<0.000000e+00> : vector<8x8xf32>
    %30 = tpu.matmul %25, %29, %cst_19 {dimension_numbers = #tpu.dot_dimension_numbers<[1], [0], [0], [1], [0, 0, 1, 1], [], []>} : vector<8x32xf32>, vector<32x8xf32>, vector<8x8xf32> -> vector<8x8xf32>
    %c0_20 = arith.constant 0 : index
    %c0_21 = arith.constant 0 : index
    %c0_22 = arith.constant 0 : index
    %c0_23 = arith.constant 0 : index
    %31 = vector.load %arg7[%c0_20, %c0_21, %c0_22, %c0_23] : memref<2x4x1x8xf32, #tpu.memory_space<vmem>>, vector<1x1x1x8xf32>
    %32 = vector.shape_cast %31 : vector<1x1x1x8xf32> to vector<1x8xf32>
    %33 = vector.broadcast %32 : vector<1x8xf32> to vector<8x8xf32>
    %34 = arith.addf %30, %33 : vector<8x8xf32>
    %c0_24 = arith.constant 0 : index
    %c0_25 = arith.constant 0 : index
    %c0_26 = arith.constant 0 : index
    %c0_27 = arith.constant 0 : index
    %35 = vector.load %arg5[%c0_24, %c0_25, %c0_26, %c0_27] : memref<2x4x32x8xf32, #tpu.memory_space<vmem>>, vector<1x1x32x8xf32>
    %36 = vector.shape_cast %35 : vector<1x1x32x8xf32> to vector<32x8xf32>
    %cst_28 = arith.constant dense<0.000000e+00> : vector<8x8xf32>
    %37 = tpu.matmul %25, %36, %cst_28 {dimension_numbers = #tpu.dot_dimension_numbers<[1], [0], [0], [1], [0, 0, 1, 1], [], []>} : vector<8x32xf32>, vector<32x8xf32>, vector<8x8xf32> -> vector<8x8xf32>
    %c0_29 = arith.constant 0 : index
    %c0_30 = arith.constant 0 : index
    %c0_31 = arith.constant 0 : index
    %c0_32 = arith.constant 0 : index
    %38 = vector.load %arg8[%c0_29, %c0_30, %c0_31, %c0_32] : memref<2x4x1x8xf32, #tpu.memory_space<vmem>>, vector<1x1x1x8xf32>
    %39 = vector.shape_cast %38 : vector<1x1x1x8xf32> to vector<1x8xf32>
    %40 = vector.broadcast %39 : vector<1x8xf32> to vector<8x8xf32>
    %41 = arith.addf %37, %40 : vector<8x8xf32>
    %c0_33 = arith.constant 0 : index
    %c0_34 = arith.constant 0 : index
    %c0_35 = arith.constant 0 : index
    %c0_36 = arith.constant 0 : index
    %42 = vector.load %arg6[%c0_33, %c0_34, %c0_35, %c0_36] : memref<2x4x32x8xf32, #tpu.memory_space<vmem>>, vector<1x1x32x8xf32>
    %43 = vector.shape_cast %42 : vector<1x1x32x8xf32> to vector<32x8xf32>
    %cst_37 = arith.constant dense<0.000000e+00> : vector<8x8xf32>
    %44 = tpu.matmul %25, %43, %cst_37 {dimension_numbers = #tpu.dot_dimension_numbers<[1], [0], [0], [1], [0, 0, 1, 1], [], []>} : vector<8x32xf32>, vector<32x8xf32>, vector<8x8xf32> -> vector<8x8xf32>
    %c0_38 = arith.constant 0 : index
    %c0_39 = arith.constant 0 : index
    %c0_40 = arith.constant 0 : index
    %c0_41 = arith.constant 0 : index
    %45 = vector.load %arg9[%c0_38, %c0_39, %c0_40, %c0_41] : memref<2x4x1x8xf32, #tpu.memory_space<vmem>>, vector<1x1x1x8xf32>
    %46 = vector.shape_cast %45 : vector<1x1x1x8xf32> to vector<1x8xf32>
    %47 = vector.broadcast %46 : vector<1x8xf32> to vector<8x8xf32>
    %48 = arith.addf %44, %47 : vector<8x8xf32>
    %cst_42 = arith.constant dense<0.000000e+00> : vector<8x8xf32>
    %49 = tpu.matmul %34, %41, %cst_42 {dimension_numbers = #tpu.dot_dimension_numbers<[1], [1], [0], [0], [0, 0, 1, 0], [], []>} : vector<8x8xf32>, vector<8x8xf32>, vector<8x8xf32> -> vector<8x8xf32>
    %cst_43 = arith.constant 0.353553385 : f32
    %50 = vector.broadcast %cst_43 : f32 to vector<8x8xf32>
    %51 = arith.mulf %49, %50 : vector<8x8xf32>
    %cst_44 = arith.constant dense<0xFF800000> : vector<8xf32>
    %52 = vector.multi_reduction <maximumf>, %51, %cst_44 [1] : vector<8x8xf32> to vector<8xf32>
    %53 = vector.shape_cast %52 : vector<8xf32> to vector<8x1xf32>
    %54 = vector.broadcast %53 : vector<8x1xf32> to vector<8x8xf32>
    %55 = arith.subf %51, %54 : vector<8x8xf32>
    %56 = math.exp %55 : vector<8x8xf32>
    %cst_45 = arith.constant dense<0.000000e+00> : vector<8xf32>
    %57 = vector.multi_reduction <add>, %56, %cst_45 [1] : vector<8x8xf32> to vector<8xf32>
    %58 = vector.shape_cast %57 : vector<8xf32> to vector<8x1xf32>
    %59 = tpu.reciprocal %58 : vector<8x1xf32> -> vector<8x1xf32>
    %60 = vector.broadcast %59 : vector<8x1xf32> to vector<8x8xf32>
    %61 = arith.mulf %56, %60 : vector<8x8xf32>
    %cst_46 = arith.constant dense<0.000000e+00> : vector<8x8xf32>
    %62 = tpu.matmul %61, %48, %cst_46 {dimension_numbers = #tpu.dot_dimension_numbers<[1], [0], [0], [1], [0, 0, 1, 1], [], []>} : vector<8x8xf32>, vector<8x8xf32>, vector<8x8xf32> -> vector<8x8xf32>
    %c0_47 = arith.constant 0 : index
    %c0_48 = arith.constant 0 : index
    %c0_49 = arith.constant 0 : index
    %c0_50 = arith.constant 0 : index
    %63 = vector.load %arg10[%c0_47, %c0_48, %c0_49, %c0_50] : memref<2x4x8x32xf32, #tpu.memory_space<vmem>>, vector<1x1x8x32xf32>
    %64 = vector.shape_cast %63 : vector<1x1x8x32xf32> to vector<8x32xf32>
    %cst_51 = arith.constant dense<0.000000e+00> : vector<8x32xf32>
    %65 = tpu.matmul %62, %64, %cst_51 {dimension_numbers = #tpu.dot_dimension_numbers<[1], [0], [0], [1], [0, 0, 1, 1], [], []>} : vector<8x8xf32>, vector<8x32xf32>, vector<8x32xf32> -> vector<8x32xf32>
    %66 = vector.broadcast %27 : vector<1x32xf32> to vector<8x32xf32>
    %67 = arith.addf %66, %65 : vector<8x32xf32>
    %c0_52 = arith.constant 0 : index
    %c1 = arith.constant 1 : index
    %c0_53 = arith.constant 0 : index
    %c0_54 = arith.constant 0 : index
    %68 = vector.load %arg4[%c0_52, %c1, %c0_53, %c0_54] : memref<2x4x32x8xf32, #tpu.memory_space<vmem>>, vector<1x1x32x8xf32>
    %69 = vector.shape_cast %68 : vector<1x1x32x8xf32> to vector<32x8xf32>
    %cst_55 = arith.constant dense<0.000000e+00> : vector<8x8xf32>
    %70 = tpu.matmul %25, %69, %cst_55 {dimension_numbers = #tpu.dot_dimension_numbers<[1], [0], [0], [1], [0, 0, 1, 1], [], []>} : vector<8x32xf32>, vector<32x8xf32>, vector<8x8xf32> -> vector<8x8xf32>
    %c0_56 = arith.constant 0 : index
    %c1_57 = arith.constant 1 : index
    %c0_58 = arith.constant 0 : index
    %c0_59 = arith.constant 0 : index
    %71 = vector.load %arg7[%c0_56, %c1_57, %c0_58, %c0_59] : memref<2x4x1x8xf32, #tpu.memory_space<vmem>>, vector<1x1x1x8xf32>
    %72 = vector.shape_cast %71 : vector<1x1x1x8xf32> to vector<1x8xf32>
    %73 = vector.broadcast %72 : vector<1x8xf32> to vector<8x8xf32>
    %74 = arith.addf %70, %73 : vector<8x8xf32>
    %c0_60 = arith.constant 0 : index
    %c1_61 = arith.constant 1 : index
    %c0_62 = arith.constant 0 : index
    %c0_63 = arith.constant 0 : index
    %75 = vector.load %arg5[%c0_60, %c1_61, %c0_62, %c0_63] : memref<2x4x32x8xf32, #tpu.memory_space<vmem>>, vector<1x1x32x8xf32>
    %76 = vector.shape_cast %75 : vector<1x1x32x8xf32> to vector<32x8xf32>
    %cst_64 = arith.constant dense<0.000000e+00> : vector<8x8xf32>
    %77 = tpu.matmul %25, %76, %cst_64 {dimension_numbers = #tpu.dot_dimension_numbers<[1], [0], [0], [1], [0, 0, 1, 1], [], []>} : vector<8x32xf32>, vector<32x8xf32>, vector<8x8xf32> -> vector<8x8xf32>
    %c0_65 = arith.constant 0 : index
    %c1_66 = arith.constant 1 : index
    %c0_67 = arith.constant 0 : index
    %c0_68 = arith.constant 0 : index
    %78 = vector.load %arg8[%c0_65, %c1_66, %c0_67, %c0_68] : memref<2x4x1x8xf32, #tpu.memory_space<vmem>>, vector<1x1x1x8xf32>
    %79 = vector.shape_cast %78 : vector<1x1x1x8xf32> to vector<1x8xf32>
    %80 = vector.broadcast %79 : vector<1x8xf32> to vector<8x8xf32>
    %81 = arith.addf %77, %80 : vector<8x8xf32>
    %c0_69 = arith.constant 0 : index
    %c1_70 = arith.constant 1 : index
    %c0_71 = arith.constant 0 : index
    %c0_72 = arith.constant 0 : index
    %82 = vector.load %arg6[%c0_69, %c1_70, %c0_71, %c0_72] : memref<2x4x32x8xf32, #tpu.memory_space<vmem>>, vector<1x1x32x8xf32>
    %83 = vector.shape_cast %82 : vector<1x1x32x8xf32> to vector<32x8xf32>
    %cst_73 = arith.constant dense<0.000000e+00> : vector<8x8xf32>
    %84 = tpu.matmul %25, %83, %cst_73 {dimension_numbers = #tpu.dot_dimension_numbers<[1], [0], [0], [1], [0, 0, 1, 1], [], []>} : vector<8x32xf32>, vector<32x8xf32>, vector<8x8xf32> -> vector<8x8xf32>
    %c0_74 = arith.constant 0 : index
    %c1_75 = arith.constant 1 : index
    %c0_76 = arith.constant 0 : index
    %c0_77 = arith.constant 0 : index
    %85 = vector.load %arg9[%c0_74, %c1_75, %c0_76, %c0_77] : memref<2x4x1x8xf32, #tpu.memory_space<vmem>>, vector<1x1x1x8xf32>
    %86 = vector.shape_cast %85 : vector<1x1x1x8xf32> to vector<1x8xf32>
    %87 = vector.broadcast %86 : vector<1x8xf32> to vector<8x8xf32>
    %88 = arith.addf %84, %87 : vector<8x8xf32>
    %cst_78 = arith.constant dense<0.000000e+00> : vector<8x8xf32>
    %89 = tpu.matmul %74, %81, %cst_78 {dimension_numbers = #tpu.dot_dimension_numbers<[1], [1], [0], [0], [0, 0, 1, 0], [], []>} : vector<8x8xf32>, vector<8x8xf32>, vector<8x8xf32> -> vector<8x8xf32>
    %cst_79 = arith.constant 0.353553385 : f32
    %90 = vector.broadcast %cst_79 : f32 to vector<8x8xf32>
    %91 = arith.mulf %89, %90 : vector<8x8xf32>
    %cst_80 = arith.constant dense<0xFF800000> : vector<8xf32>
    %92 = vector.multi_reduction <maximumf>, %91, %cst_80 [1] : vector<8x8xf32> to vector<8xf32>
    %93 = vector.shape_cast %92 : vector<8xf32> to vector<8x1xf32>
    %94 = vector.broadcast %93 : vector<8x1xf32> to vector<8x8xf32>
    %95 = arith.subf %91, %94 : vector<8x8xf32>
    %96 = math.exp %95 : vector<8x8xf32>
    %cst_81 = arith.constant dense<0.000000e+00> : vector<8xf32>
    %97 = vector.multi_reduction <add>, %96, %cst_81 [1] : vector<8x8xf32> to vector<8xf32>
    %98 = vector.shape_cast %97 : vector<8xf32> to vector<8x1xf32>
    %99 = tpu.reciprocal %98 : vector<8x1xf32> -> vector<8x1xf32>
    %100 = vector.broadcast %99 : vector<8x1xf32> to vector<8x8xf32>
    %101 = arith.mulf %96, %100 : vector<8x8xf32>
    %cst_82 = arith.constant dense<0.000000e+00> : vector<8x8xf32>
    %102 = tpu.matmul %101, %88, %cst_82 {dimension_numbers = #tpu.dot_dimension_numbers<[1], [0], [0], [1], [0, 0, 1, 1], [], []>} : vector<8x8xf32>, vector<8x8xf32>, vector<8x8xf32> -> vector<8x8xf32>
    %c0_83 = arith.constant 0 : index
    %c1_84 = arith.constant 1 : index
    %c0_85 = arith.constant 0 : index
    %c0_86 = arith.constant 0 : index
    %103 = vector.load %arg10[%c0_83, %c1_84, %c0_85, %c0_86] : memref<2x4x8x32xf32, #tpu.memory_space<vmem>>, vector<1x1x8x32xf32>
    %104 = vector.shape_cast %103 : vector<1x1x8x32xf32> to vector<8x32xf32>
    %cst_87 = arith.constant dense<0.000000e+00> : vector<8x32xf32>
    %105 = tpu.matmul %102, %104, %cst_87 {dimension_numbers = #tpu.dot_dimension_numbers<[1], [0], [0], [1], [0, 0, 1, 1], [], []>} : vector<8x8xf32>, vector<8x32xf32>, vector<8x32xf32> -> vector<8x32xf32>
    %106 = arith.addf %67, %105 : vector<8x32xf32>
    %c0_88 = arith.constant 0 : index
    %c2 = arith.constant 2 : index
    %c0_89 = arith.constant 0 : index
    %c0_90 = arith.constant 0 : index
    %107 = vector.load %arg4[%c0_88, %c2, %c0_89, %c0_90] : memref<2x4x32x8xf32, #tpu.memory_space<vmem>>, vector<1x1x32x8xf32>
    %108 = vector.shape_cast %107 : vector<1x1x32x8xf32> to vector<32x8xf32>
    %cst_91 = arith.constant dense<0.000000e+00> : vector<8x8xf32>
    %109 = tpu.matmul %25, %108, %cst_91 {dimension_numbers = #tpu.dot_dimension_numbers<[1], [0], [0], [1], [0, 0, 1, 1], [], []>} : vector<8x32xf32>, vector<32x8xf32>, vector<8x8xf32> -> vector<8x8xf32>
    %c0_92 = arith.constant 0 : index
    %c2_93 = arith.constant 2 : index
    %c0_94 = arith.constant 0 : index
    %c0_95 = arith.constant 0 : index
    %110 = vector.load %arg7[%c0_92, %c2_93, %c0_94, %c0_95] : memref<2x4x1x8xf32, #tpu.memory_space<vmem>>, vector<1x1x1x8xf32>
    %111 = vector.shape_cast %110 : vector<1x1x1x8xf32> to vector<1x8xf32>
    %112 = vector.broadcast %111 : vector<1x8xf32> to vector<8x8xf32>
    %113 = arith.addf %109, %112 : vector<8x8xf32>
    %c0_96 = arith.constant 0 : index
    %c2_97 = arith.constant 2 : index
    %c0_98 = arith.constant 0 : index
    %c0_99 = arith.constant 0 : index
    %114 = vector.load %arg5[%c0_96, %c2_97, %c0_98, %c0_99] : memref<2x4x32x8xf32, #tpu.memory_space<vmem>>, vector<1x1x32x8xf32>
    %115 = vector.shape_cast %114 : vector<1x1x32x8xf32> to vector<32x8xf32>
    %cst_100 = arith.constant dense<0.000000e+00> : vector<8x8xf32>
    %116 = tpu.matmul %25, %115, %cst_100 {dimension_numbers = #tpu.dot_dimension_numbers<[1], [0], [0], [1], [0, 0, 1, 1], [], []>} : vector<8x32xf32>, vector<32x8xf32>, vector<8x8xf32> -> vector<8x8xf32>
    %c0_101 = arith.constant 0 : index
    %c2_102 = arith.constant 2 : index
    %c0_103 = arith.constant 0 : index
    %c0_104 = arith.constant 0 : index
    %117 = vector.load %arg8[%c0_101, %c2_102, %c0_103, %c0_104] : memref<2x4x1x8xf32, #tpu.memory_space<vmem>>, vector<1x1x1x8xf32>
    %118 = vector.shape_cast %117 : vector<1x1x1x8xf32> to vector<1x8xf32>
    %119 = vector.broadcast %118 : vector<1x8xf32> to vector<8x8xf32>
    %120 = arith.addf %116, %119 : vector<8x8xf32>
    %c0_105 = arith.constant 0 : index
    %c2_106 = arith.constant 2 : index
    %c0_107 = arith.constant 0 : index
    %c0_108 = arith.constant 0 : index
    %121 = vector.load %arg6[%c0_105, %c2_106, %c0_107, %c0_108] : memref<2x4x32x8xf32, #tpu.memory_space<vmem>>, vector<1x1x32x8xf32>
    %122 = vector.shape_cast %121 : vector<1x1x32x8xf32> to vector<32x8xf32>
    %cst_109 = arith.constant dense<0.000000e+00> : vector<8x8xf32>
    %123 = tpu.matmul %25, %122, %cst_109 {dimension_numbers = #tpu.dot_dimension_numbers<[1], [0], [0], [1], [0, 0, 1, 1], [], []>} : vector<8x32xf32>, vector<32x8xf32>, vector<8x8xf32> -> vector<8x8xf32>
    %c0_110 = arith.constant 0 : index
    %c2_111 = arith.constant 2 : index
    %c0_112 = arith.constant 0 : index
    %c0_113 = arith.constant 0 : index
    %124 = vector.load %arg9[%c0_110, %c2_111, %c0_112, %c0_113] : memref<2x4x1x8xf32, #tpu.memory_space<vmem>>, vector<1x1x1x8xf32>
    %125 = vector.shape_cast %124 : vector<1x1x1x8xf32> to vector<1x8xf32>
    %126 = vector.broadcast %125 : vector<1x8xf32> to vector<8x8xf32>
    %127 = arith.addf %123, %126 : vector<8x8xf32>
    %cst_114 = arith.constant dense<0.000000e+00> : vector<8x8xf32>
    %128 = tpu.matmul %113, %120, %cst_114 {dimension_numbers = #tpu.dot_dimension_numbers<[1], [1], [0], [0], [0, 0, 1, 0], [], []>} : vector<8x8xf32>, vector<8x8xf32>, vector<8x8xf32> -> vector<8x8xf32>
    %cst_115 = arith.constant 0.353553385 : f32
    %129 = vector.broadcast %cst_115 : f32 to vector<8x8xf32>
    %130 = arith.mulf %128, %129 : vector<8x8xf32>
    %cst_116 = arith.constant dense<0xFF800000> : vector<8xf32>
    %131 = vector.multi_reduction <maximumf>, %130, %cst_116 [1] : vector<8x8xf32> to vector<8xf32>
    %132 = vector.shape_cast %131 : vector<8xf32> to vector<8x1xf32>
    %133 = vector.broadcast %132 : vector<8x1xf32> to vector<8x8xf32>
    %134 = arith.subf %130, %133 : vector<8x8xf32>
    %135 = math.exp %134 : vector<8x8xf32>
    %cst_117 = arith.constant dense<0.000000e+00> : vector<8xf32>
    %136 = vector.multi_reduction <add>, %135, %cst_117 [1] : vector<8x8xf32> to vector<8xf32>
    %137 = vector.shape_cast %136 : vector<8xf32> to vector<8x1xf32>
    %138 = tpu.reciprocal %137 : vector<8x1xf32> -> vector<8x1xf32>
    %139 = vector.broadcast %138 : vector<8x1xf32> to vector<8x8xf32>
    %140 = arith.mulf %135, %139 : vector<8x8xf32>
    %cst_118 = arith.constant dense<0.000000e+00> : vector<8x8xf32>
    %141 = tpu.matmul %140, %127, %cst_118 {dimension_numbers = #tpu.dot_dimension_numbers<[1], [0], [0], [1], [0, 0, 1, 1], [], []>} : vector<8x8xf32>, vector<8x8xf32>, vector<8x8xf32> -> vector<8x8xf32>
    %c0_119 = arith.constant 0 : index
    %c2_120 = arith.constant 2 : index
    %c0_121 = arith.constant 0 : index
    %c0_122 = arith.constant 0 : index
    %142 = vector.load %arg10[%c0_119, %c2_120, %c0_121, %c0_122] : memref<2x4x8x32xf32, #tpu.memory_space<vmem>>, vector<1x1x8x32xf32>
    %143 = vector.shape_cast %142 : vector<1x1x8x32xf32> to vector<8x32xf32>
    %cst_123 = arith.constant dense<0.000000e+00> : vector<8x32xf32>
    %144 = tpu.matmul %141, %143, %cst_123 {dimension_numbers = #tpu.dot_dimension_numbers<[1], [0], [0], [1], [0, 0, 1, 1], [], []>} : vector<8x8xf32>, vector<8x32xf32>, vector<8x32xf32> -> vector<8x32xf32>
    %145 = arith.addf %106, %144 : vector<8x32xf32>
    %c0_124 = arith.constant 0 : index
    %c3 = arith.constant 3 : index
    %c0_125 = arith.constant 0 : index
    %c0_126 = arith.constant 0 : index
    %146 = vector.load %arg4[%c0_124, %c3, %c0_125, %c0_126] : memref<2x4x32x8xf32, #tpu.memory_space<vmem>>, vector<1x1x32x8xf32>
    %147 = vector.shape_cast %146 : vector<1x1x32x8xf32> to vector<32x8xf32>
    %cst_127 = arith.constant dense<0.000000e+00> : vector<8x8xf32>
    %148 = tpu.matmul %25, %147, %cst_127 {dimension_numbers = #tpu.dot_dimension_numbers<[1], [0], [0], [1], [0, 0, 1, 1], [], []>} : vector<8x32xf32>, vector<32x8xf32>, vector<8x8xf32> -> vector<8x8xf32>
    %c0_128 = arith.constant 0 : index
    %c3_129 = arith.constant 3 : index
    %c0_130 = arith.constant 0 : index
    %c0_131 = arith.constant 0 : index
    %149 = vector.load %arg7[%c0_128, %c3_129, %c0_130, %c0_131] : memref<2x4x1x8xf32, #tpu.memory_space<vmem>>, vector<1x1x1x8xf32>
    %150 = vector.shape_cast %149 : vector<1x1x1x8xf32> to vector<1x8xf32>
    %151 = vector.broadcast %150 : vector<1x8xf32> to vector<8x8xf32>
    %152 = arith.addf %148, %151 : vector<8x8xf32>
    %c0_132 = arith.constant 0 : index
    %c3_133 = arith.constant 3 : index
    %c0_134 = arith.constant 0 : index
    %c0_135 = arith.constant 0 : index
    %153 = vector.load %arg5[%c0_132, %c3_133, %c0_134, %c0_135] : memref<2x4x32x8xf32, #tpu.memory_space<vmem>>, vector<1x1x32x8xf32>
    %154 = vector.shape_cast %153 : vector<1x1x32x8xf32> to vector<32x8xf32>
    %cst_136 = arith.constant dense<0.000000e+00> : vector<8x8xf32>
    %155 = tpu.matmul %25, %154, %cst_136 {dimension_numbers = #tpu.dot_dimension_numbers<[1], [0], [0], [1], [0, 0, 1, 1], [], []>} : vector<8x32xf32>, vector<32x8xf32>, vector<8x8xf32> -> vector<8x8xf32>
    %c0_137 = arith.constant 0 : index
    %c3_138 = arith.constant 3 : index
    %c0_139 = arith.constant 0 : index
    %c0_140 = arith.constant 0 : index
    %156 = vector.load %arg8[%c0_137, %c3_138, %c0_139, %c0_140] : memref<2x4x1x8xf32, #tpu.memory_space<vmem>>, vector<1x1x1x8xf32>
    %157 = vector.shape_cast %156 : vector<1x1x1x8xf32> to vector<1x8xf32>
    %158 = vector.broadcast %157 : vector<1x8xf32> to vector<8x8xf32>
    %159 = arith.addf %155, %158 : vector<8x8xf32>
    %c0_141 = arith.constant 0 : index
    %c3_142 = arith.constant 3 : index
    %c0_143 = arith.constant 0 : index
    %c0_144 = arith.constant 0 : index
    %160 = vector.load %arg6[%c0_141, %c3_142, %c0_143, %c0_144] : memref<2x4x32x8xf32, #tpu.memory_space<vmem>>, vector<1x1x32x8xf32>
    %161 = vector.shape_cast %160 : vector<1x1x32x8xf32> to vector<32x8xf32>
    %cst_145 = arith.constant dense<0.000000e+00> : vector<8x8xf32>
    %162 = tpu.matmul %25, %161, %cst_145 {dimension_numbers = #tpu.dot_dimension_numbers<[1], [0], [0], [1], [0, 0, 1, 1], [], []>} : vector<8x32xf32>, vector<32x8xf32>, vector<8x8xf32> -> vector<8x8xf32>
    %c0_146 = arith.constant 0 : index
    %c3_147 = arith.constant 3 : index
    %c0_148 = arith.constant 0 : index
    %c0_149 = arith.constant 0 : index
    %163 = vector.load %arg9[%c0_146, %c3_147, %c0_148, %c0_149] : memref<2x4x1x8xf32, #tpu.memory_space<vmem>>, vector<1x1x1x8xf32>
    %164 = vector.shape_cast %163 : vector<1x1x1x8xf32> to vector<1x8xf32>
    %165 = vector.broadcast %164 : vector<1x8xf32> to vector<8x8xf32>
    %166 = arith.addf %162, %165 : vector<8x8xf32>
    %cst_150 = arith.constant dense<0.000000e+00> : vector<8x8xf32>
    %167 = tpu.matmul %152, %159, %cst_150 {dimension_numbers = #tpu.dot_dimension_numbers<[1], [1], [0], [0], [0, 0, 1, 0], [], []>} : vector<8x8xf32>, vector<8x8xf32>, vector<8x8xf32> -> vector<8x8xf32>
    %cst_151 = arith.constant 0.353553385 : f32
    %168 = vector.broadcast %cst_151 : f32 to vector<8x8xf32>
    %169 = arith.mulf %167, %168 : vector<8x8xf32>
    %cst_152 = arith.constant dense<0xFF800000> : vector<8xf32>
    %170 = vector.multi_reduction <maximumf>, %169, %cst_152 [1] : vector<8x8xf32> to vector<8xf32>
    %171 = vector.shape_cast %170 : vector<8xf32> to vector<8x1xf32>
    %172 = vector.broadcast %171 : vector<8x1xf32> to vector<8x8xf32>
    %173 = arith.subf %169, %172 : vector<8x8xf32>
    %174 = math.exp %173 : vector<8x8xf32>
    %cst_153 = arith.constant dense<0.000000e+00> : vector<8xf32>
    %175 = vector.multi_reduction <add>, %174, %cst_153 [1] : vector<8x8xf32> to vector<8xf32>
    %176 = vector.shape_cast %175 : vector<8xf32> to vector<8x1xf32>
    %177 = tpu.reciprocal %176 : vector<8x1xf32> -> vector<8x1xf32>
    %178 = vector.broadcast %177 : vector<8x1xf32> to vector<8x8xf32>
    %179 = arith.mulf %174, %178 : vector<8x8xf32>
    %cst_154 = arith.constant dense<0.000000e+00> : vector<8x8xf32>
    %180 = tpu.matmul %179, %166, %cst_154 {dimension_numbers = #tpu.dot_dimension_numbers<[1], [0], [0], [1], [0, 0, 1, 1], [], []>} : vector<8x8xf32>, vector<8x8xf32>, vector<8x8xf32> -> vector<8x8xf32>
    %c0_155 = arith.constant 0 : index
    %c3_156 = arith.constant 3 : index
    %c0_157 = arith.constant 0 : index
    %c0_158 = arith.constant 0 : index
    %181 = vector.load %arg10[%c0_155, %c3_156, %c0_157, %c0_158] : memref<2x4x8x32xf32, #tpu.memory_space<vmem>>, vector<1x1x8x32xf32>
    %182 = vector.shape_cast %181 : vector<1x1x8x32xf32> to vector<8x32xf32>
    %cst_159 = arith.constant dense<0.000000e+00> : vector<8x32xf32>
    %183 = tpu.matmul %180, %182, %cst_159 {dimension_numbers = #tpu.dot_dimension_numbers<[1], [0], [0], [1], [0, 0, 1, 1], [], []>} : vector<8x8xf32>, vector<8x32xf32>, vector<8x32xf32> -> vector<8x32xf32>
    %184 = arith.addf %145, %183 : vector<8x32xf32>
    %185 = arith.addf %1, %184 : vector<8x32xf32>
    %c0_160 = arith.constant 0 : index
    %c0_161 = arith.constant 0 : index
    %c0_162 = arith.constant 0 : index
    %186 = vector.load %arg12[%c0_160, %c0_161, %c0_162] : memref<2x1x32xf32, #tpu.memory_space<vmem>>, vector<1x1x32xf32>
    %187 = vector.shape_cast %186 : vector<1x1x32xf32> to vector<1x32xf32>
    %c0_163 = arith.constant 0 : index
    %c0_164 = arith.constant 0 : index
    %c0_165 = arith.constant 0 : index
    %188 = vector.load %arg13[%c0_163, %c0_164, %c0_165] : memref<2x1x32xf32, #tpu.memory_space<vmem>>, vector<1x1x32xf32>
    %189 = vector.shape_cast %188 : vector<1x1x32xf32> to vector<1x32xf32>
    %cst_166 = arith.constant dense<0.000000e+00> : vector<8xf32>
    %190 = vector.multi_reduction <add>, %185, %cst_166 [1] : vector<8x32xf32> to vector<8xf32>
    %191 = vector.shape_cast %190 : vector<8xf32> to vector<8x1xf32>
    %cst_167 = arith.constant 3.200000e+01 : f32
    %192 = vector.broadcast %cst_167 : f32 to vector<8x1xf32>
    %193 = arith.divf %191, %192 : vector<8x1xf32>
    %194 = vector.broadcast %193 : vector<8x1xf32> to vector<8x32xf32>
    %195 = arith.subf %185, %194 : vector<8x32xf32>
    %196 = arith.mulf %195, %195 : vector<8x32xf32>
    %cst_168 = arith.constant dense<0.000000e+00> : vector<8xf32>
    %197 = vector.multi_reduction <add>, %196, %cst_168 [1] : vector<8x32xf32> to vector<8xf32>
    %198 = vector.shape_cast %197 : vector<8xf32> to vector<8x1xf32>
    %cst_169 = arith.constant 3.200000e+01 : f32
    %199 = vector.broadcast %cst_169 : f32 to vector<8x1xf32>
    %200 = arith.divf %198, %199 : vector<8x1xf32>
    %cst_170 = arith.constant 9.99999974E-6 : f32
    %201 = vector.broadcast %cst_170 : f32 to vector<8x1xf32>
    %202 = arith.addf %200, %201 : vector<8x1xf32>
    %203 = math.rsqrt %202 : vector<8x1xf32>
    %204 = vector.broadcast %203 : vector<8x1xf32> to vector<8x32xf32>
    %205 = arith.mulf %195, %204 : vector<8x32xf32>
    %206 = vector.broadcast %187 : vector<1x32xf32> to vector<8x32xf32>
    %207 = arith.mulf %205, %206 : vector<8x32xf32>
    %208 = vector.broadcast %189 : vector<1x32xf32> to vector<8x32xf32>
    %209 = arith.addf %207, %208 : vector<8x32xf32>
    %c0_171 = arith.constant 0 : index
    %c0_172 = arith.constant 0 : index
    %c0_173 = arith.constant 0 : index
    %210 = vector.load %arg14[%c0_171, %c0_172, %c0_173] : memref<2x32x64xf32, #tpu.memory_space<vmem>>, vector<1x32x64xf32>
    %211 = vector.shape_cast %210 : vector<1x32x64xf32> to vector<32x64xf32>
    %cst_174 = arith.constant dense<0.000000e+00> : vector<8x64xf32>
    %212 = tpu.matmul %209, %211, %cst_174 {dimension_numbers = #tpu.dot_dimension_numbers<[1], [0], [0], [1], [0, 0, 1, 1], [], []>} : vector<8x32xf32>, vector<32x64xf32>, vector<8x64xf32> -> vector<8x64xf32>
    %c0_175 = arith.constant 0 : index
    %c0_176 = arith.constant 0 : index
    %c0_177 = arith.constant 0 : index
    %213 = vector.load %arg15[%c0_175, %c0_176, %c0_177] : memref<2x1x64xf32, #tpu.memory_space<vmem>>, vector<1x1x64xf32>
    %214 = vector.shape_cast %213 : vector<1x1x64xf32> to vector<1x64xf32>
    %215 = vector.broadcast %214 : vector<1x64xf32> to vector<8x64xf32>
    %216 = arith.addf %212, %215 : vector<8x64xf32>
    %cst_178 = arith.constant 0.000000e+00 : f32
    %217 = vector.broadcast %cst_178 : f32 to vector<8x64xf32>
    %218 = arith.maximumf %216, %217 : vector<8x64xf32>
    %c0_179 = arith.constant 0 : index
    %c0_180 = arith.constant 0 : index
    %c0_181 = arith.constant 0 : index
    %219 = vector.load %arg16[%c0_179, %c0_180, %c0_181] : memref<2x64x32xf32, #tpu.memory_space<vmem>>, vector<1x64x32xf32>
    %220 = vector.shape_cast %219 : vector<1x64x32xf32> to vector<64x32xf32>
    %cst_182 = arith.constant dense<0.000000e+00> : vector<8x32xf32>
    %221 = tpu.matmul %218, %220, %cst_182 {dimension_numbers = #tpu.dot_dimension_numbers<[1], [0], [0], [1], [0, 0, 1, 1], [], []>} : vector<8x64xf32>, vector<64x32xf32>, vector<8x32xf32> -> vector<8x32xf32>
    %c0_183 = arith.constant 0 : index
    %c0_184 = arith.constant 0 : index
    %c0_185 = arith.constant 0 : index
    %222 = vector.load %arg17[%c0_183, %c0_184, %c0_185] : memref<2x1x32xf32, #tpu.memory_space<vmem>>, vector<1x1x32xf32>
    %223 = vector.shape_cast %222 : vector<1x1x32xf32> to vector<1x32xf32>
    %224 = vector.broadcast %223 : vector<1x32xf32> to vector<8x32xf32>
    %225 = arith.addf %221, %224 : vector<8x32xf32>
    %226 = arith.addf %185, %225 : vector<8x32xf32>
    %c1_186 = arith.constant 1 : index
    %c0_187 = arith.constant 0 : index
    %c0_188 = arith.constant 0 : index
    %227 = vector.load %arg2[%c1_186, %c0_187, %c0_188] : memref<2x1x32xf32, #tpu.memory_space<vmem>>, vector<1x1x32xf32>
    %228 = vector.shape_cast %227 : vector<1x1x32xf32> to vector<1x32xf32>
    %c1_189 = arith.constant 1 : index
    %c0_190 = arith.constant 0 : index
    %c0_191 = arith.constant 0 : index
    %229 = vector.load %arg3[%c1_189, %c0_190, %c0_191] : memref<2x1x32xf32, #tpu.memory_space<vmem>>, vector<1x1x32xf32>
    %230 = vector.shape_cast %229 : vector<1x1x32xf32> to vector<1x32xf32>
    %cst_192 = arith.constant dense<0.000000e+00> : vector<8xf32>
    %231 = vector.multi_reduction <add>, %226, %cst_192 [1] : vector<8x32xf32> to vector<8xf32>
    %232 = vector.shape_cast %231 : vector<8xf32> to vector<8x1xf32>
    %cst_193 = arith.constant 3.200000e+01 : f32
    %233 = vector.broadcast %cst_193 : f32 to vector<8x1xf32>
    %234 = arith.divf %232, %233 : vector<8x1xf32>
    %235 = vector.broadcast %234 : vector<8x1xf32> to vector<8x32xf32>
    %236 = arith.subf %226, %235 : vector<8x32xf32>
    %237 = arith.mulf %236, %236 : vector<8x32xf32>
    %cst_194 = arith.constant dense<0.000000e+00> : vector<8xf32>
    %238 = vector.multi_reduction <add>, %237, %cst_194 [1] : vector<8x32xf32> to vector<8xf32>
    %239 = vector.shape_cast %238 : vector<8xf32> to vector<8x1xf32>
    %cst_195 = arith.constant 3.200000e+01 : f32
    %240 = vector.broadcast %cst_195 : f32 to vector<8x1xf32>
    %241 = arith.divf %239, %240 : vector<8x1xf32>
    %cst_196 = arith.constant 9.99999974E-6 : f32
    %242 = vector.broadcast %cst_196 : f32 to vector<8x1xf32>
    %243 = arith.addf %241, %242 : vector<8x1xf32>
    %244 = math.rsqrt %243 : vector<8x1xf32>
    %245 = vector.broadcast %244 : vector<8x1xf32> to vector<8x32xf32>
    %246 = arith.mulf %236, %245 : vector<8x32xf32>
    %247 = vector.broadcast %228 : vector<1x32xf32> to vector<8x32xf32>
    %248 = arith.mulf %246, %247 : vector<8x32xf32>
    %249 = vector.broadcast %230 : vector<1x32xf32> to vector<8x32xf32>
    %250 = arith.addf %248, %249 : vector<8x32xf32>
    %c1_197 = arith.constant 1 : index
    %c0_198 = arith.constant 0 : index
    %c0_199 = arith.constant 0 : index
    %251 = vector.load %arg11[%c1_197, %c0_198, %c0_199] : memref<2x1x32xf32, #tpu.memory_space<vmem>>, vector<1x1x32xf32>
    %252 = vector.shape_cast %251 : vector<1x1x32xf32> to vector<1x32xf32>
    %c1_200 = arith.constant 1 : index
    %c0_201 = arith.constant 0 : index
    %c0_202 = arith.constant 0 : index
    %c0_203 = arith.constant 0 : index
    %253 = vector.load %arg4[%c1_200, %c0_201, %c0_202, %c0_203] : memref<2x4x32x8xf32, #tpu.memory_space<vmem>>, vector<1x1x32x8xf32>
    %254 = vector.shape_cast %253 : vector<1x1x32x8xf32> to vector<32x8xf32>
    %cst_204 = arith.constant dense<0.000000e+00> : vector<8x8xf32>
    %255 = tpu.matmul %250, %254, %cst_204 {dimension_numbers = #tpu.dot_dimension_numbers<[1], [0], [0], [1], [0, 0, 1, 1], [], []>} : vector<8x32xf32>, vector<32x8xf32>, vector<8x8xf32> -> vector<8x8xf32>
    %c1_205 = arith.constant 1 : index
    %c0_206 = arith.constant 0 : index
    %c0_207 = arith.constant 0 : index
    %c0_208 = arith.constant 0 : index
    %256 = vector.load %arg7[%c1_205, %c0_206, %c0_207, %c0_208] : memref<2x4x1x8xf32, #tpu.memory_space<vmem>>, vector<1x1x1x8xf32>
    %257 = vector.shape_cast %256 : vector<1x1x1x8xf32> to vector<1x8xf32>
    %258 = vector.broadcast %257 : vector<1x8xf32> to vector<8x8xf32>
    %259 = arith.addf %255, %258 : vector<8x8xf32>
    %c1_209 = arith.constant 1 : index
    %c0_210 = arith.constant 0 : index
    %c0_211 = arith.constant 0 : index
    %c0_212 = arith.constant 0 : index
    %260 = vector.load %arg5[%c1_209, %c0_210, %c0_211, %c0_212] : memref<2x4x32x8xf32, #tpu.memory_space<vmem>>, vector<1x1x32x8xf32>
    %261 = vector.shape_cast %260 : vector<1x1x32x8xf32> to vector<32x8xf32>
    %cst_213 = arith.constant dense<0.000000e+00> : vector<8x8xf32>
    %262 = tpu.matmul %250, %261, %cst_213 {dimension_numbers = #tpu.dot_dimension_numbers<[1], [0], [0], [1], [0, 0, 1, 1], [], []>} : vector<8x32xf32>, vector<32x8xf32>, vector<8x8xf32> -> vector<8x8xf32>
    %c1_214 = arith.constant 1 : index
    %c0_215 = arith.constant 0 : index
    %c0_216 = arith.constant 0 : index
    %c0_217 = arith.constant 0 : index
    %263 = vector.load %arg8[%c1_214, %c0_215, %c0_216, %c0_217] : memref<2x4x1x8xf32, #tpu.memory_space<vmem>>, vector<1x1x1x8xf32>
    %264 = vector.shape_cast %263 : vector<1x1x1x8xf32> to vector<1x8xf32>
    %265 = vector.broadcast %264 : vector<1x8xf32> to vector<8x8xf32>
    %266 = arith.addf %262, %265 : vector<8x8xf32>
    %c1_218 = arith.constant 1 : index
    %c0_219 = arith.constant 0 : index
    %c0_220 = arith.constant 0 : index
    %c0_221 = arith.constant 0 : index
    %267 = vector.load %arg6[%c1_218, %c0_219, %c0_220, %c0_221] : memref<2x4x32x8xf32, #tpu.memory_space<vmem>>, vector<1x1x32x8xf32>
    %268 = vector.shape_cast %267 : vector<1x1x32x8xf32> to vector<32x8xf32>
    %cst_222 = arith.constant dense<0.000000e+00> : vector<8x8xf32>
    %269 = tpu.matmul %250, %268, %cst_222 {dimension_numbers = #tpu.dot_dimension_numbers<[1], [0], [0], [1], [0, 0, 1, 1], [], []>} : vector<8x32xf32>, vector<32x8xf32>, vector<8x8xf32> -> vector<8x8xf32>
    %c1_223 = arith.constant 1 : index
    %c0_224 = arith.constant 0 : index
    %c0_225 = arith.constant 0 : index
    %c0_226 = arith.constant 0 : index
    %270 = vector.load %arg9[%c1_223, %c0_224, %c0_225, %c0_226] : memref<2x4x1x8xf32, #tpu.memory_space<vmem>>, vector<1x1x1x8xf32>
    %271 = vector.shape_cast %270 : vector<1x1x1x8xf32> to vector<1x8xf32>
    %272 = vector.broadcast %271 : vector<1x8xf32> to vector<8x8xf32>
    %273 = arith.addf %269, %272 : vector<8x8xf32>
    %cst_227 = arith.constant dense<0.000000e+00> : vector<8x8xf32>
    %274 = tpu.matmul %259, %266, %cst_227 {dimension_numbers = #tpu.dot_dimension_numbers<[1], [1], [0], [0], [0, 0, 1, 0], [], []>} : vector<8x8xf32>, vector<8x8xf32>, vector<8x8xf32> -> vector<8x8xf32>
    %cst_228 = arith.constant 0.353553385 : f32
    %275 = vector.broadcast %cst_228 : f32 to vector<8x8xf32>
    %276 = arith.mulf %274, %275 : vector<8x8xf32>
    %cst_229 = arith.constant dense<0xFF800000> : vector<8xf32>
    %277 = vector.multi_reduction <maximumf>, %276, %cst_229 [1] : vector<8x8xf32> to vector<8xf32>
    %278 = vector.shape_cast %277 : vector<8xf32> to vector<8x1xf32>
    %279 = vector.broadcast %278 : vector<8x1xf32> to vector<8x8xf32>
    %280 = arith.subf %276, %279 : vector<8x8xf32>
    %281 = math.exp %280 : vector<8x8xf32>
    %cst_230 = arith.constant dense<0.000000e+00> : vector<8xf32>
    %282 = vector.multi_reduction <add>, %281, %cst_230 [1] : vector<8x8xf32> to vector<8xf32>
    %283 = vector.shape_cast %282 : vector<8xf32> to vector<8x1xf32>
    %284 = tpu.reciprocal %283 : vector<8x1xf32> -> vector<8x1xf32>
    %285 = vector.broadcast %284 : vector<8x1xf32> to vector<8x8xf32>
    %286 = arith.mulf %281, %285 : vector<8x8xf32>
    %cst_231 = arith.constant dense<0.000000e+00> : vector<8x8xf32>
    %287 = tpu.matmul %286, %273, %cst_231 {dimension_numbers = #tpu.dot_dimension_numbers<[1], [0], [0], [1], [0, 0, 1, 1], [], []>} : vector<8x8xf32>, vector<8x8xf32>, vector<8x8xf32> -> vector<8x8xf32>
    %c1_232 = arith.constant 1 : index
    %c0_233 = arith.constant 0 : index
    %c0_234 = arith.constant 0 : index
    %c0_235 = arith.constant 0 : index
    %288 = vector.load %arg10[%c1_232, %c0_233, %c0_234, %c0_235] : memref<2x4x8x32xf32, #tpu.memory_space<vmem>>, vector<1x1x8x32xf32>
    %289 = vector.shape_cast %288 : vector<1x1x8x32xf32> to vector<8x32xf32>
    %cst_236 = arith.constant dense<0.000000e+00> : vector<8x32xf32>
    %290 = tpu.matmul %287, %289, %cst_236 {dimension_numbers = #tpu.dot_dimension_numbers<[1], [0], [0], [1], [0, 0, 1, 1], [], []>} : vector<8x8xf32>, vector<8x32xf32>, vector<8x32xf32> -> vector<8x32xf32>
    %291 = vector.broadcast %252 : vector<1x32xf32> to vector<8x32xf32>
    %292 = arith.addf %291, %290 : vector<8x32xf32>
    %c1_237 = arith.constant 1 : index
    %c1_238 = arith.constant 1 : index
    %c0_239 = arith.constant 0 : index
    %c0_240 = arith.constant 0 : index
    %293 = vector.load %arg4[%c1_237, %c1_238, %c0_239, %c0_240] : memref<2x4x32x8xf32, #tpu.memory_space<vmem>>, vector<1x1x32x8xf32>
    %294 = vector.shape_cast %293 : vector<1x1x32x8xf32> to vector<32x8xf32>
    %cst_241 = arith.constant dense<0.000000e+00> : vector<8x8xf32>
    %295 = tpu.matmul %250, %294, %cst_241 {dimension_numbers = #tpu.dot_dimension_numbers<[1], [0], [0], [1], [0, 0, 1, 1], [], []>} : vector<8x32xf32>, vector<32x8xf32>, vector<8x8xf32> -> vector<8x8xf32>
    %c1_242 = arith.constant 1 : index
    %c1_243 = arith.constant 1 : index
    %c0_244 = arith.constant 0 : index
    %c0_245 = arith.constant 0 : index
    %296 = vector.load %arg7[%c1_242, %c1_243, %c0_244, %c0_245] : memref<2x4x1x8xf32, #tpu.memory_space<vmem>>, vector<1x1x1x8xf32>
    %297 = vector.shape_cast %296 : vector<1x1x1x8xf32> to vector<1x8xf32>
    %298 = vector.broadcast %297 : vector<1x8xf32> to vector<8x8xf32>
    %299 = arith.addf %295, %298 : vector<8x8xf32>
    %c1_246 = arith.constant 1 : index
    %c1_247 = arith.constant 1 : index
    %c0_248 = arith.constant 0 : index
    %c0_249 = arith.constant 0 : index
    %300 = vector.load %arg5[%c1_246, %c1_247, %c0_248, %c0_249] : memref<2x4x32x8xf32, #tpu.memory_space<vmem>>, vector<1x1x32x8xf32>
    %301 = vector.shape_cast %300 : vector<1x1x32x8xf32> to vector<32x8xf32>
    %cst_250 = arith.constant dense<0.000000e+00> : vector<8x8xf32>
    %302 = tpu.matmul %250, %301, %cst_250 {dimension_numbers = #tpu.dot_dimension_numbers<[1], [0], [0], [1], [0, 0, 1, 1], [], []>} : vector<8x32xf32>, vector<32x8xf32>, vector<8x8xf32> -> vector<8x8xf32>
    %c1_251 = arith.constant 1 : index
    %c1_252 = arith.constant 1 : index
    %c0_253 = arith.constant 0 : index
    %c0_254 = arith.constant 0 : index
    %303 = vector.load %arg8[%c1_251, %c1_252, %c0_253, %c0_254] : memref<2x4x1x8xf32, #tpu.memory_space<vmem>>, vector<1x1x1x8xf32>
    %304 = vector.shape_cast %303 : vector<1x1x1x8xf32> to vector<1x8xf32>
    %305 = vector.broadcast %304 : vector<1x8xf32> to vector<8x8xf32>
    %306 = arith.addf %302, %305 : vector<8x8xf32>
    %c1_255 = arith.constant 1 : index
    %c1_256 = arith.constant 1 : index
    %c0_257 = arith.constant 0 : index
    %c0_258 = arith.constant 0 : index
    %307 = vector.load %arg6[%c1_255, %c1_256, %c0_257, %c0_258] : memref<2x4x32x8xf32, #tpu.memory_space<vmem>>, vector<1x1x32x8xf32>
    %308 = vector.shape_cast %307 : vector<1x1x32x8xf32> to vector<32x8xf32>
    %cst_259 = arith.constant dense<0.000000e+00> : vector<8x8xf32>
    %309 = tpu.matmul %250, %308, %cst_259 {dimension_numbers = #tpu.dot_dimension_numbers<[1], [0], [0], [1], [0, 0, 1, 1], [], []>} : vector<8x32xf32>, vector<32x8xf32>, vector<8x8xf32> -> vector<8x8xf32>
    %c1_260 = arith.constant 1 : index
    %c1_261 = arith.constant 1 : index
    %c0_262 = arith.constant 0 : index
    %c0_263 = arith.constant 0 : index
    %310 = vector.load %arg9[%c1_260, %c1_261, %c0_262, %c0_263] : memref<2x4x1x8xf32, #tpu.memory_space<vmem>>, vector<1x1x1x8xf32>
    %311 = vector.shape_cast %310 : vector<1x1x1x8xf32> to vector<1x8xf32>
    %312 = vector.broadcast %311 : vector<1x8xf32> to vector<8x8xf32>
    %313 = arith.addf %309, %312 : vector<8x8xf32>
    %cst_264 = arith.constant dense<0.000000e+00> : vector<8x8xf32>
    %314 = tpu.matmul %299, %306, %cst_264 {dimension_numbers = #tpu.dot_dimension_numbers<[1], [1], [0], [0], [0, 0, 1, 0], [], []>} : vector<8x8xf32>, vector<8x8xf32>, vector<8x8xf32> -> vector<8x8xf32>
    %cst_265 = arith.constant 0.353553385 : f32
    %315 = vector.broadcast %cst_265 : f32 to vector<8x8xf32>
    %316 = arith.mulf %314, %315 : vector<8x8xf32>
    %cst_266 = arith.constant dense<0xFF800000> : vector<8xf32>
    %317 = vector.multi_reduction <maximumf>, %316, %cst_266 [1] : vector<8x8xf32> to vector<8xf32>
    %318 = vector.shape_cast %317 : vector<8xf32> to vector<8x1xf32>
    %319 = vector.broadcast %318 : vector<8x1xf32> to vector<8x8xf32>
    %320 = arith.subf %316, %319 : vector<8x8xf32>
    %321 = math.exp %320 : vector<8x8xf32>
    %cst_267 = arith.constant dense<0.000000e+00> : vector<8xf32>
    %322 = vector.multi_reduction <add>, %321, %cst_267 [1] : vector<8x8xf32> to vector<8xf32>
    %323 = vector.shape_cast %322 : vector<8xf32> to vector<8x1xf32>
    %324 = tpu.reciprocal %323 : vector<8x1xf32> -> vector<8x1xf32>
    %325 = vector.broadcast %324 : vector<8x1xf32> to vector<8x8xf32>
    %326 = arith.mulf %321, %325 : vector<8x8xf32>
    %cst_268 = arith.constant dense<0.000000e+00> : vector<8x8xf32>
    %327 = tpu.matmul %326, %313, %cst_268 {dimension_numbers = #tpu.dot_dimension_numbers<[1], [0], [0], [1], [0, 0, 1, 1], [], []>} : vector<8x8xf32>, vector<8x8xf32>, vector<8x8xf32> -> vector<8x8xf32>
    %c1_269 = arith.constant 1 : index
    %c1_270 = arith.constant 1 : index
    %c0_271 = arith.constant 0 : index
    %c0_272 = arith.constant 0 : index
    %328 = vector.load %arg10[%c1_269, %c1_270, %c0_271, %c0_272] : memref<2x4x8x32xf32, #tpu.memory_space<vmem>>, vector<1x1x8x32xf32>
    %329 = vector.shape_cast %328 : vector<1x1x8x32xf32> to vector<8x32xf32>
    %cst_273 = arith.constant dense<0.000000e+00> : vector<8x32xf32>
    %330 = tpu.matmul %327, %329, %cst_273 {dimension_numbers = #tpu.dot_dimension_numbers<[1], [0], [0], [1], [0, 0, 1, 1], [], []>} : vector<8x8xf32>, vector<8x32xf32>, vector<8x32xf32> -> vector<8x32xf32>
    %331 = arith.addf %292, %330 : vector<8x32xf32>
    %c1_274 = arith.constant 1 : index
    %c2_275 = arith.constant 2 : index
    %c0_276 = arith.constant 0 : index
    %c0_277 = arith.constant 0 : index
    %332 = vector.load %arg4[%c1_274, %c2_275, %c0_276, %c0_277] : memref<2x4x32x8xf32, #tpu.memory_space<vmem>>, vector<1x1x32x8xf32>
    %333 = vector.shape_cast %332 : vector<1x1x32x8xf32> to vector<32x8xf32>
    %cst_278 = arith.constant dense<0.000000e+00> : vector<8x8xf32>
    %334 = tpu.matmul %250, %333, %cst_278 {dimension_numbers = #tpu.dot_dimension_numbers<[1], [0], [0], [1], [0, 0, 1, 1], [], []>} : vector<8x32xf32>, vector<32x8xf32>, vector<8x8xf32> -> vector<8x8xf32>
    %c1_279 = arith.constant 1 : index
    %c2_280 = arith.constant 2 : index
    %c0_281 = arith.constant 0 : index
    %c0_282 = arith.constant 0 : index
    %335 = vector.load %arg7[%c1_279, %c2_280, %c0_281, %c0_282] : memref<2x4x1x8xf32, #tpu.memory_space<vmem>>, vector<1x1x1x8xf32>
    %336 = vector.shape_cast %335 : vector<1x1x1x8xf32> to vector<1x8xf32>
    %337 = vector.broadcast %336 : vector<1x8xf32> to vector<8x8xf32>
    %338 = arith.addf %334, %337 : vector<8x8xf32>
    %c1_283 = arith.constant 1 : index
    %c2_284 = arith.constant 2 : index
    %c0_285 = arith.constant 0 : index
    %c0_286 = arith.constant 0 : index
    %339 = vector.load %arg5[%c1_283, %c2_284, %c0_285, %c0_286] : memref<2x4x32x8xf32, #tpu.memory_space<vmem>>, vector<1x1x32x8xf32>
    %340 = vector.shape_cast %339 : vector<1x1x32x8xf32> to vector<32x8xf32>
    %cst_287 = arith.constant dense<0.000000e+00> : vector<8x8xf32>
    %341 = tpu.matmul %250, %340, %cst_287 {dimension_numbers = #tpu.dot_dimension_numbers<[1], [0], [0], [1], [0, 0, 1, 1], [], []>} : vector<8x32xf32>, vector<32x8xf32>, vector<8x8xf32> -> vector<8x8xf32>
    %c1_288 = arith.constant 1 : index
    %c2_289 = arith.constant 2 : index
    %c0_290 = arith.constant 0 : index
    %c0_291 = arith.constant 0 : index
    %342 = vector.load %arg8[%c1_288, %c2_289, %c0_290, %c0_291] : memref<2x4x1x8xf32, #tpu.memory_space<vmem>>, vector<1x1x1x8xf32>
    %343 = vector.shape_cast %342 : vector<1x1x1x8xf32> to vector<1x8xf32>
    %344 = vector.broadcast %343 : vector<1x8xf32> to vector<8x8xf32>
    %345 = arith.addf %341, %344 : vector<8x8xf32>
    %c1_292 = arith.constant 1 : index
    %c2_293 = arith.constant 2 : index
    %c0_294 = arith.constant 0 : index
    %c0_295 = arith.constant 0 : index
    %346 = vector.load %arg6[%c1_292, %c2_293, %c0_294, %c0_295] : memref<2x4x32x8xf32, #tpu.memory_space<vmem>>, vector<1x1x32x8xf32>
    %347 = vector.shape_cast %346 : vector<1x1x32x8xf32> to vector<32x8xf32>
    %cst_296 = arith.constant dense<0.000000e+00> : vector<8x8xf32>
    %348 = tpu.matmul %250, %347, %cst_296 {dimension_numbers = #tpu.dot_dimension_numbers<[1], [0], [0], [1], [0, 0, 1, 1], [], []>} : vector<8x32xf32>, vector<32x8xf32>, vector<8x8xf32> -> vector<8x8xf32>
    %c1_297 = arith.constant 1 : index
    %c2_298 = arith.constant 2 : index
    %c0_299 = arith.constant 0 : index
    %c0_300 = arith.constant 0 : index
    %349 = vector.load %arg9[%c1_297, %c2_298, %c0_299, %c0_300] : memref<2x4x1x8xf32, #tpu.memory_space<vmem>>, vector<1x1x1x8xf32>
    %350 = vector.shape_cast %349 : vector<1x1x1x8xf32> to vector<1x8xf32>
    %351 = vector.broadcast %350 : vector<1x8xf32> to vector<8x8xf32>
    %352 = arith.addf %348, %351 : vector<8x8xf32>
    %cst_301 = arith.constant dense<0.000000e+00> : vector<8x8xf32>
    %353 = tpu.matmul %338, %345, %cst_301 {dimension_numbers = #tpu.dot_dimension_numbers<[1], [1], [0], [0], [0, 0, 1, 0], [], []>} : vector<8x8xf32>, vector<8x8xf32>, vector<8x8xf32> -> vector<8x8xf32>
    %cst_302 = arith.constant 0.353553385 : f32
    %354 = vector.broadcast %cst_302 : f32 to vector<8x8xf32>
    %355 = arith.mulf %353, %354 : vector<8x8xf32>
    %cst_303 = arith.constant dense<0xFF800000> : vector<8xf32>
    %356 = vector.multi_reduction <maximumf>, %355, %cst_303 [1] : vector<8x8xf32> to vector<8xf32>
    %357 = vector.shape_cast %356 : vector<8xf32> to vector<8x1xf32>
    %358 = vector.broadcast %357 : vector<8x1xf32> to vector<8x8xf32>
    %359 = arith.subf %355, %358 : vector<8x8xf32>
    %360 = math.exp %359 : vector<8x8xf32>
    %cst_304 = arith.constant dense<0.000000e+00> : vector<8xf32>
    %361 = vector.multi_reduction <add>, %360, %cst_304 [1] : vector<8x8xf32> to vector<8xf32>
    %362 = vector.shape_cast %361 : vector<8xf32> to vector<8x1xf32>
    %363 = tpu.reciprocal %362 : vector<8x1xf32> -> vector<8x1xf32>
    %364 = vector.broadcast %363 : vector<8x1xf32> to vector<8x8xf32>
    %365 = arith.mulf %360, %364 : vector<8x8xf32>
    %cst_305 = arith.constant dense<0.000000e+00> : vector<8x8xf32>
    %366 = tpu.matmul %365, %352, %cst_305 {dimension_numbers = #tpu.dot_dimension_numbers<[1], [0], [0], [1], [0, 0, 1, 1], [], []>} : vector<8x8xf32>, vector<8x8xf32>, vector<8x8xf32> -> vector<8x8xf32>
    %c1_306 = arith.constant 1 : index
    %c2_307 = arith.constant 2 : index
    %c0_308 = arith.constant 0 : index
    %c0_309 = arith.constant 0 : index
    %367 = vector.load %arg10[%c1_306, %c2_307, %c0_308, %c0_309] : memref<2x4x8x32xf32, #tpu.memory_space<vmem>>, vector<1x1x8x32xf32>
    %368 = vector.shape_cast %367 : vector<1x1x8x32xf32> to vector<8x32xf32>
    %cst_310 = arith.constant dense<0.000000e+00> : vector<8x32xf32>
    %369 = tpu.matmul %366, %368, %cst_310 {dimension_numbers = #tpu.dot_dimension_numbers<[1], [0], [0], [1], [0, 0, 1, 1], [], []>} : vector<8x8xf32>, vector<8x32xf32>, vector<8x32xf32> -> vector<8x32xf32>
    %370 = arith.addf %331, %369 : vector<8x32xf32>
    %c1_311 = arith.constant 1 : index
    %c3_312 = arith.constant 3 : index
    %c0_313 = arith.constant 0 : index
    %c0_314 = arith.constant 0 : index
    %371 = vector.load %arg4[%c1_311, %c3_312, %c0_313, %c0_314] : memref<2x4x32x8xf32, #tpu.memory_space<vmem>>, vector<1x1x32x8xf32>
    %372 = vector.shape_cast %371 : vector<1x1x32x8xf32> to vector<32x8xf32>
    %cst_315 = arith.constant dense<0.000000e+00> : vector<8x8xf32>
    %373 = tpu.matmul %250, %372, %cst_315 {dimension_numbers = #tpu.dot_dimension_numbers<[1], [0], [0], [1], [0, 0, 1, 1], [], []>} : vector<8x32xf32>, vector<32x8xf32>, vector<8x8xf32> -> vector<8x8xf32>
    %c1_316 = arith.constant 1 : index
    %c3_317 = arith.constant 3 : index
    %c0_318 = arith.constant 0 : index
    %c0_319 = arith.constant 0 : index
    %374 = vector.load %arg7[%c1_316, %c3_317, %c0_318, %c0_319] : memref<2x4x1x8xf32, #tpu.memory_space<vmem>>, vector<1x1x1x8xf32>
    %375 = vector.shape_cast %374 : vector<1x1x1x8xf32> to vector<1x8xf32>
    %376 = vector.broadcast %375 : vector<1x8xf32> to vector<8x8xf32>
    %377 = arith.addf %373, %376 : vector<8x8xf32>
    %c1_320 = arith.constant 1 : index
    %c3_321 = arith.constant 3 : index
    %c0_322 = arith.constant 0 : index
    %c0_323 = arith.constant 0 : index
    %378 = vector.load %arg5[%c1_320, %c3_321, %c0_322, %c0_323] : memref<2x4x32x8xf32, #tpu.memory_space<vmem>>, vector<1x1x32x8xf32>
    %379 = vector.shape_cast %378 : vector<1x1x32x8xf32> to vector<32x8xf32>
    %cst_324 = arith.constant dense<0.000000e+00> : vector<8x8xf32>
    %380 = tpu.matmul %250, %379, %cst_324 {dimension_numbers = #tpu.dot_dimension_numbers<[1], [0], [0], [1], [0, 0, 1, 1], [], []>} : vector<8x32xf32>, vector<32x8xf32>, vector<8x8xf32> -> vector<8x8xf32>
    %c1_325 = arith.constant 1 : index
    %c3_326 = arith.constant 3 : index
    %c0_327 = arith.constant 0 : index
    %c0_328 = arith.constant 0 : index
    %381 = vector.load %arg8[%c1_325, %c3_326, %c0_327, %c0_328] : memref<2x4x1x8xf32, #tpu.memory_space<vmem>>, vector<1x1x1x8xf32>
    %382 = vector.shape_cast %381 : vector<1x1x1x8xf32> to vector<1x8xf32>
    %383 = vector.broadcast %382 : vector<1x8xf32> to vector<8x8xf32>
    %384 = arith.addf %380, %383 : vector<8x8xf32>
    %c1_329 = arith.constant 1 : index
    %c3_330 = arith.constant 3 : index
    %c0_331 = arith.constant 0 : index
    %c0_332 = arith.constant 0 : index
    %385 = vector.load %arg6[%c1_329, %c3_330, %c0_331, %c0_332] : memref<2x4x32x8xf32, #tpu.memory_space<vmem>>, vector<1x1x32x8xf32>
    %386 = vector.shape_cast %385 : vector<1x1x32x8xf32> to vector<32x8xf32>
    %cst_333 = arith.constant dense<0.000000e+00> : vector<8x8xf32>
    %387 = tpu.matmul %250, %386, %cst_333 {dimension_numbers = #tpu.dot_dimension_numbers<[1], [0], [0], [1], [0, 0, 1, 1], [], []>} : vector<8x32xf32>, vector<32x8xf32>, vector<8x8xf32> -> vector<8x8xf32>
    %c1_334 = arith.constant 1 : index
    %c3_335 = arith.constant 3 : index
    %c0_336 = arith.constant 0 : index
    %c0_337 = arith.constant 0 : index
    %388 = vector.load %arg9[%c1_334, %c3_335, %c0_336, %c0_337] : memref<2x4x1x8xf32, #tpu.memory_space<vmem>>, vector<1x1x1x8xf32>
    %389 = vector.shape_cast %388 : vector<1x1x1x8xf32> to vector<1x8xf32>
    %390 = vector.broadcast %389 : vector<1x8xf32> to vector<8x8xf32>
    %391 = arith.addf %387, %390 : vector<8x8xf32>
    %cst_338 = arith.constant dense<0.000000e+00> : vector<8x8xf32>
    %392 = tpu.matmul %377, %384, %cst_338 {dimension_numbers = #tpu.dot_dimension_numbers<[1], [1], [0], [0], [0, 0, 1, 0], [], []>} : vector<8x8xf32>, vector<8x8xf32>, vector<8x8xf32> -> vector<8x8xf32>
    %cst_339 = arith.constant 0.353553385 : f32
    %393 = vector.broadcast %cst_339 : f32 to vector<8x8xf32>
    %394 = arith.mulf %392, %393 : vector<8x8xf32>
    %cst_340 = arith.constant dense<0xFF800000> : vector<8xf32>
    %395 = vector.multi_reduction <maximumf>, %394, %cst_340 [1] : vector<8x8xf32> to vector<8xf32>
    %396 = vector.shape_cast %395 : vector<8xf32> to vector<8x1xf32>
    %397 = vector.broadcast %396 : vector<8x1xf32> to vector<8x8xf32>
    %398 = arith.subf %394, %397 : vector<8x8xf32>
    %399 = math.exp %398 : vector<8x8xf32>
    %cst_341 = arith.constant dense<0.000000e+00> : vector<8xf32>
    %400 = vector.multi_reduction <add>, %399, %cst_341 [1] : vector<8x8xf32> to vector<8xf32>
    %401 = vector.shape_cast %400 : vector<8xf32> to vector<8x1xf32>
    %402 = tpu.reciprocal %401 : vector<8x1xf32> -> vector<8x1xf32>
    %403 = vector.broadcast %402 : vector<8x1xf32> to vector<8x8xf32>
    %404 = arith.mulf %399, %403 : vector<8x8xf32>
    %cst_342 = arith.constant dense<0.000000e+00> : vector<8x8xf32>
    %405 = tpu.matmul %404, %391, %cst_342 {dimension_numbers = #tpu.dot_dimension_numbers<[1], [0], [0], [1], [0, 0, 1, 1], [], []>} : vector<8x8xf32>, vector<8x8xf32>, vector<8x8xf32> -> vector<8x8xf32>
    %c1_343 = arith.constant 1 : index
    %c3_344 = arith.constant 3 : index
    %c0_345 = arith.constant 0 : index
    %c0_346 = arith.constant 0 : index
    %406 = vector.load %arg10[%c1_343, %c3_344, %c0_345, %c0_346] : memref<2x4x8x32xf32, #tpu.memory_space<vmem>>, vector<1x1x8x32xf32>
    %407 = vector.shape_cast %406 : vector<1x1x8x32xf32> to vector<8x32xf32>
    %cst_347 = arith.constant dense<0.000000e+00> : vector<8x32xf32>
    %408 = tpu.matmul %405, %407, %cst_347 {dimension_numbers = #tpu.dot_dimension_numbers<[1], [0], [0], [1], [0, 0, 1, 1], [], []>} : vector<8x8xf32>, vector<8x32xf32>, vector<8x32xf32> -> vector<8x32xf32>
    %409 = arith.addf %370, %408 : vector<8x32xf32>
    %410 = arith.addf %226, %409 : vector<8x32xf32>
    %c1_348 = arith.constant 1 : index
    %c0_349 = arith.constant 0 : index
    %c0_350 = arith.constant 0 : index
    %411 = vector.load %arg12[%c1_348, %c0_349, %c0_350] : memref<2x1x32xf32, #tpu.memory_space<vmem>>, vector<1x1x32xf32>
    %412 = vector.shape_cast %411 : vector<1x1x32xf32> to vector<1x32xf32>
    %c1_351 = arith.constant 1 : index
    %c0_352 = arith.constant 0 : index
    %c0_353 = arith.constant 0 : index
    %413 = vector.load %arg13[%c1_351, %c0_352, %c0_353] : memref<2x1x32xf32, #tpu.memory_space<vmem>>, vector<1x1x32xf32>
    %414 = vector.shape_cast %413 : vector<1x1x32xf32> to vector<1x32xf32>
    %cst_354 = arith.constant dense<0.000000e+00> : vector<8xf32>
    %415 = vector.multi_reduction <add>, %410, %cst_354 [1] : vector<8x32xf32> to vector<8xf32>
    %416 = vector.shape_cast %415 : vector<8xf32> to vector<8x1xf32>
    %cst_355 = arith.constant 3.200000e+01 : f32
    %417 = vector.broadcast %cst_355 : f32 to vector<8x1xf32>
    %418 = arith.divf %416, %417 : vector<8x1xf32>
    %419 = vector.broadcast %418 : vector<8x1xf32> to vector<8x32xf32>
    %420 = arith.subf %410, %419 : vector<8x32xf32>
    %421 = arith.mulf %420, %420 : vector<8x32xf32>
    %cst_356 = arith.constant dense<0.000000e+00> : vector<8xf32>
    %422 = vector.multi_reduction <add>, %421, %cst_356 [1] : vector<8x32xf32> to vector<8xf32>
    %423 = vector.shape_cast %422 : vector<8xf32> to vector<8x1xf32>
    %cst_357 = arith.constant 3.200000e+01 : f32
    %424 = vector.broadcast %cst_357 : f32 to vector<8x1xf32>
    %425 = arith.divf %423, %424 : vector<8x1xf32>
    %cst_358 = arith.constant 9.99999974E-6 : f32
    %426 = vector.broadcast %cst_358 : f32 to vector<8x1xf32>
    %427 = arith.addf %425, %426 : vector<8x1xf32>
    %428 = math.rsqrt %427 : vector<8x1xf32>
    %429 = vector.broadcast %428 : vector<8x1xf32> to vector<8x32xf32>
    %430 = arith.mulf %420, %429 : vector<8x32xf32>
    %431 = vector.broadcast %412 : vector<1x32xf32> to vector<8x32xf32>
    %432 = arith.mulf %430, %431 : vector<8x32xf32>
    %433 = vector.broadcast %414 : vector<1x32xf32> to vector<8x32xf32>
    %434 = arith.addf %432, %433 : vector<8x32xf32>
    %c1_359 = arith.constant 1 : index
    %c0_360 = arith.constant 0 : index
    %c0_361 = arith.constant 0 : index
    %435 = vector.load %arg14[%c1_359, %c0_360, %c0_361] : memref<2x32x64xf32, #tpu.memory_space<vmem>>, vector<1x32x64xf32>
    %436 = vector.shape_cast %435 : vector<1x32x64xf32> to vector<32x64xf32>
    %cst_362 = arith.constant dense<0.000000e+00> : vector<8x64xf32>
    %437 = tpu.matmul %434, %436, %cst_362 {dimension_numbers = #tpu.dot_dimension_numbers<[1], [0], [0], [1], [0, 0, 1, 1], [], []>} : vector<8x32xf32>, vector<32x64xf32>, vector<8x64xf32> -> vector<8x64xf32>
    %c1_363 = arith.constant 1 : index
    %c0_364 = arith.constant 0 : index
    %c0_365 = arith.constant 0 : index
    %438 = vector.load %arg15[%c1_363, %c0_364, %c0_365] : memref<2x1x64xf32, #tpu.memory_space<vmem>>, vector<1x1x64xf32>
    %439 = vector.shape_cast %438 : vector<1x1x64xf32> to vector<1x64xf32>
    %440 = vector.broadcast %439 : vector<1x64xf32> to vector<8x64xf32>
    %441 = arith.addf %437, %440 : vector<8x64xf32>
    %cst_366 = arith.constant 0.000000e+00 : f32
    %442 = vector.broadcast %cst_366 : f32 to vector<8x64xf32>
    %443 = arith.maximumf %441, %442 : vector<8x64xf32>
    %c1_367 = arith.constant 1 : index
    %c0_368 = arith.constant 0 : index
    %c0_369 = arith.constant 0 : index
    %444 = vector.load %arg16[%c1_367, %c0_368, %c0_369] : memref<2x64x32xf32, #tpu.memory_space<vmem>>, vector<1x64x32xf32>
    %445 = vector.shape_cast %444 : vector<1x64x32xf32> to vector<64x32xf32>
    %cst_370 = arith.constant dense<0.000000e+00> : vector<8x32xf32>
    %446 = tpu.matmul %443, %445, %cst_370 {dimension_numbers = #tpu.dot_dimension_numbers<[1], [0], [0], [1], [0, 0, 1, 1], [], []>} : vector<8x64xf32>, vector<64x32xf32>, vector<8x32xf32> -> vector<8x32xf32>
    %c1_371 = arith.constant 1 : index
    %c0_372 = arith.constant 0 : index
    %c0_373 = arith.constant 0 : index
    %447 = vector.load %arg17[%c1_371, %c0_372, %c0_373] : memref<2x1x32xf32, #tpu.memory_space<vmem>>, vector<1x1x32xf32>
    %448 = vector.shape_cast %447 : vector<1x1x32xf32> to vector<1x32xf32>
    %449 = vector.broadcast %448 : vector<1x32xf32> to vector<8x32xf32>
    %450 = arith.addf %446, %449 : vector<8x32xf32>
    %451 = arith.addf %410, %450 : vector<8x32xf32>
    %c0_374 = arith.constant 0 : index
    %c0_375 = arith.constant 0 : index
    %452 = vector.load %arg18[%c0_374, %c0_375] : memref<1x32xf32, #tpu.memory_space<vmem>>, vector<1x32xf32>
    %c0_376 = arith.constant 0 : index
    %c0_377 = arith.constant 0 : index
    %453 = vector.load %arg19[%c0_376, %c0_377] : memref<1x32xf32, #tpu.memory_space<vmem>>, vector<1x32xf32>
    %cst_378 = arith.constant dense<0.000000e+00> : vector<8xf32>
    %454 = vector.multi_reduction <add>, %451, %cst_378 [1] : vector<8x32xf32> to vector<8xf32>
    %455 = vector.shape_cast %454 : vector<8xf32> to vector<8x1xf32>
    %cst_379 = arith.constant 3.200000e+01 : f32
    %456 = vector.broadcast %cst_379 : f32 to vector<8x1xf32>
    %457 = arith.divf %455, %456 : vector<8x1xf32>
    %458 = vector.broadcast %457 : vector<8x1xf32> to vector<8x32xf32>
    %459 = arith.subf %451, %458 : vector<8x32xf32>
    %460 = arith.mulf %459, %459 : vector<8x32xf32>
    %cst_380 = arith.constant dense<0.000000e+00> : vector<8xf32>
    %461 = vector.multi_reduction <add>, %460, %cst_380 [1] : vector<8x32xf32> to vector<8xf32>
    %462 = vector.shape_cast %461 : vector<8xf32> to vector<8x1xf32>
    %cst_381 = arith.constant 3.200000e+01 : f32
    %463 = vector.broadcast %cst_381 : f32 to vector<8x1xf32>
    %464 = arith.divf %462, %463 : vector<8x1xf32>
    %cst_382 = arith.constant 9.99999974E-6 : f32
    %465 = vector.broadcast %cst_382 : f32 to vector<8x1xf32>
    %466 = arith.addf %464, %465 : vector<8x1xf32>
    %467 = math.rsqrt %466 : vector<8x1xf32>
    %468 = vector.broadcast %467 : vector<8x1xf32> to vector<8x32xf32>
    %469 = arith.mulf %459, %468 : vector<8x32xf32>
    %470 = vector.broadcast %452 : vector<1x32xf32> to vector<8x32xf32>
    %471 = arith.mulf %469, %470 : vector<8x32xf32>
    %472 = vector.broadcast %453 : vector<1x32xf32> to vector<8x32xf32>
    %473 = arith.addf %471, %472 : vector<8x32xf32>
    %c0_383 = arith.constant 0 : index
    %c0_384 = arith.constant 0 : index
    %c0_385 = arith.constant 0 : index
    %474 = vector.load %arg20[%c0_383, %c0_384, %c0_385] : memref<1x8x32xf32, #tpu.memory_space<vmem>>, vector<1x8x32xf32>
    %475 = vector.shape_cast %474 : vector<1x8x32xf32> to vector<8x32xf32>
    %476 = vector.shape_cast %473 : vector<8x32xf32> to vector<1x8x32xf32>
    tpu.vector_store %arg20[%c0_383, %c0_384, %c0_385], %476 {strides = array<i32>} : memref<1x8x32xf32, #tpu.memory_space<vmem>>, vector<1x8x32xf32>,
    return
  }
  func.func @transform_0(%arg0: i32) -> (i32, i32, i32) {
    %c0_i32 = arith.constant 0 : i32
    %c0_i32_0 = arith.constant 0 : i32
    %c0_i32_1 = arith.constant 0 : i32
    return %arg0, %c0_i32, %c0_i32_0 : i32, i32, i32
  }
  func.func @transform_1(%arg0: i32) -> (i32, i32, i32) {
    %c0_i32 = arith.constant 0 : i32
    %c0_i32_0 = arith.constant 0 : i32
    %c0_i32_1 = arith.constant 0 : i32
    %c0_i32_2 = arith.constant 0 : i32
    return %c0_i32, %c0_i32_0, %c0_i32_1 : i32, i32, i32
  }
  func.func @transform_2(%arg0: i32) -> (i32, i32, i32) {
    %c0_i32 = arith.constant 0 : i32
    %c0_i32_0 = arith.constant 0 : i32
    %c0_i32_1 = arith.constant 0 : i32
    %c0_i32_2 = arith.constant 0 : i32
    return %c0_i32, %c0_i32_0, %c0_i32_1 : i32, i32, i32
  }
  func.func @transform_3(%arg0: i32) -> (i32, i32, i32, i32) {
    %c0_i32 = arith.constant 0 : i32
    %c0_i32_0 = arith.constant 0 : i32
    %c0_i32_1 = arith.constant 0 : i32
    %c0_i32_2 = arith.constant 0 : i32
    %c0_i32_3 = arith.constant 0 : i32
    return %c0_i32, %c0_i32_0, %c0_i32_1, %c0_i32_2 : i32, i32, i32, i32
  }
  func.func @transform_4(%arg0: i32) -> (i32, i32, i32, i32) {
    %c0_i32 = arith.constant 0 : i32
    %c0_i32_0 = arith.constant 0 : i32
    %c0_i32_1 = arith.constant 0 : i32
    %c0_i32_2 = arith.constant 0 : i32
    %c0_i32_3 = arith.constant 0 : i32
    return %c0_i32, %c0_i32_0, %c0_i32_1, %c0_i32_2 : i32, i32, i32, i32
  }
  func.func @transform_5(%arg0: i32) -> (i32, i32, i32, i32) {
    %c0_i32 = arith.constant 0 : i32
    %c0_i32_0 = arith.constant 0 : i32
    %c0_i32_1 = arith.constant 0 : i32
    %c0_i32_2 = arith.constant 0 : i32
    %c0_i32_3 = arith.constant 0 : i32
    return %c0_i32, %c0_i32_0, %c0_i32_1, %c0_i32_2 : i32, i32, i32, i32
  }
  func.func @transform_6(%arg0: i32) -> (i32, i32, i32, i32) {
    %c0_i32 = arith.constant 0 : i32
    %c0_i32_0 = arith.constant 0 : i32
    %c0_i32_1 = arith.constant 0 : i32
    %c0_i32_2 = arith.constant 0 : i32
    %c0_i32_3 = arith.constant 0 : i32
    return %c0_i32, %c0_i32_0, %c0_i32_1, %c0_i32_2 : i32, i32, i32, i32
  }
  func.func @transform_7(%arg0: i32) -> (i32, i32, i32, i32) {
    %c0_i32 = arith.constant 0 : i32
    %c0_i32_0 = arith.constant 0 : i32
    %c0_i32_1 = arith.constant 0 : i32
    %c0_i32_2 = arith.constant 0 : i32
    %c0_i32_3 = arith.constant 0 : i32
    return %c0_i32, %c0_i32_0, %c0_i32_1, %c0_i32_2 : i32, i32, i32, i32
  }
  func.func @transform_8(%arg0: i32) -> (i32, i32, i32, i32) {
    %c0_i32 = arith.constant 0 : i32
    %c0_i32_0 = arith.constant 0 : i32
    %c0_i32_1 = arith.constant 0 : i32
    %c0_i32_2 = arith.constant 0 : i32
    %c0_i32_3 = arith.constant 0 : i32
    return %c0_i32, %c0_i32_0, %c0_i32_1, %c0_i32_2 : i32, i32, i32, i32
  }
  func.func @transform_9(%arg0: i32) -> (i32, i32, i32, i32) {
    %c0_i32 = arith.constant 0 : i32
    %c0_i32_0 = arith.constant 0 : i32
    %c0_i32_1 = arith.constant 0 : i32
    %c0_i32_2 = arith.constant 0 : i32
    %c0_i32_3 = arith.constant 0 : i32
    return %c0_i32, %c0_i32_0, %c0_i32_1, %c0_i32_2 : i32, i32, i32, i32
  }
  func.func @transform_10(%arg0: i32) -> (i32, i32, i32) {
    %c0_i32 = arith.constant 0 : i32
    %c0_i32_0 = arith.constant 0 : i32
    %c0_i32_1 = arith.constant 0 : i32
    %c0_i32_2 = arith.constant 0 : i32
    return %c0_i32, %c0_i32_0, %c0_i32_1 : i32, i32, i32
  }
  func.func @transform_11(%arg0: i32) -> (i32, i32, i32) {
    %c0_i32 = arith.constant 0 : i32
    %c0_i32_0 = arith.constant 0 : i32
    %c0_i32_1 = arith.constant 0 : i32
    %c0_i32_2 = arith.constant 0 : i32
    return %c0_i32, %c0_i32_0, %c0_i32_1 : i32, i32, i32
  }
  func.func @transform_12(%arg0: i32) -> (i32, i32, i32) {
    %c0_i32 = arith.constant 0 : i32
    %c0_i32_0 = arith.constant 0 : i32
    %c0_i32_1 = arith.constant 0 : i32
    %c0_i32_2 = arith.constant 0 : i32
    return %c0_i32, %c0_i32_0, %c0_i32_1 : i32, i32, i32
  }
  func.func @transform_13(%arg0: i32) -> (i32, i32, i32) {
    %c0_i32 = arith.constant 0 : i32
    %c0_i32_0 = arith.constant 0 : i32
    %c0_i32_1 = arith.constant 0 : i32
    %c0_i32_2 = arith.constant 0 : i32
    return %c0_i32, %c0_i32_0, %c0_i32_1 : i32, i32, i32
  }
  func.func @transform_14(%arg0: i32) -> (i32, i32, i32) {
    %c0_i32 = arith.constant 0 : i32
    %c0_i32_0 = arith.constant 0 : i32
    %c0_i32_1 = arith.constant 0 : i32
    %c0_i32_2 = arith.constant 0 : i32
    return %c0_i32, %c0_i32_0, %c0_i32_1 : i32, i32, i32
  }
  func.func @transform_15(%arg0: i32) -> (i32, i32, i32) {
    %c0_i32 = arith.constant 0 : i32
    %c0_i32_0 = arith.constant 0 : i32
    %c0_i32_1 = arith.constant 0 : i32
    %c0_i32_2 = arith.constant 0 : i32
    return %c0_i32, %c0_i32_0, %c0_i32_1 : i32, i32, i32
  }
  func.func @transform_16(%arg0: i32) -> (i32, i32, i32) {
    %c0_i32 = arith.constant 0 : i32
    %c0_i32_0 = arith.constant 0 : i32
    %c0_i32_1 = arith.constant 0 : i32
    %c0_i32_2 = arith.constant 0 : i32
    return %c0_i32, %c0_i32_0, %c0_i32_1 : i32, i32, i32
  }
  func.func @transform_17(%arg0: i32) -> (i32, i32) {
    %c0_i32 = arith.constant 0 : i32
    %c0_i32_0 = arith.constant 0 : i32
    %c0_i32_1 = arith.constant 0 : i32
    return %c0_i32, %c0_i32_0 : i32, i32
  }
  func.func @transform_18(%arg0: i32) -> (i32, i32) {
    %c0_i32 = arith.constant 0 : i32
    %c0_i32_0 = arith.constant 0 : i32
    %c0_i32_1 = arith.constant 0 : i32
    return %c0_i32, %c0_i32_0 : i32, i32
  }
  func.func @transform_19(%arg0: i32) -> (i32, i32, i32) {
    %c0_i32 = arith.constant 0 : i32
    %c0_i32_0 = arith.constant 0 : i32
    %c0_i32_1 = arith.constant 0 : i32
    return %arg0, %c0_i32, %c0_i32_0 : i32, i32, i32
  }
}

</mosaic_0001>

<bundles_post_ra>
// kernel: tpu_custom_call.1
= control target key start
LH: loop header
LB: loop body
LE: loop exit
PB: predicated region body
PF: predicated region fallthrough
CT: control target
= control target key end

     0   :  { %s7197_s0 = inlined_call_operand.vmem [shape: f32[2,8,32], index: 0, kind: input, shape index: {}]   ;;  %s7198_s1 = inlined_call_operand.vmem [shape: f32[2,1,32], index: 1, kind: input, shape index: {}]   ;;  %s7199_s2 = inlined_call_operand.vmem [shape: f32[2,1,32], index: 2, kind: input, shape index: {}]   ;;  %s7200_s3 = inlined_call_operand.vmem [shape: f32[2,4,32,8], index: 3, kind: input, shape index: {}]   ;;  %s7201_s4 = inlined_call_operand.vmem [shape: f32[2,4,32,8], index: 4, kind: input, shape index: {}]   ;;  %s7202_s5 = inlined_call_operand.vmem [shape: f32[2,4,32,8], index: 5, kind: input, shape index: {}]   ;;  %s7203_s6 = inlined_call_operand.vmem [shape: f32[2,4,1,8], index: 6, kind: input, shape index: {}]   ;;  %s7204_s7 = inlined_call_operand.vmem [shape: f32[2,4,1,8], index: 7, kind: input, shape index: {}]   ;;  %s7205_s8 = inlined_call_operand.vmem [shape: f32[2,4,1,8], index: 8, kind: input, shape index: {}]   ;;  %s7206_s9 = inlined_call_operand.vmem [shape: f32[2,4,8,32], index: 9, kind: input, shape index: {}]   ;;  %s7207_s10 = inlined_call_operand.vmem [shape: f32[2,1,32], index: 10, kind: input, shape index: {}]   ;;  %s7208_s11 = inlined_call_operand.vmem [shape: f32[2,1,32], index: 11, kind: input, shape index: {}]   ;;  %s7209_s12 = inlined_call_operand.vmem [shape: f32[2,1,32], index: 12, kind: input, shape index: {}]   ;;  %s7210_s13 = inlined_call_operand.vmem [shape: f32[2,32,64], index: 13, kind: input, shape index: {}]   ;;  %s7211_s14 = inlined_call_operand.vmem [shape: f32[2,1,64], index: 14, kind: input, shape index: {}]   ;;  %s7212_s15 = inlined_call_operand.vmem [shape: f32[2,64,32], index: 15, kind: input, shape index: {}]   ;;  %s7213_s16 = inlined_call_operand.vmem [shape: f32[2,1,32], index: 16, kind: input, shape index: {}]   ;;  %s7214_s17 = inlined_call_operand.vmem [shape: f32[1,32], index: 17, kind: input, shape index: {}]   ;;  %s7215_s18 = inlined_call_operand.vmem [shape: f32[1,32], index: 18, kind: input, shape index: {}]   ;;  %s7216_s19 = inlined_call_operand.hbm [shape: f32[2,8,32], index: 19, kind: output, shape index: {}]  }
   0x1   :  { %7225 = sst [smem:[#allocation10_spill]] %s7197_s0 }
   0x2   :  { %7226 = sst [smem:[#allocation11_spill]] %s7198_s1 }
   0x3   :  { %7227 = sst [smem:[#allocation12_spill]] %s7199_s2 }
   0x4   :  { %7228 = sst [smem:[#allocation13_spill]] %s7200_s3 }
   0x5   :  { %7229 = sst [smem:[#allocation14_spill]] %s7201_s4 }
   0x6   :  { %7230 = sst [smem:[#allocation15_spill]] %s7202_s5 }
   0x7   :  { %7231 = sst [smem:[#allocation16_spill]] %s7203_s6 }
   0x8   :  { %7232 = sst [smem:[#allocation17_spill]] %s7204_s7 }
   0x9   :  { %7233 = sst [smem:[#allocation18_spill]] %s7205_s8 }
   0xa   :  { %24 = vsyncpa [#allocation3], 0 }
   0xb   :  { %26 = vsyncpa [#allocation3 + $0x1], 0  ;;  %s6211_s0 = smov 0   ;;  %s6213_s30 = smov 0  }
   0xc   :  { %s6215_s20 = smov 0   ;;  %s6217_s21 = smov 0  }
   0xd LB: > { %7234 = sst [smem:[#allocation5_spill]] %s6094_s0  ;;  %s6232_s1 = sadd.s32 4294967295, %s6106_s21   ;;  %s6106_s21 = sphi %s6217_s21, %s7252_s21   ;;  %s6102_s20 = sphi %s6215_s20, %s7254_s20   ;;  %s6098_s30 = sphi %s6213_s30, %s7256_s30   ;;  %s6094_s0 = sphi %s6211_s0, %s7255_s0  }
   0xe   : > { %7235 = sst [smem:[#allocation6_spill]] %s6102_s20  ;;  %s5082_s22 = sadd.s32 4294967294, %s6106_s21  }
   0xf   : > { %s6236_s2 = sadd.s32 1, %s6106_s21   ;;  %s443_s23 = sadd.s32 1, %s6102_s20 }
  0x10   : > { %7236 = sst [smem:[#allocation7_spill]] %s6236_s2  ;;  %s440_s24 = ssub.s32 %s6106_s21, %s6236_s2 }
  0x11   : > { %p453_p0 = scmp.ne.s32.totalorder %s6102_s20, %s6098_s30  ;;  %p441_p1 = scmp.eq.s32.totalorder %s440_s24, 0 }
  0x12   : > { %p454_p2 = scmp.eq.s32.totalorder %s6232_s1, 1  ;;  %p459_p3 = scmp.ne.s32.totalorder %s6098_s30, %s6094_s0 }
  0x13   : > { %p460_p4 = scmp.eq.s32.totalorder %s5082_s22, 1  ;;  %p5085_p7 = scmp.ge.s32.totalorder %s6106_s21, 1 }
  0x14   : > { %s6247_s25 = scalar_select %p441_p1, %s6102_s20, %s443_s23  }
  0x15   : > { %p6249_p5 = por %p454_p2, %p453_p0  ;;  %p6253_p6 = por %p460_p4, %p459_p3 }
  0x16   : > { %7237 = sst [smem:[#allocation8_spill]] %s6247_s25  ;;  %p539_p8 = scmp.lt.s32.totalorder %s6106_s21, 3 }
  0x17   : > { %s7239_s26 = scalar_select %p6253_p6, 1, 0 }
  0x18   : > { %p540_p9 = pnand %p5085_p7, %p539_p8 }
  0x19   : > { %7240 = sst [smem:[#allocation9_spill]] %s7239_s26  ;;  %p594_p10 = scmp.lt.s32.totalorder (!%p540_p9), %s6232_s1, 1 }
  0x1a   : > { %543 = sbr.rel (%p540_p9) target bundleno = 10011 (0x271b), region = 96  ;;  %s7241_s23 = sld [smem:[#allocation10_spill]] (!%p540_p9) }
  0x1b   : > { %s7243_s4 = sld [smem:[#allocation14_spill]] (!%p540_p9)  ;;  %s591_s0 = sand.u32 (!%p540_p9), 1, %s6098_s30  }
  0x1c   : > { %s7244_s25 = sld [smem:[#allocation11_spill]] (!%p540_p9)  ;;  %s5086_s26 = sshll.u32 (!%p540_p9), %s591_s0, 3 }
  0x1d   : > { %s7246_s5 = sld [smem:[#allocation15_spill]] (!%p540_p9)  ;;  %s593_s20 = scalar_lea.vmem (!%p540_p9), [#allocation2], %s5086_s26 }
  0x1e   : > { %s7247_s7 = sld [smem:[#allocation17_spill]] (!%p540_p9)  ;;  %s6110_s29 = smov (!%p540_p9), [#allocation2]  }
  0x1f   : > { %s595_s27 = scalar_select %p594_p10, %s6232_s1, 1  ;;  %vm601_vm0 = vcmask 261120   ;;  %v6108_v7 = vmov 0.0   ;;  %vm6109_vm1 = vmmov 0   ;;  %vm877_vm2 = vcmask 64512   ;;  %v1039_v50 = vld [vmem:[%s7206_s9] sm:$0xff] }
  0x20   : > { %5519 = vmatprep.subr.mxu0 %v6108_v7  ;;  %5530 = vmatprep.subr.mxu1 %v6108_v7  ;;  %s7248_s6 = sld [smem:[#allocation16_spill]]  ;;  %vm2708_vm3 = vcmask 523264   ;;  %s6050_s22 = sshll.u32 %s6110_s29, 4  ;;  %s6051_s22 = int_to_ptr.vmem [resolvable:$false] %s6050_s22 }
  0x21   : > { %s5087_s28 = sshll.u32 %s595_s27, 3  ;;  %v718_v9 = vld [vmem:[%s7243_s4 + $0x18] sm:$0xff]  ;;  %v717_v11 = vld [vmem:[%s7243_s4 + $0x10] sm:$0xff]  ;;  %v716_v13 = vld [vmem:[%s7243_s4 + $0x8] sm:$0xff]  ;;  %5527 = vmatprep.mubr.msk.f32.mxu0 %vm6109_vm1, %v6108_v7  ;;  %5538 = vmatprep.mubr.msk.f32.mxu1 %vm6109_vm1, %v6108_v7  ;;  %s7245_s27 = sld [smem:[#allocation12_spill]] }
  0x22   : > { %s597_s24 = scalar_lea.vmem %s7241_s23, %s5087_s28  ;;  %s7242_s28 = sld [smem:[#allocation13_spill]]  ;;  %5531 = vmatpush3.msra.mxu1 %v718_v9  ;;  %v715_v15 = vld [vmem:[%s7243_s4] sm:$0xff]  ;;  %v5111_v62 = vld [vmem:[%s7243_s4 + $0x38] sm:$0xff] }
  0x23   : > { %v6264_v0 = vld [vmem:[%s597_s24] sm:$0xff]  ;;  %5532 = vmatprep.subr.mxu1 %v6108_v7  ;;  %v799_v25 = vld [vmem:[%s7246_s5 + $0x18] sm:$0xff]  ;;  %v798_v26 = vld [vmem:[%s7246_s5 + $0x10] sm:$0xff]  ;;  %s7249_s8 = sld [smem:[#allocation18_spill]]  ;;  %s5320_s24 = sshll.u32 %s6232_s1, 7 }
  0x24   : > { %v602_v1 = vsel %vm601_vm0, %v6264_v0, 0.0  ;;  %5533 = vmatpush3.msra.mxu1 %v717_v11  ;;  %v5088_v20 = vld [vmem:[%s7244_s25] ss:$0 sm:$0xff]  ;;  %v797_v27 = vld [vmem:[%s7246_s5 + $0x8] sm:$0xff]  ;;  %v5118_v58 = vld [vmem:[%s7246_s5 + $0x38] sm:$0xff]  ;;  %s6052_s1 = scalar_lea.vmem %s6051_s22, 256 }
  0x25   : > { %603 = vadd.xlane.f32.xlu0 %v602_v1  ;;  %5534 = vmatprep.subr.mxu1 %v6108_v7  ;;  %v796_v28 = vld [vmem:[%s7246_s5] sm:$0xff]  ;;  %v5117_v59 = vld [vmem:[%s7246_s5 + $0x30] sm:$0xff]  ;;  %v5116_v60 = vld [vmem:[%s7246_s5 + $0x28] sm:$0xff] }
  0x26   : > { %5535 = vmatpush3.msra.mxu1 %v716_v13  ;;  %v5092_v29 = vld [vmem:[%s7247_s7] ss:$0 sm:$0xff]  ;;  %v5110_v1 = vld [vmem:[%s7243_s4 + $0x30] sm:$0xff] }
  0x27   : > { %5536 = vmatprep.subr.mxu1 %v6108_v7  ;;  %v5089_v22 = vld [vmem:[%s7245_s27] ss:$0 sm:$0xff] }
  0x28   : > { %v634_v8 = vld [vmem:[%s7242_s28 + $0x18] sm:$0xff]  ;;  %v633_v10 = vld [vmem:[%s7242_s28 + $0x10] sm:$0xff]  ;;  %v632_v12 = vld [vmem:[%s7242_s28 + $0x8] sm:$0xff]  ;;  %5537 = vmatpush3.msra.mxu1 %v715_v15 }
  0x29   : > { %5520 = vmatpush3.msra.mxu0 %v634_v8  ;;  %v631_v14 = vld [vmem:[%s7242_s28] sm:$0xff]  ;;  %5557 = vmatprep.subr.mxu1 %v6108_v7  ;;  %v5104_v54 = vld [vmem:[%s7242_s28 + $0x38] sm:$0xff]  ;;  %v5103_v55 = vld [vmem:[%s7242_s28 + $0x30] sm:$0xff] }
  0x2a   : > { %5521 = vmatprep.subr.mxu0 %v6108_v7  ;;  %v5090_v32 = vld [vmem:[%s7248_s6] ss:$0 sm:$0xff]  ;;  %v5102_v56 = vld [vmem:[%s7242_s28 + $0x28] sm:$0xff] }
  0x2b   : > { %5522 = vmatpush3.msra.mxu0 %v633_v10  ;;  %v5094_v37 = vld [vmem:[%s7249_s8] ss:$0 sm:$0xff] }
  0x2c   : > { %5523 = vmatprep.subr.mxu0 %v6108_v7  ;;  %v5101_v57 = vld [vmem:[%s7242_s28 + $0x20] sm:$0xff] }
  0x2d   : > { %5524 = vmatpush3.msra.mxu0 %v632_v12  ;;  %v5115_v61 = vld [vmem:[%s7246_s5 + $0x20] sm:$0xff] }
  0x2e   : > { %5525 = vmatprep.subr.mxu0 %v6108_v7  ;;  %v5113_v12 = vld [vmem:[%s7247_s7 + $0x1] ss:$0 sm:$0xff] }
  0x2f   : > { %5526 = vmatpush3.msra.mxu0 %v631_v14  ;;  %v5106_v14 = vld [vmem:[%s7248_s6 + $0x1] ss:$0 sm:$0xff] }
  0x30   : > { %5541 = vmatprep.subr.mxu0 %v6108_v7 }
  0xae   : > { %v604_v2 = vpop.xlane.xlu0 %603 }
  0xaf   : > { %v606_v3 = vmul.f32 0.03125, %v604_v2 }
  0xb1   : > { %v607_v4 = vsub.f32 %v6264_v0, %v606_v3  ;;  %v5109_v3 = vld [vmem:[%s7243_s4 + $0x28] sm:$0xff] }
  0xb3   : > { %v608_v5 = vmul.f32 %v607_v4, %v607_v4 }
  0xb5   : > { %v609_v6 = vsel %vm601_vm0, %v608_v5, 0.0 }
  0xb6   : > { %610 = vadd.xlane.f32.xlu0 %v609_v6 }
 0x13f   : > { %v611_v16 = vpop.xlane.xlu0 %610 }
 0x140   : > { %v612_v17 = vmul.f32 0.03125, %v611_v16  ;;  %v5120_v16 = vld [vmem:[%s7249_s8 + $0x1] ss:$0 sm:$0xff] }
 0x142   : > { %v613_v18 = vadd.f32 1e-05, %v612_v17 }
 0x144   : > { %6004 = vrsqrt.f32 %v613_v18 }
 0x151   : > { %v6005_v19 = vpop.eup %6004 }
 0x152   : > { %v615_v21 = vmul.f32 %v6005_v19, %v607_v4  ;;  %v5108_v4 = vld [vmem:[%s7243_s4 + $0x20] sm:$0xff] }
 0x154   : > { %v622_v23 = vmul.f32 %v5088_v20, %v615_v21 }
 0x156   : > { %v6314_v24 = vadd.f32 %v5089_v22, %v622_v23 }
 0x158   : > { %5528 = vmatmul.mubr.msk.f32.vlgmr.msra.gmra.mxu0 %vm601_vm0, %v6314_v24  ;;  %5539 = vmatmul.mubr.msk.f32.vlgmr.msra.gmra.mxu1 %vm601_vm0, %v6314_v24 }
 0x159   : > { %5542 = vmatpush3.msra.mxu0 %v799_v25  ;;  %5549 = vmatprep.mubr.msk.f32.mxu0 %vm6109_vm1, %v6108_v7 }
 0x15a   : > { %5543 = vmatprep.subr.mxu0 %v6108_v7  ;;  %5559 = vmatprep.mubr.msk.f32.mxu1 %vm6109_vm1, %v6108_v7 }
 0x15b   : > { %5544 = vmatpush3.msra.mxu0 %v798_v26 }
 0x15c   : > { %5545 = vmatprep.subr.mxu0 %v6108_v7 }
 0x15d   : > { %5546 = vmatpush3.msra.mxu0 %v797_v27 }
 0x15e   : > { %5547 = vmatprep.subr.mxu0 %v6108_v7 }
 0x15f   : > { %5548 = vmatpush3.msra.mxu0 %v796_v28 }
 0x160   : > { %5550 = vmatmul.mubr.msk.f32.vlgmr.msra.gmra.mxu0 %vm601_vm0, %v6314_v24  ;;  %5552 = vmatprep.subr.mxu0 %v6108_v7 }
 0x161   : > { %5554 = vmatprep.mubr.msk.f32.mxu0 %vm6109_vm1, %v6108_v7 }
 0x218   : > { %v711_v30 = vpop.f32.mrf.mxu0  ;;  %v792_v31 = vpop.f32.mrf.mxu1 }
 0x219   : > { %v793_v33 = vadd.f32 %v5092_v29, %v792_v31  ;;  %v712_v36 = vadd.f32 %v5090_v32, %v711_v30  ;;  %v5125_v30 = vld [vmem:[%s7206_s9 + $0x8] sm:$0xff] }
 0x21a   : > { %v5529_v34 = vpop.f32.mrf.mxu0  ;;  %v5540_v35 = vpop.f32.mrf.mxu1 }
 0x21b   : > { %5553 = vmatpush3.xpose.msk.msra.mxu0 %vm877_vm2, %v793_v33  ;;  %v5130_v34 = vld [vmem:[%s7242_s28 + $0x58] sm:$0xff]  ;;  %v5129_v35 = vld [vmem:[%s7242_s28 + $0x50] sm:$0xff] }
 0x21c   : > { %5562 = vmatprep.subr.mxu0 %v6108_v7 }
 0x21e   : > { %5555 = vmatmul.mubr.msk.f32.vlgmr.msra.gmra.mxu0 %vm877_vm2, %v712_v36  ;;  %v5128_v36 = vld [vmem:[%s7242_s28 + $0x48] sm:$0xff] }
 0x21f   : > { %5564 = vmatprep.mubr.msk.f32.mxu0 %vm6109_vm1, %v6108_v7  ;;  %5563 = vmatpush3.msra.mxu0 %v1039_v50 }
 0x220   : > { %v873_v38 = vpop.f32.mrf.mxu0  ;;  %5578 = vmatprep.subr.mxu0 %v6108_v7 }
 0x221   : > { %v874_v39 = vadd.f32 %v5094_v37, %v873_v38  ;;  %v5127_v37 = vld [vmem:[%s7242_s28 + $0x40] sm:$0xff]  ;;  %v5144_v38 = vld [vmem:[%s7246_s5 + $0x58] sm:$0xff] }
 0x222   : > { %v5551_v40 = vpop.f32.mrf.mxu0 }
 0x223   : > { %5558 = vmatpush3.msra.mxu1 %v874_v39  ;;  %v5143_v39 = vld [vmem:[%s7246_s5 + $0x50] sm:$0xff]  ;;  %v5142_v40 = vld [vmem:[%s7246_s5 + $0x48] sm:$0xff] }
 0x224   : > { %5567 = vmatprep.subr.mxu1 %v6108_v7 }
 0x2de   : > { %v950_v41 = vpop.f32.mrf.mxu0 }
 0x2df   : > { %v954_v42 = vmul.f32 0.35355338, %v950_v41  ;;  %v5141_v41 = vld [vmem:[%s7246_s5 + $0x40] sm:$0xff] }
 0x2e0   : > { %v5556_v43 = vpop.f32.mrf.mxu0 }
 0x2e1   : > { %v955_v44 = vsel %vm877_vm2, %v954_v42, -inf }
 0x2e2   : > { %956 = vmax.xlane.f32.xlu1 %v955_v44  ;;  %v5136_v44 = vld [vmem:[%s7243_s4 + $0x50] sm:$0xff] }
 0x36b   : > { %v957_v45 = vpop.xlane.xlu1 %956 }
 0x36c   : > { %v958_v46 = vsub.f32 %v954_v42, %v957_v45  ;;  %v5137_v42 = vld [vmem:[%s7243_s4 + $0x58] sm:$0xff] }
 0x36e   : > { %v959_v47 = vmul.f32 1.442695, %v958_v46  ;;  %v5135_v46 = vld [vmem:[%s7243_s4 + $0x48] sm:$0xff] }
 0x370   : > { %6006 = vpow2.f32 %v959_v47  ;;  %v5134_v47 = vld [vmem:[%s7243_s4 + $0x40] sm:$0xff] }
 0x37d   : > { %v6007_v48 = vpop.eup %6006 }
 0x37e   : > { %v961_v49 = vsel %vm877_vm2, %v6007_v48, 0.0 }
 0x37f   : > { %962 = vadd.xlane.f32.xlu1 %v961_v49 }
 0x408   : > { %v963_v51 = vpop.xlane.xlu1 %962 }
 0x409   : > { %6008 = vrcp.f32 %v963_v51 }
 0x416   : > { %v6009_v52 = vpop.eup %6008 }
 0x417   : > { %v965_v53 = vmul.f32 %v6009_v52, %v6007_v48  ;;  %v5100_v52 = vld [vmem:[%s7207_s10] ss:$0 sm:$0xff] }
 0x419   : > { %5560 = vmatmul.mubr.msk.f32.vlgmr.msra.gmra.mxu1 %vm877_vm2, %v965_v53 }
 0x41a   : > { %5568 = vmatpush3.msra.mxu1 %v5104_v54  ;;  %5575 = vmatprep.mubr.msk.f32.mxu1 %vm6109_vm1, %v6108_v7 }
 0x41b   : > { %5569 = vmatprep.subr.mxu1 %v6108_v7 }
 0x41c   : > { %5570 = vmatpush3.msra.mxu1 %v5103_v55 }
 0x41d   : > { %5571 = vmatprep.subr.mxu1 %v6108_v7 }
 0x41e   : > { %5572 = vmatpush3.msra.mxu1 %v5102_v56 }
 0x41f   : > { %5573 = vmatprep.subr.mxu1 %v6108_v7 }
 0x420   : > { %5574 = vmatpush3.msra.mxu1 %v5101_v57  ;;  %v5139_v57 = vld [vmem:[%s7247_s7 + $0x2] ss:$0 sm:$0xff] }
 0x421   : > { %5576 = vmatmul.mubr.msk.f32.vlgmr.msra.gmra.mxu1 %vm601_vm0, %v6314_v24  ;;  %5589 = vmatprep.subr.mxu1 %v6108_v7 }
 0x422   : > { %5590 = vmatpush3.msra.mxu1 %v5118_v58  ;;  %5597 = vmatprep.mubr.msk.f32.mxu1 %vm6109_vm1, %v6108_v7 }
 0x423   : > { %5591 = vmatprep.subr.mxu1 %v6108_v7 }
 0x424   : > { %5592 = vmatpush3.msra.mxu1 %v5117_v59  ;;  %v5132_v59 = vld [vmem:[%s7248_s6 + $0x2] ss:$0 sm:$0xff] }
 0x425   : > { %5593 = vmatprep.subr.mxu1 %v6108_v7 }
 0x426   : > { %5594 = vmatpush3.msra.mxu1 %v5116_v60 }
 0x427   : > { %5595 = vmatprep.subr.mxu1 %v6108_v7 }
 0x428   : > { %5596 = vmatpush3.msra.mxu1 %v5115_v61  ;;  %v5146_v61 = vld [vmem:[%s7249_s8 + $0x2] ss:$0 sm:$0xff] }
 0x429   : > { %5598 = vmatmul.mubr.msk.f32.vlgmr.msra.gmra.mxu1 %vm601_vm0, %v6314_v24  ;;  %5610 = vmatprep.subr.mxu1 %v6108_v7 }
 0x42a   : > { %5612 = vmatprep.mubr.msk.f32.mxu1 %vm6109_vm1, %v6108_v7  ;;  %5611 = vmatpush3.msra.mxu1 %v5125_v30  ;;  %v5160_v30 = vld [vmem:[%s7243_s4 + $0x60] sm:$0xff] }
 0x42b   : > { %5626 = vmatprep.subr.mxu1 %v6108_v7 }
 0x4d9   : > { %v1035_v63 = vpop.f32.mrf.mxu1 }
 0x4da   : > { %5565 = vmatmul.mubr.msk.f32.vlgmr.msra.gmra.mxu0 %vm877_vm2, %v1035_v63 }
 0x4db   : > { %5579 = vmatpush3.msra.mxu0 %v5111_v62  ;;  %v5561_v2 = vpop.f32.mrf.mxu1  ;;  %5586 = vmatprep.mubr.msk.f32.mxu0 %vm6109_vm1, %v6108_v7 }
 0x4dc   : > { %5580 = vmatprep.subr.mxu0 %v6108_v7 }
 0x4dd   : > { %5581 = vmatpush3.msra.mxu0 %v5110_v1 }
 0x4de   : > { %5582 = vmatprep.subr.mxu0 %v6108_v7 }
 0x4df   : > { %5583 = vmatpush3.msra.mxu0 %v5109_v3 }
 0x4e0   : > { %5584 = vmatprep.subr.mxu0 %v6108_v7 }
 0x4e1   : > { %v1199_v5 = vpop.f32.mrf.mxu1  ;;  %5585 = vmatpush3.msra.mxu0 %v5108_v4 }
 0x4e2   : > { %5587 = vmatmul.mubr.msk.f32.vlgmr.msra.gmra.mxu0 %vm601_vm0, %v6314_v24  ;;  %5600 = vmatprep.subr.mxu0 %v6108_v7  ;;  %v1200_v18 = vadd.f32 %v5106_v14, %v1199_v5 }
 0x4e3   : > { %v5577_v6 = vpop.f32.mrf.mxu1  ;;  %5602 = vmatprep.mubr.msk.f32.mxu0 %vm6109_vm1, %v6108_v7 }
 0x4e9   : > { %v1365_v8 = vpop.f32.mrf.mxu1 }
 0x4ea   : > { %v1366_v19 = vadd.f32 %v5120_v16, %v1365_v8  ;;  %v5156_v16 = vld [vmem:[%s7242_s28 + $0x78] sm:$0xff] }
 0x4eb   : > { %v5599_v9 = vpop.f32.mrf.mxu1 }
 0x59a   : > { %v6431_v10 = vpop.f32.mrf.mxu0 }
 0x59b   : > { %v1119_v53 = vadd.f32 %v5100_v52, %v6431_v10 }
 0x59c   : > { %v5566_v11 = vpop.f32.mrf.mxu0 }
 0x5a2   : > { %v1282_v13 = vpop.f32.mrf.mxu0 }
 0x5a3   : > { %v1283_v15 = vadd.f32 %v5113_v12, %v1282_v13  ;;  %v5151_v12 = vld [vmem:[%s7206_s9 + $0x10] sm:$0xff] }
 0x5a4   : > { %v5588_v17 = vpop.f32.mrf.mxu0 }
 0x5a5   : > { %5601 = vmatpush3.xpose.msk.msra.mxu0 %vm877_vm2, %v1283_v15  ;;  %v5155_v17 = vld [vmem:[%s7242_s28 + $0x70] sm:$0xff] }
 0x5a6   : > { %5605 = vmatprep.subr.mxu0 %v6108_v7 }
 0x5a8   : > { %5603 = vmatmul.mubr.msk.f32.vlgmr.msra.gmra.mxu0 %vm877_vm2, %v1200_v18  ;;  %v5154_v18 = vld [vmem:[%s7242_s28 + $0x68] sm:$0xff] }
 0x5a9   : > { %5606 = vmatpush3.msra.mxu0 %v1366_v19  ;;  %5607 = vmatprep.mubr.msk.f32.mxu0 %vm6109_vm1, %v6108_v7  ;;  %v5153_v19 = vld [vmem:[%s7242_s28 + $0x60] sm:$0xff] }
 0x5aa   : > { %5615 = vmatprep.subr.mxu0 %v6108_v7 }
 0x668   : > { %v1441_v20 = vpop.f32.mrf.mxu0 }
 0x669   : > { %v1445_v21 = vmul.f32 0.35355338, %v1441_v20  ;;  %v5170_v20 = vld [vmem:[%s7246_s5 + $0x78] sm:$0xff] }
 0x66a   : > { %v5604_v22 = vpop.f32.mrf.mxu0 }
 0x66b   : > { %v1446_v23 = vsel %vm877_vm2, %v1445_v21, -inf  ;;  %v5168_v22 = vld [vmem:[%s7246_s5 + $0x68] sm:$0xff] }
 0x66c   : > { %1447 = vmax.xlane.f32.xlu0 %v1446_v23  ;;  %v5167_v23 = vld [vmem:[%s7246_s5 + $0x60] sm:$0xff] }
 0x6f5   : > { %v1448_v25 = vpop.xlane.xlu0 %1447 }
 0x6f6   : > { %v1449_v26 = vsub.f32 %v1445_v21, %v1448_v25  ;;  %v5169_v21 = vld [vmem:[%s7246_s5 + $0x70] sm:$0xff]  ;;  %v5163_v25 = vld [vmem:[%s7243_s4 + $0x78] sm:$0xff] }
 0x6f8   : > { %v1450_v27 = vmul.f32 1.442695, %v1449_v26 }
 0x6fa   : > { %6010 = vpow2.f32 %v1450_v27  ;;  %v5162_v27 = vld [vmem:[%s7243_s4 + $0x70] sm:$0xff] }
 0x707   : > { %v6011_v28 = vpop.eup %6010 }
 0x708   : > { %v1452_v29 = vsel %vm877_vm2, %v6011_v28, 0.0 }
 0x709   : > { %1453 = vadd.xlane.f32.xlu1 %v1452_v29  ;;  %v5161_v29 = vld [vmem:[%s7243_s4 + $0x68] sm:$0xff] }
 0x792   : > { %v1454_v31 = vpop.xlane.xlu1 %1453 }
 0x793   : > { %6012 = vrcp.f32 %v1454_v31 }
 0x7a0   : > { %v6013_v32 = vpop.eup %6012 }
 0x7a1   : > { %v1456_v33 = vmul.f32 %v6013_v32, %v6011_v28 }
 0x7a3   : > { %5608 = vmatmul.mubr.msk.f32.vlgmr.msra.gmra.mxu0 %vm877_vm2, %v1456_v33 }
 0x7a4   : > { %5616 = vmatpush3.msra.mxu0 %v5130_v34  ;;  %5623 = vmatprep.mubr.msk.f32.mxu0 %vm6109_vm1, %v6108_v7 }
 0x7a5   : > { %5617 = vmatprep.subr.mxu0 %v6108_v7 }
 0x7a6   : > { %5618 = vmatpush3.msra.mxu0 %v5129_v35 }
 0x7a7   : > { %5619 = vmatprep.subr.mxu0 %v6108_v7 }
 0x7a8   : > { %5620 = vmatpush3.msra.mxu0 %v5128_v36 }
 0x7a9   : > { %5621 = vmatprep.subr.mxu0 %v6108_v7 }
 0x7aa   : > { %5622 = vmatpush3.msra.mxu0 %v5127_v37 }
 0x7ab   : > { %5624 = vmatmul.mubr.msk.f32.vlgmr.msra.gmra.mxu0 %vm601_vm0, %v6314_v24  ;;  %5637 = vmatprep.subr.mxu0 %v6108_v7 }
 0x7ac   : > { %5638 = vmatpush3.msra.mxu0 %v5144_v38  ;;  %5645 = vmatprep.mubr.msk.f32.mxu0 %vm6109_vm1, %v6108_v7  ;;  %v5165_v38 = vld [vmem:[%s7247_s7 + $0x3] ss:$0 sm:$0xff] }
 0x7ad   : > { %5639 = vmatprep.subr.mxu0 %v6108_v7 }
 0x7ae   : > { %5640 = vmatpush3.msra.mxu0 %v5143_v39 }
 0x7af   : > { %5641 = vmatprep.subr.mxu0 %v6108_v7 }
 0x7b0   : > { %5642 = vmatpush3.msra.mxu0 %v5142_v40 }
 0x7b1   : > { %5643 = vmatprep.subr.mxu0 %v6108_v7 }
 0x7b2   : > { %5644 = vmatpush3.msra.mxu0 %v5141_v41  ;;  %v5172_v41 = vld [vmem:[%s7249_s8 + $0x3] ss:$0 sm:$0xff] }
 0x7b3   : > { %5646 = vmatmul.mubr.msk.f32.vlgmr.msra.gmra.mxu0 %vm601_vm0, %v6314_v24  ;;  %5658 = vmatprep.subr.mxu0 %v6108_v7 }
 0x7b4   : > { %5660 = vmatprep.mubr.msk.f32.mxu0 %vm6109_vm1, %v6108_v7  ;;  %5659 = vmatpush3.msra.mxu0 %v5151_v12  ;;  %v2699_v12 = vld [vmem:[%s7212_s15 + $0x30] sm:$0xff] }
 0x7b5   : > { %5674 = vmatprep.subr.mxu0 %v6108_v7 }
 0x863   : > { %v1526_v43 = vpop.f32.mrf.mxu0 }
 0x864   : > { %5613 = vmatmul.mubr.msk.f32.vlgmr.msra.gmra.mxu1 %vm877_vm2, %v1526_v43 }
 0x865   : > { %5627 = vmatpush3.msra.mxu1 %v5137_v42  ;;  %v5609_v45 = vpop.f32.mrf.mxu0  ;;  %5634 = vmatprep.mubr.msk.f32.mxu1 %vm6109_vm1, %v6108_v7 }
 0x866   : > { %5628 = vmatprep.subr.mxu1 %v6108_v7 }
 0x867   : > { %5629 = vmatpush3.msra.mxu1 %v5136_v44 }
 0x868   : > { %5630 = vmatprep.subr.mxu1 %v6108_v7 }
 0x869   : > { %5631 = vmatpush3.msra.mxu1 %v5135_v46 }
 0x86a   : > { %5632 = vmatprep.subr.mxu1 %v6108_v7 }
 0x86b   : > { %v1685_v48 = vpop.f32.mrf.mxu0  ;;  %5633 = vmatpush3.msra.mxu1 %v5134_v47 }
 0x86c   : > { %5635 = vmatmul.mubr.msk.f32.vlgmr.msra.gmra.mxu1 %vm601_vm0, %v6314_v24  ;;  %5648 = vmatprep.subr.mxu1 %v6108_v7  ;;  %v1686_v63 = vadd.f32 %v5132_v59, %v1685_v48 }
 0x86d   : > { %v5625_v49 = vpop.f32.mrf.mxu0  ;;  %5650 = vmatprep.mubr.msk.f32.mxu1 %vm6109_vm1, %v6108_v7 }
 0x873   : > { %v1851_v50 = vpop.f32.mrf.mxu0 }
 0x874   : > { %v1852_v1 = vadd.f32 %v5146_v61, %v1851_v50 }
 0x875   : > { %v5647_v51 = vpop.f32.mrf.mxu0 }
 0x924   : > { %v1601_v54 = vpop.f32.mrf.mxu1 }
 0x925   : > { %v6524_v55 = vadd.f32 %v1601_v54, %v1119_v53  ;;  %v5177_v54 = vld [vmem:[%s7206_s9 + $0x18] sm:$0xff] }
 0x926   : > { %v5614_v56 = vpop.f32.mrf.mxu1 }
 0x92c   : > { %v1768_v58 = vpop.f32.mrf.mxu1 }
 0x92d   : > { %v1769_v60 = vadd.f32 %v5139_v57, %v1768_v58 }
 0x92e   : > { %v5636_v62 = vpop.f32.mrf.mxu1 }
 0x92f   : > { %5649 = vmatpush3.xpose.msk.msra.mxu1 %vm877_vm2, %v1769_v60 }
 0x930   : > { %5653 = vmatprep.subr.mxu1 %v6108_v7 }
 0x932   : > { %5651 = vmatmul.mubr.msk.f32.vlgmr.msra.gmra.mxu1 %vm877_vm2, %v1686_v63 }
 0x933   : > { %5654 = vmatpush3.msra.mxu1 %v1852_v1  ;;  %5655 = vmatprep.mubr.msk.f32.mxu1 %vm6109_vm1, %v6108_v7 }
 0x934   : > { %5663 = vmatprep.subr.mxu1 %v6108_v7 }
 0x9f2   : > { %v1927_v2 = vpop.f32.mrf.mxu1 }
 0x9f3   : > { %v1931_v3 = vmul.f32 0.35355338, %v1927_v2 }
 0x9f4   : > { %v5652_v4 = vpop.f32.mrf.mxu1 }
 0x9f5   : > { %v1932_v5 = vsel %vm877_vm2, %v1931_v3, -inf }
 0x9f6   : > { %1933 = vmax.xlane.f32.xlu0 %v1932_v5 }
 0xa7f   : > { %v1934_v6 = vpop.xlane.xlu0 %1933 }
 0xa80   : > { %v1935_v8 = vsub.f32 %v1931_v3, %v1934_v6 }
 0xa82   : > { %v1936_v9 = vmul.f32 1.442695, %v1935_v8  ;;  %v2611_v8 = vld [vmem:[%s7210_s13 + $0x18] sm:$0xff] }
 0xa84   : > { %6014 = vpow2.f32 %v1936_v9  ;;  %v2609_v9 = vld [vmem:[%s7210_s13 + $0x8] sm:$0xff] }
 0xa91   : > { %v6015_v10 = vpop.eup %6014 }
 0xa92   : > { %v1938_v11 = vsel %vm877_vm2, %v6015_v10, 0.0 }
 0xa93   : > { %1939 = vadd.xlane.f32.xlu1 %v1938_v11  ;;  %v2700_v11 = vld [vmem:[%s7212_s15 + $0x38] sm:$0xff] }
 0xb1c   : > { %v1940_v13 = vpop.xlane.xlu1 %1939 }
 0xb1d   : > { %6016 = vrcp.f32 %v1940_v13  ;;  %v2698_v13 = vld [vmem:[%s7212_s15 + $0x28] sm:$0xff] }
 0xb2a   : > { %v6017_v14 = vpop.eup %6016 }
 0xb2b   : > { %v1942_v15 = vmul.f32 %v6017_v14, %v6015_v10  ;;  %v2608_v10 = vld [vmem:[%s7210_s13] sm:$0xff] }
 0xb2c   : > { %v2697_v14 = vld [vmem:[%s7212_s15 + $0x20] sm:$0xff] }
 0xb2d   : > { %5656 = vmatmul.mubr.msk.f32.vlgmr.msra.gmra.mxu1 %vm877_vm2, %v1942_v15  ;;  %v2696_v15 = vld [vmem:[%s7212_s15 + $0x18] sm:$0xff] }
 0xb2e   : > { %5664 = vmatpush3.msra.mxu1 %v5156_v16  ;;  %5671 = vmatprep.mubr.msk.f32.mxu1 %vm6109_vm1, %v6108_v7 }
 0xb2f   : > { %5665 = vmatprep.subr.mxu1 %v6108_v7 }
 0xb30   : > { %5666 = vmatpush3.msra.mxu1 %v5155_v17 }
 0xb31   : > { %5667 = vmatprep.subr.mxu1 %v6108_v7 }
 0xb32   : > { %5668 = vmatpush3.msra.mxu1 %v5154_v18 }
 0xb33   : > { %5669 = vmatprep.subr.mxu1 %v6108_v7 }
 0xb34   : > { %5670 = vmatpush3.msra.mxu1 %v5153_v19 }
 0xb35   : > { %5672 = vmatmul.mubr.msk.f32.vlgmr.msra.gmra.mxu1 %vm601_vm0, %v6314_v24  ;;  %5685 = vmatprep.subr.mxu1 %v6108_v7 }
 0xb36   : > { %5686 = vmatpush3.msra.mxu1 %v5170_v20  ;;  %5693 = vmatprep.mubr.msk.f32.mxu1 %vm6109_vm1, %v6108_v7  ;;  %v5179_v20 = vld [vmem:[%s7208_s11] ss:$0 sm:$0xff] }
 0xb37   : > { %5687 = vmatprep.subr.mxu1 %v6108_v7 }
 0xb38   : > { %5688 = vmatpush3.msra.mxu1 %v5169_v21 }
 0xb39   : > { %5689 = vmatprep.subr.mxu1 %v6108_v7 }
 0xb3a   : > { %5690 = vmatpush3.msra.mxu1 %v5168_v22  ;;  %v5180_v22 = vld [vmem:[%s7209_s12] ss:$0 sm:$0xff] }
 0xb3b   : > { %5691 = vmatprep.subr.mxu1 %v6108_v7 }
 0xb3c   : > { %5692 = vmatpush3.msra.mxu1 %v5167_v23 }
 0xb3d   : > { %5694 = vmatmul.mubr.msk.f32.vlgmr.msra.gmra.mxu1 %vm601_vm0, %v6314_v24  ;;  %5706 = vmatprep.subr.mxu1 %v6108_v7 }
 0xb3e   : > { %5708 = vmatprep.mubr.msk.f32.mxu1 %vm6109_vm1, %v6108_v7  ;;  %5707 = vmatpush3.msra.mxu1 %v5177_v54 }
 0xb3f   : > { %5722 = vmatprep.subr.mxu1 %v6108_v7 }
 0xbed   : > { %v2012_v26 = vpop.f32.mrf.mxu1 }
 0xbee   : > { %5661 = vmatmul.mubr.msk.f32.vlgmr.msra.gmra.mxu0 %vm877_vm2, %v2012_v26  ;;  %v2695_v26 = vld [vmem:[%s7212_s15 + $0x10] sm:$0xff] }
 0xbef   : > { %5675 = vmatpush3.msra.mxu0 %v5163_v25  ;;  %v5657_v28 = vpop.f32.mrf.mxu1  ;;  %5682 = vmatprep.mubr.msk.f32.mxu0 %vm6109_vm1, %v6108_v7 }
 0xbf0   : > { %5676 = vmatprep.subr.mxu0 %v6108_v7  ;;  %v2693_v28 = vld [vmem:[%s7212_s15] sm:$0xff] }
 0xbf1   : > { %5677 = vmatpush3.msra.mxu0 %v5162_v27  ;;  %v2694_v27 = vld [vmem:[%s7212_s15 + $0x8] sm:$0xff] }
 0xbf2   : > { %5678 = vmatprep.subr.mxu0 %v6108_v7 }
 0xbf3   : > { %5679 = vmatpush3.msra.mxu0 %v5161_v29  ;;  %v5181_v29 = vld [vmem:[%s7211_s14] ss:$0 sm:$0xff] }
 0xbf4   : > { %5680 = vmatprep.subr.mxu0 %v6108_v7 }
 0xbf5   : > { %v2171_v31 = vpop.f32.mrf.mxu1  ;;  %5681 = vmatpush3.msra.mxu0 %v5160_v30 }
 0xbf6   : > { %5683 = vmatmul.mubr.msk.f32.vlgmr.msra.gmra.mxu0 %vm601_vm0, %v6314_v24  ;;  %5696 = vmatprep.subr.mxu0 %v6108_v7  ;;  %v5158_v24 = vld [vmem:[%s7248_s6 + $0x3] ss:$0 sm:$0xff] }
 0xbf7   : > { %v5673_v32 = vpop.f32.mrf.mxu1  ;;  %5698 = vmatprep.mubr.msk.f32.mxu0 %vm6109_vm1, %v6108_v7  ;;  %v2172_v43 = vadd.f32 %v5158_v24, %v2171_v31 }
 0xbfd   : > { %v2337_v33 = vpop.f32.mrf.mxu1 }
 0xbfe   : > { %v2338_v44 = vadd.f32 %v5172_v41, %v2337_v33 }
 0xbff   : > { %v5695_v34 = vpop.f32.mrf.mxu1 }
 0xc00   : > { %v5183_v34 = vld [vmem:[%s7213_s16] ss:$0 sm:$0xff] }
 0xcae   : > { %v2087_v35 = vpop.f32.mrf.mxu0 }
 0xcaf   : > { %v2091_v36 = vadd.f32 %v2087_v35, %v6524_v55 }
 0xcb0   : > { %v5662_v37 = vpop.f32.mrf.mxu0 }
 0xcb6   : > { %v2254_v39 = vpop.f32.mrf.mxu0 }
 0xcb7   : > { %v2255_v40 = vadd.f32 %v5165_v38, %v2254_v39 }
 0xcb8   : > { %v5684_v42 = vpop.f32.mrf.mxu0 }
 0xcb9   : > { %5697 = vmatpush3.xpose.msk.msra.mxu0 %vm877_vm2, %v2255_v40 }
 0xcba   : > { %5701 = vmatprep.subr.mxu0 %v6108_v7 }
 0xcbc   : > { %5699 = vmatmul.mubr.msk.f32.vlgmr.msra.gmra.mxu0 %vm877_vm2, %v2172_v43 }
 0xcbd   : > { %5702 = vmatpush3.msra.mxu0 %v2338_v44  ;;  %5703 = vmatprep.mubr.msk.f32.mxu0 %vm6109_vm1, %v6108_v7  ;;  %v5193_v44 = vld [vmem:[%s7242_s28 + $0x98] sm:$0xff] }
 0xcbe   : > { %5711 = vmatprep.subr.mxu0 %v6108_v7 }
 0xd7c   : > { %v2413_v45 = vpop.f32.mrf.mxu0 }
 0xd7d   : > { %v2417_v46 = vmul.f32 0.35355338, %v2413_v45  ;;  %v5207_v45 = vld [vmem:[%s7246_s5 + $0x98] sm:$0xff] }
 0xd7e   : > { %v5700_v47 = vpop.f32.mrf.mxu0 }
 0xd7f   : > { %v2418_v48 = vsel %vm877_vm2, %v2417_v46, -inf  ;;  %v5206_v47 = vld [vmem:[%s7246_s5 + $0x90] sm:$0xff] }
 0xd80   : > { %2419 = vmax.xlane.f32.xlu0 %v2418_v48  ;;  %v5191_v48 = vld [vmem:[%s7242_s28 + $0x88] sm:$0xff] }
 0xe09   : > { %v2420_v49 = vpop.xlane.xlu0 %2419 }
 0xe0a   : > { %v2421_v50 = vsub.f32 %v2417_v46, %v2420_v49  ;;  %v5192_v46 = vld [vmem:[%s7242_s28 + $0x90] sm:$0xff]  ;;  %v5205_v49 = vld [vmem:[%s7246_s5 + $0x88] sm:$0xff] }
 0xe0c   : > { %v2422_v51 = vmul.f32 1.442695, %v2421_v50  ;;  %v5190_v50 = vld [vmem:[%s7242_s28 + $0x80] sm:$0xff] }
 0xe0e   : > { %6018 = vpow2.f32 %v2422_v51  ;;  %v5204_v51 = vld [vmem:[%s7246_s5 + $0x80] sm:$0xff] }
 0xe1b   : > { %v6019_v52 = vpop.eup %6018 }
 0xe1c   : > { %v2424_v53 = vsel %vm877_vm2, %v6019_v52, 0.0 }
 0xe1d   : > { %2425 = vadd.xlane.f32.xlu1 %v2424_v53 }
 0xea6   : > { %v2426_v55 = vpop.xlane.xlu1 %2425 }
 0xea7   : > { %6020 = vrcp.f32 %v2426_v55 }
 0xeb4   : > { %v6021_v56 = vpop.eup %6020 }
 0xeb5   : > { %v2428_v57 = vmul.f32 %v6021_v56, %v6019_v52  ;;  %v5187_v56 = vld [vmem:[%s7244_s25 + $0x1] ss:$0 sm:$0xff] }
 0xeb7   : > { %5704 = vmatmul.mubr.msk.f32.vlgmr.msra.gmra.mxu0 %vm877_vm2, %v2428_v57 }
 0xeb8   : > { %5719 = vmatprep.mubr.msk.f32.mxu0 %vm6109_vm1, %v6108_v7  ;;  %5712 = vmatpush3.msra.mxu0 %v2611_v8 }
 0xeb9   : > { %5713 = vmatprep.subr.mxu0 %v6108_v7 }
 0xf77   : > { %v2498_v58 = vpop.f32.mrf.mxu0 }
 0xf78   : > { %5709 = vmatmul.mubr.msk.f32.vlgmr.msra.gmra.mxu1 %vm877_vm2, %v2498_v58  ;;  %v5188_v58 = vld [vmem:[%s7245_s27 + $0x1] ss:$0 sm:$0xff] }
 0xf79   : > { %v5705_v59 = vpop.f32.mrf.mxu0  ;;  %5738 = vmatprep.mubr.msk.f32.mxu1 %vm6109_vm1, %v6108_v7  ;;  %5723 = vmatpush3.msra.mxu1 %v2700_v11 }
 0xf7a   : > { %5724 = vmatprep.subr.mxu1 %v6108_v7 }
 0xf7b   : > { %5725 = vmatpush3.msra.mxu1 %v2699_v12 }
 0xf7c   : > { %5726 = vmatprep.subr.mxu1 %v6108_v7 }
 0xf7d   : > { %5727 = vmatpush3.msra.mxu1 %v2698_v13 }
 0xf7e   : > { %5728 = vmatprep.subr.mxu1 %v6108_v7 }
 0xf7f   : > { %5729 = vmatpush3.msra.mxu1 %v2697_v14 }
 0xf80   : > { %5730 = vmatprep.subr.mxu1 %v6108_v7 }
 0xf81   : > { %5731 = vmatpush3.msra.mxu1 %v2696_v15 }
 0xf82   : > { %5732 = vmatprep.subr.mxu1 %v6108_v7 }
 0xf83   : > { %5733 = vmatpush3.msra.mxu1 %v2695_v26 }
 0xf84   : > { %5734 = vmatprep.subr.mxu1 %v6108_v7 }
 0xf85   : > { %5735 = vmatpush3.msra.mxu1 %v2694_v27 }
 0xf86   : > { %5736 = vmatprep.subr.mxu1 %v6108_v7 }
 0xf87   : > { %5737 = vmatpush3.msra.mxu1 %v2693_v28  ;;  %v5220_v28 = vld [vmem:[%s7242_s28 + $0xb8] sm:$0xff] }
 0xf88   : > { %5763 = vmatprep.subr.mxu1 %v6108_v7 }
0x1038   : > { %v2573_v60 = vpop.f32.mrf.mxu1 }
0x1039   : > { %v2577_v61 = vadd.f32 %v2573_v60, %v2091_v36 }
0x103a   : > { %v5710_v62 = vpop.f32.mrf.mxu1 }
0x103b   : > { %v6642_v63 = vadd.f32 %v2577_v61, %v6264_v0  ;;  %v2610_v0 = vld [vmem:[%s7210_s13 + $0x10] sm:$0xff]  ;;  %v5200_v61 = vld [vmem:[%s7243_s4 + $0x98] sm:$0xff] }
0x103c   : > { %5714 = vmatpush3.msra.mxu0 %v2610_v0  ;;  %v5199_v62 = vld [vmem:[%s7243_s4 + $0x90] sm:$0xff]  ;;  %v5202_v0 = vld [vmem:[%s7247_s7 + $0x4] ss:$0 sm:$0xff] }
0x103d   : > { %v2581_v1 = vsel %vm601_vm0, %v6642_v63, 0.0  ;;  %5715 = vmatprep.subr.mxu0 %v6108_v7 }
0x103e   : > { %2582 = vadd.xlane.f32.xlu0 %v2581_v1  ;;  %5716 = vmatpush3.msra.mxu0 %v2609_v9  ;;  %v5197_v1 = vld [vmem:[%s7243_s4 + $0x80] sm:$0xff] }
0x103f   : > { %5717 = vmatprep.subr.mxu0 %v6108_v7 }
0x1040   : > { %5718 = vmatpush3.msra.mxu0 %v2608_v10  ;;  %v5195_v10 = vld [vmem:[%s7248_s6 + $0x4] ss:$0 sm:$0xff] }
0x1041   : > { %5741 = vmatprep.subr.mxu0 %v6108_v7 }
0x10c7   : > { %v2583_v2 = vpop.xlane.xlu0 %2582 }
0x10c8   : > { %v2584_v3 = vmul.f32 0.03125, %v2583_v2  ;;  %v5209_v2 = vld [vmem:[%s7249_s8 + $0x4] ss:$0 sm:$0xff] }
0x10ca   : > { %v2585_v4 = vsub.f32 %v6642_v63, %v2584_v3 }
0x10cc   : > { %v2586_v5 = vmul.f32 %v2585_v4, %v2585_v4 }
0x10ce   : > { %v2587_v6 = vsel %vm601_vm0, %v2586_v5, 0.0 }
0x10cf   : > { %2588 = vadd.xlane.f32.xlu1 %v2587_v6 }
0x1158   : > { %v2589_v16 = vpop.xlane.xlu1 %2588 }
0x1159   : > { %v2590_v17 = vmul.f32 0.03125, %v2589_v16 }
0x115b   : > { %v2591_v18 = vadd.f32 1e-05, %v2590_v17 }
0x115d   : > { %6022 = vrsqrt.f32 %v2591_v18 }
0x116a   : > { %v6023_v19 = vpop.eup %6022 }
0x116b   : > { %v2593_v21 = vmul.f32 %v6023_v19, %v2585_v4 }
0x116d   : > { %v2600_v23 = vmul.f32 %v5179_v20, %v2593_v21 }
0x116f   : > { %v2607_v25 = vadd.f32 %v5180_v22, %v2600_v23  ;;  %v5214_v23 = vld [vmem:[%s7206_s9 + $0x20] sm:$0xff] }
0x1171   : > { %5720 = vmatmul.mubr.msk.f32.vlgmr.msra.gmra.mxu0 %vm601_vm0, %v2607_v25 }
0x1172   : > { %5749 = vmatprep.mubr.msk.f32.mxu0 %vm6109_vm1, %v6108_v7  ;;  %5742 = vmatpush3.msra.mxu0 %v5193_v44 }
0x1173   : > { %5743 = vmatprep.subr.mxu0 %v6108_v7 }
0x1174   : > { %5744 = vmatpush3.msra.mxu0 %v5192_v46 }
0x1175   : > { %5745 = vmatprep.subr.mxu0 %v6108_v7 }
0x1176   : > { %5746 = vmatpush3.msra.mxu0 %v5191_v48  ;;  %v5229_v48 = vld [vmem:[%s7247_s7 + $0x5] ss:$0 sm:$0xff] }
0x1177   : > { %5747 = vmatprep.subr.mxu0 %v6108_v7 }
0x1178   : > { %5748 = vmatpush3.msra.mxu0 %v5190_v50  ;;  %v5222_v50 = vld [vmem:[%s7248_s6 + $0x5] ss:$0 sm:$0xff] }
0x1179   : > { %5752 = vmatprep.subr.mxu0 %v6108_v7 }
0x1231   : > { %v2688_v30 = vpop.f32.mrf.mxu0 }
0x1232   : > { %v2689_v31 = vadd.f32 %v5181_v29, %v2688_v30  ;;  %v5219_v29 = vld [vmem:[%s7242_s28 + $0xb0] sm:$0xff]  ;;  %v5218_v30 = vld [vmem:[%s7242_s28 + $0xa8] sm:$0xff] }
0x1233   : > { %v5721_v32 = vpop.f32.mrf.mxu0 }
0x1234   : > { %v2692_v33 = vmax.f32 %v2689_v31, 0.0  ;;  %v5217_v31 = vld [vmem:[%s7242_s28 + $0xa0] sm:$0xff]  ;;  %v5234_v32 = vld [vmem:[%s7246_s5 + $0xb8] sm:$0xff] }
0x1236   : > { %5739 = vmatmul.mubr.msk.f32.vlgmr.msra.gmra.mxu1 %vm2708_vm3, %v2692_v33  ;;  %v5233_v33 = vld [vmem:[%s7246_s5 + $0xb0] sm:$0xff] }
0x1237   : > { %5771 = vmatprep.mubr.msk.f32.mxu1 %vm6109_vm1, %v6108_v7  ;;  %5764 = vmatpush3.msra.mxu1 %v5207_v45 }
0x1238   : > { %5765 = vmatprep.subr.mxu1 %v6108_v7 }
0x1239   : > { %5766 = vmatpush3.msra.mxu1 %v5206_v47 }
0x123a   : > { %5767 = vmatprep.subr.mxu1 %v6108_v7 }
0x123b   : > { %5768 = vmatpush3.msra.mxu1 %v5205_v49 }
0x123c   : > { %5769 = vmatprep.subr.mxu1 %v6108_v7 }
0x123d   : > { %5770 = vmatpush3.msra.mxu1 %v5204_v51 }
0x123e   : > { %5779 = vmatprep.subr.mxu1 %v6108_v7 }
0x12f6   : > { %v2778_v35 = vpop.f32.mrf.mxu1 }
0x12f7   : > { %v2779_v36 = vadd.f32 %v5183_v34, %v2778_v35  ;;  %v5232_v34 = vld [vmem:[%s7246_s5 + $0xa8] sm:$0xff]  ;;  %v5231_v35 = vld [vmem:[%s7246_s5 + $0xa0] sm:$0xff] }
0x12f8   : > { %v5740_v37 = vpop.f32.mrf.mxu1 }
0x12f9   : > { %v6715_v38 = vadd.f32 %v2779_v36, %v6642_v63  ;;  %v5198_v63 = vld [vmem:[%s7243_s4 + $0x88] sm:$0xff]  ;;  %v5227_v36 = vld [vmem:[%s7243_s4 + $0xb8] sm:$0xff] }
0x12fb   : > { %v2787_v39 = vsel %vm601_vm0, %v6715_v38, 0.0 }
0x12fc   : > { %2788 = vadd.xlane.f32.xlu0 %v2787_v39  ;;  %v5226_v39 = vld [vmem:[%s7243_s4 + $0xb0] sm:$0xff] }
0x1385   : > { %v2789_v24 = vpop.xlane.xlu0 %2788 }
0x1386   : > { %v2790_v40 = vmul.f32 0.03125, %v2789_v24 }
0x1388   : > { %v2791_v41 = vsub.f32 %v6715_v38, %v2790_v40  ;;  %v5225_v40 = vld [vmem:[%s7243_s4 + $0xa8] sm:$0xff] }
0x138a   : > { %v2792_v42 = vmul.f32 %v2791_v41, %v2791_v41 }
0x138c   : > { %v2793_v43 = vsel %vm601_vm0, %v2792_v42, 0.0 }
0x138d   : > { %2794 = vadd.xlane.f32.xlu1 %v2793_v43 }
0x1416   : > { %v2795_v52 = vpop.xlane.xlu1 %2794 }
0x1417   : > { %v2796_v53 = vmul.f32 0.03125, %v2795_v52  ;;  %v5236_v52 = vld [vmem:[%s7249_s8 + $0x5] ss:$0 sm:$0xff] }
0x1419   : > { %v2797_v54 = vadd.f32 1e-05, %v2796_v53 }
0x141b   : > { %6024 = vrsqrt.f32 %v2797_v54 }
0x1428   : > { %v6025_v55 = vpop.eup %6024 }
0x1429   : > { %v2799_v57 = vmul.f32 %v6025_v55, %v2791_v41  ;;  %v5224_v41 = vld [vmem:[%s7243_s4 + $0xa0] sm:$0xff] }
0x142b   : > { %v2806_v59 = vmul.f32 %v5187_v56, %v2799_v57 }
0x142d   : > { %v6759_v60 = vadd.f32 %v5188_v58, %v2806_v59 }
0x142f   : > { %5750 = vmatmul.mubr.msk.f32.vlgmr.msra.gmra.mxu0 %vm601_vm0, %v6759_v60  ;;  %5772 = vmatmul.mubr.msk.f32.vlgmr.msra.gmra.mxu1 %vm601_vm0, %v6759_v60 }
0x1430   : > { %5753 = vmatpush3.msra.mxu0 %v5200_v61  ;;  %5760 = vmatprep.mubr.msk.f32.mxu0 %vm6109_vm1, %v6108_v7 }
0x1431   : > { %5754 = vmatprep.subr.mxu0 %v6108_v7  ;;  %5781 = vmatprep.mubr.msk.f32.mxu1 %vm6109_vm1, %v6108_v7 }
0x1432   : > { %5755 = vmatpush3.msra.mxu0 %v5199_v62 }
0x1433   : > { %5756 = vmatprep.subr.mxu0 %v6108_v7 }
0x1434   : > { %5757 = vmatpush3.msra.mxu0 %v5198_v63 }
0x1435   : > { %5758 = vmatprep.subr.mxu0 %v6108_v7 }
0x1436   : > { %5759 = vmatpush3.msra.mxu0 %v5197_v1 }
0x1437   : > { %5761 = vmatmul.mubr.msk.f32.vlgmr.msra.gmra.mxu0 %vm601_vm0, %v6759_v60  ;;  %5774 = vmatprep.subr.mxu0 %v6108_v7 }
0x1438   : > { %5776 = vmatprep.mubr.msk.f32.mxu0 %vm6109_vm1, %v6108_v7 }
0x14ef   : > { %v2898_v3 = vpop.f32.mrf.mxu0  ;;  %v3064_v4 = vpop.f32.mrf.mxu1 }
0x14f0   : > { %v3065_v5 = vadd.f32 %v5209_v2, %v3064_v4  ;;  %v2899_v13 = vadd.f32 %v5195_v10, %v2898_v3  ;;  %v5241_v3 = vld [vmem:[%s7206_s9 + $0x28] sm:$0xff]  ;;  %v5243_v10 = vld [vmem:[%s7242_s28 + $0xc0] sm:$0xff] }
0x14f1   : > { %v5751_v6 = vpop.f32.mrf.mxu0  ;;  %v5773_v8 = vpop.f32.mrf.mxu1 }
0x14f2   : > { %5780 = vmatpush3.msra.mxu1 %v3065_v5  ;;  %v5246_v8 = vld [vmem:[%s7242_s28 + $0xd8] sm:$0xff] }
0x14f3   : > { %5789 = vmatprep.subr.mxu1 %v6108_v7 }
0x14f7   : > { %v2981_v9 = vpop.f32.mrf.mxu0 }
0x14f8   : > { %v2982_v11 = vadd.f32 %v5202_v0, %v2981_v9  ;;  %v5245_v0 = vld [vmem:[%s7242_s28 + $0xd0] sm:$0xff]  ;;  %v5244_v9 = vld [vmem:[%s7242_s28 + $0xc8] sm:$0xff] }
0x14f9   : > { %v5762_v12 = vpop.f32.mrf.mxu0 }
0x14fa   : > { %5775 = vmatpush3.xpose.msk.msra.mxu0 %vm877_vm2, %v2982_v11  ;;  %v5260_v11 = vld [vmem:[%s7246_s5 + $0xd8] sm:$0xff]  ;;  %v5259_v12 = vld [vmem:[%s7246_s5 + $0xd0] sm:$0xff] }
0x14fb   : > { %5784 = vmatprep.subr.mxu0 %v6108_v7 }
0x14fd   : > { %5777 = vmatmul.mubr.msk.f32.vlgmr.msra.gmra.mxu0 %vm877_vm2, %v2899_v13  ;;  %v5258_v13 = vld [vmem:[%s7246_s5 + $0xc8] sm:$0xff] }
0x14fe   : > { %5786 = vmatprep.mubr.msk.f32.mxu0 %vm6109_vm1, %v6108_v7  ;;  %5785 = vmatpush3.msra.mxu0 %v5214_v23 }
0x14ff   : > { %5800 = vmatprep.subr.mxu0 %v6108_v7 }
0x15bd   : > { %v3140_v14 = vpop.f32.mrf.mxu0 }
0x15be   : > { %v3144_v15 = vmul.f32 0.35355338, %v3140_v14  ;;  %v5257_v14 = vld [vmem:[%s7246_s5 + $0xc0] sm:$0xff] }
0x15bf   : > { %v5778_v16 = vpop.f32.mrf.mxu0 }
0x15c0   : > { %v3145_v17 = vsel %vm877_vm2, %v3144_v15, -inf }
0x15c1   : > { %3146 = vmax.xlane.f32.xlu0 %v3145_v17  ;;  %v5252_v17 = vld [vmem:[%s7243_s4 + $0xd0] sm:$0xff] }
0x164a   : > { %v3147_v18 = vpop.xlane.xlu0 %3146 }
0x164b   : > { %v3148_v19 = vsub.f32 %v3144_v15, %v3147_v18  ;;  %v5253_v15 = vld [vmem:[%s7243_s4 + $0xd8] sm:$0xff] }
0x164d   : > { %v3149_v20 = vmul.f32 1.442695, %v3148_v19  ;;  %v5251_v19 = vld [vmem:[%s7243_s4 + $0xc8] sm:$0xff] }
0x164f   : > { %6026 = vpow2.f32 %v3149_v20  ;;  %v5250_v20 = vld [vmem:[%s7243_s4 + $0xc0] sm:$0xff] }
0x165c   : > { %v6027_v21 = vpop.eup %6026 }
0x165d   : > { %v3151_v22 = vsel %vm877_vm2, %v6027_v21, 0.0 }
0x165e   : > { %3152 = vadd.xlane.f32.xlu1 %v3151_v22 }
0x16e7   : > { %v3153_v25 = vpop.xlane.xlu1 %3152 }
0x16e8   : > { %6028 = vrcp.f32 %v3153_v25 }
0x16f5   : > { %v6029_v26 = vpop.eup %6028 }
0x16f6   : > { %v3155_v27 = vmul.f32 %v6029_v26, %v6027_v21  ;;  %v5216_v26 = vld [vmem:[%s7207_s10 + $0x1] ss:$0 sm:$0xff] }
0x16f8   : > { %5782 = vmatmul.mubr.msk.f32.vlgmr.msra.gmra.mxu1 %vm877_vm2, %v3155_v27 }
0x16f9   : > { %5790 = vmatpush3.msra.mxu1 %v5220_v28  ;;  %5797 = vmatprep.mubr.msk.f32.mxu1 %vm6109_vm1, %v6108_v7 }
0x16fa   : > { %5791 = vmatprep.subr.mxu1 %v6108_v7 }
0x16fb   : > { %5792 = vmatpush3.msra.mxu1 %v5219_v29 }
0x16fc   : > { %5793 = vmatprep.subr.mxu1 %v6108_v7 }
0x16fd   : > { %5794 = vmatpush3.msra.mxu1 %v5218_v30 }
0x16fe   : > { %5795 = vmatprep.subr.mxu1 %v6108_v7 }
0x16ff   : > { %5796 = vmatpush3.msra.mxu1 %v5217_v31  ;;  %v5255_v31 = vld [vmem:[%s7247_s7 + $0x6] ss:$0 sm:$0xff] }
0x1700   : > { %5798 = vmatmul.mubr.msk.f32.vlgmr.msra.gmra.mxu1 %vm601_vm0, %v6759_v60  ;;  %5811 = vmatprep.subr.mxu1 %v6108_v7 }
0x1701   : > { %5812 = vmatpush3.msra.mxu1 %v5234_v32  ;;  %5819 = vmatprep.mubr.msk.f32.mxu1 %vm6109_vm1, %v6108_v7 }
0x1702   : > { %5813 = vmatprep.subr.mxu1 %v6108_v7 }
0x1703   : > { %5814 = vmatpush3.msra.mxu1 %v5233_v33  ;;  %v5248_v33 = vld [vmem:[%s7248_s6 + $0x6] ss:$0 sm:$0xff] }
0x1704   : > { %5815 = vmatprep.subr.mxu1 %v6108_v7 }
0x1705   : > { %5816 = vmatpush3.msra.mxu1 %v5232_v34 }
0x1706   : > { %5817 = vmatprep.subr.mxu1 %v6108_v7 }
0x1707   : > { %5818 = vmatpush3.msra.mxu1 %v5231_v35  ;;  %v5262_v35 = vld [vmem:[%s7249_s8 + $0x6] ss:$0 sm:$0xff] }
0x1708   : > { %5820 = vmatmul.mubr.msk.f32.vlgmr.msra.gmra.mxu1 %vm601_vm0, %v6759_v60  ;;  %5832 = vmatprep.subr.mxu1 %v6108_v7 }
0x1709   : > { %5834 = vmatprep.mubr.msk.f32.mxu1 %vm6109_vm1, %v6108_v7  ;;  %5833 = vmatpush3.msra.mxu1 %v5241_v3  ;;  %v5276_v3 = vld [vmem:[%s7243_s4 + $0xe0] sm:$0xff] }
0x170a   : > { %5848 = vmatprep.subr.mxu1 %v6108_v7 }
0x17b8   : > { %v3225_v37 = vpop.f32.mrf.mxu1 }
0x17b9   : > { %5787 = vmatmul.mubr.msk.f32.vlgmr.msra.gmra.mxu0 %vm877_vm2, %v3225_v37 }
0x17ba   : > { %5801 = vmatpush3.msra.mxu0 %v5227_v36  ;;  %v5783_v24 = vpop.f32.mrf.mxu1  ;;  %5808 = vmatprep.mubr.msk.f32.mxu0 %vm6109_vm1, %v6108_v7 }
0x17bb   : > { %5802 = vmatprep.subr.mxu0 %v6108_v7 }
0x17bc   : > { %5803 = vmatpush3.msra.mxu0 %v5226_v39 }
0x17bd   : > { %5804 = vmatprep.subr.mxu0 %v6108_v7 }
0x17be   : > { %5805 = vmatpush3.msra.mxu0 %v5225_v40 }
0x17bf   : > { %5806 = vmatprep.subr.mxu0 %v6108_v7 }
0x17c0   : > { %v3390_v42 = vpop.f32.mrf.mxu1  ;;  %5807 = vmatpush3.msra.mxu0 %v5224_v41 }
0x17c1   : > { %5809 = vmatmul.mubr.msk.f32.vlgmr.msra.gmra.mxu0 %vm601_vm0, %v6759_v60  ;;  %5822 = vmatprep.subr.mxu0 %v6108_v7  ;;  %v3391_v54 = vadd.f32 %v5222_v50, %v3390_v42 }
0x17c2   : > { %v5799_v43 = vpop.f32.mrf.mxu1  ;;  %5824 = vmatprep.mubr.msk.f32.mxu0 %vm6109_vm1, %v6108_v7 }
0x17c8   : > { %v3556_v44 = vpop.f32.mrf.mxu1 }
0x17c9   : > { %v3557_v55 = vadd.f32 %v5236_v52, %v3556_v44  ;;  %v5272_v52 = vld [vmem:[%s7242_s28 + $0xf8] sm:$0xff] }
0x17ca   : > { %v5821_v45 = vpop.f32.mrf.mxu1 }
0x1879   : > { %v6876_v46 = vpop.f32.mrf.mxu0 }
0x187a   : > { %v3310_v27 = vadd.f32 %v5216_v26, %v6876_v46 }
0x187b   : > { %v5788_v47 = vpop.f32.mrf.mxu0 }
0x1881   : > { %v3473_v49 = vpop.f32.mrf.mxu0 }
0x1882   : > { %v3474_v51 = vadd.f32 %v5229_v48, %v3473_v49  ;;  %v5267_v48 = vld [vmem:[%s7206_s9 + $0x30] sm:$0xff] }
0x1883   : > { %v5810_v53 = vpop.f32.mrf.mxu0 }
0x1884   : > { %5823 = vmatpush3.xpose.msk.msra.mxu0 %vm877_vm2, %v3474_v51  ;;  %v5271_v53 = vld [vmem:[%s7242_s28 + $0xf0] sm:$0xff] }
0x1885   : > { %5827 = vmatprep.subr.mxu0 %v6108_v7 }
0x1887   : > { %5825 = vmatmul.mubr.msk.f32.vlgmr.msra.gmra.mxu0 %vm877_vm2, %v3391_v54  ;;  %v5270_v54 = vld [vmem:[%s7242_s28 + $0xe8] sm:$0xff] }
0x1888   : > { %5828 = vmatpush3.msra.mxu0 %v3557_v55  ;;  %5829 = vmatprep.mubr.msk.f32.mxu0 %vm6109_vm1, %v6108_v7  ;;  %v5269_v55 = vld [vmem:[%s7242_s28 + $0xe0] sm:$0xff] }
0x1889   : > { %5837 = vmatprep.subr.mxu0 %v6108_v7 }
0x1947   : > { %v3632_v56 = vpop.f32.mrf.mxu0 }
0x1948   : > { %v3636_v57 = vmul.f32 0.35355338, %v3632_v56  ;;  %v5286_v56 = vld [vmem:[%s7246_s5 + $0xf8] sm:$0xff] }
0x1949   : > { %v5826_v58 = vpop.f32.mrf.mxu0 }
0x194a   : > { %v3637_v59 = vsel %vm877_vm2, %v3636_v57, -inf  ;;  %v5284_v58 = vld [vmem:[%s7246_s5 + $0xe8] sm:$0xff] }
0x194b   : > { %3638 = vmax.xlane.f32.xlu0 %v3637_v59  ;;  %v5283_v59 = vld [vmem:[%s7246_s5 + $0xe0] sm:$0xff] }
0x19d4   : > { %v3639_v61 = vpop.xlane.xlu0 %3638 }
0x19d5   : > { %v3640_v62 = vsub.f32 %v3636_v57, %v3639_v61  ;;  %v5285_v57 = vld [vmem:[%s7246_s5 + $0xf0] sm:$0xff]  ;;  %v5279_v61 = vld [vmem:[%s7243_s4 + $0xf8] sm:$0xff] }
0x19d7   : > { %v3641_v63 = vmul.f32 1.442695, %v3640_v62 }
0x19d9   : > { %6030 = vpow2.f32 %v3641_v63  ;;  %v5278_v63 = vld [vmem:[%s7243_s4 + $0xf0] sm:$0xff] }
0x19e6   : > { %v6031_v1 = vpop.eup %6030 }
0x19e7   : > { %v3643_v2 = vsel %vm877_vm2, %v6031_v1, 0.0 }
0x19e8   : > { %3644 = vadd.xlane.f32.xlu1 %v3643_v2  ;;  %v5277_v2 = vld [vmem:[%s7243_s4 + $0xe8] sm:$0xff]  ;;  %s5023_s4 = sshll.u32 %s593_s20, 4  ;;  %s5024_s4 = int_to_ptr.vmem [resolvable:$true] %s5023_s4 }
0x19e9   : > { %s6046_s2 = scalar_lea.vmem %s5024_s4, 128  ;;  %p6053_p0 = scmp.lt.s32.totalorder %s5024_s4, %s6051_s22 }
0x19ea   : > { %p6047_p11 = scmp.ne.s32.totalorder %s5024_s4, %s6046_s2  ;;  %p6054_p1 = scmp.lt.s32.totalorder %s6052_s1, %s6046_s2 }
0x19ec   : > { %p6048_p12 = pnand %p6047_p11, %p6249_p5  ;;  %p6055_p2 = por %p6054_p1, %p6053_p0 }
0x19ee   : > { %p6049_p13 = pneg %p6048_p12 }
0x19f0   : > { %p6056_p3 = pnand %p6055_p2, %p6049_p13 }
0x1a71   : > { %v3645_v4 = vpop.xlane.xlu1 %3644 }
0x1a72   : > { %6032 = vrcp.f32 %v3645_v4 }
0x1a7f   : > { %v6033_v5 = vpop.eup %6032 }
0x1a80   : > { %v3647_v6 = vmul.f32 %v6033_v5, %v6031_v1 }
0x1a82   : > { %5830 = vmatmul.mubr.msk.f32.vlgmr.msra.gmra.mxu0 %vm877_vm2, %v3647_v6 }
0x1a83   : > { %5838 = vmatpush3.msra.mxu0 %v5246_v8  ;;  %5845 = vmatprep.mubr.msk.f32.mxu0 %vm6109_vm1, %v6108_v7 }
0x1a84   : > { %5839 = vmatprep.subr.mxu0 %v6108_v7 }
0x1a85   : > { %5840 = vmatpush3.msra.mxu0 %v5245_v0 }
0x1a86   : > { %5841 = vmatprep.subr.mxu0 %v6108_v7 }
0x1a87   : > { %5842 = vmatpush3.msra.mxu0 %v5244_v9 }
0x1a88   : > { %5843 = vmatprep.subr.mxu0 %v6108_v7 }
0x1a89   : > { %5844 = vmatpush3.msra.mxu0 %v5243_v10 }
0x1a8a   : > { %5846 = vmatmul.mubr.msk.f32.vlgmr.msra.gmra.mxu0 %vm601_vm0, %v6759_v60  ;;  %5859 = vmatprep.subr.mxu0 %v6108_v7 }
0x1a8b   : > { %5860 = vmatpush3.msra.mxu0 %v5260_v11  ;;  %5867 = vmatprep.mubr.msk.f32.mxu0 %vm6109_vm1, %v6108_v7  ;;  %v5281_v11 = vld [vmem:[%s7247_s7 + $0x7] ss:$0 sm:$0xff]  ;;  %s5021_s7 = scalar_lea.hbm %s7216_s19, %s5320_s24 }
0x1a8c   : > { %5861 = vmatprep.subr.mxu0 %v6108_v7 }
0x1a8d   : > { %5862 = vmatpush3.msra.mxu0 %v5259_v12 }
0x1a8e   : > { %5863 = vmatprep.subr.mxu0 %v6108_v7 }
0x1a8f   : > { %5864 = vmatpush3.msra.mxu0 %v5258_v13 }
0x1a90   : > { %5865 = vmatprep.subr.mxu0 %v6108_v7 }
0x1a91   : > { %5866 = vmatpush3.msra.mxu0 %v5257_v14  ;;  %v5288_v14 = vld [vmem:[%s7249_s8 + $0x7] ss:$0 sm:$0xff]  ;;  %s5010_s8 = scalar_lea.sflag [#allocation3], %s591_s0 }
0x1a92   : > { %5868 = vmatmul.mubr.msk.f32.vlgmr.msra.gmra.mxu0 %vm601_vm0, %v6759_v60  ;;  %5880 = vmatprep.subr.mxu0 %v6108_v7 }
0x1a93   : > { %5882 = vmatprep.mubr.msk.f32.mxu0 %vm6109_vm1, %v6108_v7  ;;  %5881 = vmatpush3.msra.mxu0 %v5267_v48  ;;  %v5312_v48 = vld [vmem:[%s7212_s15 + $0x70] sm:$0xff] }
0x1a94   : > { %5896 = vmatprep.subr.mxu0 %v6108_v7 }
0x1b42   : > { %v3717_v16 = vpop.f32.mrf.mxu0 }
0x1b43   : > { %5835 = vmatmul.mubr.msk.f32.vlgmr.msra.gmra.mxu1 %vm877_vm2, %v3717_v16 }
0x1b44   : > { %5849 = vmatpush3.msra.mxu1 %v5253_v15  ;;  %v5831_v18 = vpop.f32.mrf.mxu0  ;;  %5856 = vmatprep.mubr.msk.f32.mxu1 %vm6109_vm1, %v6108_v7 }
0x1b45   : > { %5850 = vmatprep.subr.mxu1 %v6108_v7 }
0x1b46   : > { %5851 = vmatpush3.msra.mxu1 %v5252_v17 }
0x1b47   : > { %5852 = vmatprep.subr.mxu1 %v6108_v7 }
0x1b48   : > { %5853 = vmatpush3.msra.mxu1 %v5251_v19 }
0x1b49   : > { %5854 = vmatprep.subr.mxu1 %v6108_v7 }
0x1b4a   : > { %v3876_v21 = vpop.f32.mrf.mxu0  ;;  %5855 = vmatpush3.msra.mxu1 %v5250_v20 }
0x1b4b   : > { %5857 = vmatmul.mubr.msk.f32.vlgmr.msra.gmra.mxu1 %vm601_vm0, %v6759_v60  ;;  %5870 = vmatprep.subr.mxu1 %v6108_v7  ;;  %v3877_v37 = vadd.f32 %v5248_v33, %v3876_v21 }
0x1b4c   : > { %v5847_v22 = vpop.f32.mrf.mxu0  ;;  %5872 = vmatprep.mubr.msk.f32.mxu1 %vm6109_vm1, %v6108_v7 }
0x1b52   : > { %v4042_v23 = vpop.f32.mrf.mxu0 }
0x1b53   : > { %v4043_v39 = vadd.f32 %v5262_v35, %v4042_v23 }
0x1b54   : > { %v5869_v25 = vpop.f32.mrf.mxu0 }
0x1c03   : > { %v3792_v28 = vpop.f32.mrf.mxu1 }
0x1c04   : > { %v6969_v29 = vadd.f32 %v3792_v28, %v3310_v27  ;;  %v5293_v28 = vld [vmem:[%s7206_s9 + $0x38] sm:$0xff] }
0x1c05   : > { %v5836_v30 = vpop.f32.mrf.mxu1 }
0x1c0b   : > { %v3959_v32 = vpop.f32.mrf.mxu1 }
0x1c0c   : > { %v3960_v34 = vadd.f32 %v5255_v31, %v3959_v32 }
0x1c0d   : > { %v5858_v36 = vpop.f32.mrf.mxu1 }
0x1c0e   : > { %5871 = vmatpush3.xpose.msk.msra.mxu1 %vm877_vm2, %v3960_v34 }
0x1c0f   : > { %5875 = vmatprep.subr.mxu1 %v6108_v7 }
0x1c11   : > { %5873 = vmatmul.mubr.msk.f32.vlgmr.msra.gmra.mxu1 %vm877_vm2, %v3877_v37 }
0x1c12   : > { %5876 = vmatpush3.msra.mxu1 %v4043_v39  ;;  %5877 = vmatprep.mubr.msk.f32.mxu1 %vm6109_vm1, %v6108_v7 }
0x1c13   : > { %5885 = vmatprep.subr.mxu1 %v6108_v7 }
0x1cd1   : > { %v4118_v24 = vpop.f32.mrf.mxu1 }
0x1cd2   : > { %v4122_v40 = vmul.f32 0.35355338, %v4118_v24 }
0x1cd3   : > { %v5874_v41 = vpop.f32.mrf.mxu1 }
0x1cd4   : > { %v4123_v42 = vsel %vm877_vm2, %v4122_v40, -inf }
0x1cd5   : > { %4124 = vmax.xlane.f32.xlu0 %v4123_v42 }
0x1d5e   : > { %v4125_v43 = vpop.xlane.xlu0 %4124 }
0x1d5f   : > { %v4126_v44 = vsub.f32 %v4122_v40, %v4125_v43 }
0x1d61   : > { %v4127_v45 = vmul.f32 1.442695, %v4126_v44  ;;  %v5302_v44 = vld [vmem:[%s7210_s13 + $0x38] sm:$0xff] }
0x1d63   : > { %6034 = vpow2.f32 %v4127_v45  ;;  %v5300_v45 = vld [vmem:[%s7210_s13 + $0x28] sm:$0xff] }
0x1d70   : > { %v6035_v46 = vpop.eup %6034 }
0x1d71   : > { %v4129_v47 = vsel %vm877_vm2, %v6035_v46, 0.0 }
0x1d72   : > { %4130 = vadd.xlane.f32.xlu1 %v4129_v47  ;;  %v5313_v47 = vld [vmem:[%s7212_s15 + $0x78] sm:$0xff] }
0x1dfb   : > { %v4131_v49 = vpop.xlane.xlu1 %4130 }
0x1dfc   : > { %6036 = vrcp.f32 %v4131_v49  ;;  %v5311_v49 = vld [vmem:[%s7212_s15 + $0x68] sm:$0xff] }
0x1e09   : > { %v6037_v50 = vpop.eup %6036 }
0x1e0a   : > { %v4133_v51 = vmul.f32 %v6037_v50, %v6035_v46  ;;  %v5299_v46 = vld [vmem:[%s7210_s13 + $0x20] sm:$0xff] }
0x1e0b   : > { %v5310_v50 = vld [vmem:[%s7212_s15 + $0x60] sm:$0xff] }
0x1e0c   : > { %5878 = vmatmul.mubr.msk.f32.vlgmr.msra.gmra.mxu1 %vm877_vm2, %v4133_v51  ;;  %v5309_v51 = vld [vmem:[%s7212_s15 + $0x58] sm:$0xff] }
0x1e0d   : > { %5886 = vmatpush3.msra.mxu1 %v5272_v52  ;;  %5893 = vmatprep.mubr.msk.f32.mxu1 %vm6109_vm1, %v6108_v7 }
0x1e0e   : > { %5887 = vmatprep.subr.mxu1 %v6108_v7 }
0x1e0f   : > { %5888 = vmatpush3.msra.mxu1 %v5271_v53 }
0x1e10   : > { %5889 = vmatprep.subr.mxu1 %v6108_v7 }
0x1e11   : > { %5890 = vmatpush3.msra.mxu1 %v5270_v54 }
0x1e12   : > { %5891 = vmatprep.subr.mxu1 %v6108_v7 }
0x1e13   : > { %5892 = vmatpush3.msra.mxu1 %v5269_v55 }
0x1e14   : > { %5894 = vmatmul.mubr.msk.f32.vlgmr.msra.gmra.mxu1 %vm601_vm0, %v6759_v60  ;;  %5907 = vmatprep.subr.mxu1 %v6108_v7 }
0x1e15   : > { %5908 = vmatpush3.msra.mxu1 %v5286_v56  ;;  %5915 = vmatprep.mubr.msk.f32.mxu1 %vm6109_vm1, %v6108_v7  ;;  %v5297_v56 = vld [vmem:[%s7208_s11 + $0x1] ss:$0 sm:$0xff] }
0x1e16   : > { %5909 = vmatprep.subr.mxu1 %v6108_v7 }
0x1e17   : > { %5910 = vmatpush3.msra.mxu1 %v5285_v57 }
0x1e18   : > { %5911 = vmatprep.subr.mxu1 %v6108_v7 }
0x1e19   : > { %5912 = vmatpush3.msra.mxu1 %v5284_v58  ;;  %v5298_v58 = vld [vmem:[%s7209_s12 + $0x1] ss:$0 sm:$0xff] }
0x1e1a   : > { %5913 = vmatprep.subr.mxu1 %v6108_v7 }
0x1e1b   : > { %5914 = vmatpush3.msra.mxu1 %v5283_v59 }
0x1e1c   : > { %5916 = vmatmul.mubr.msk.f32.vlgmr.msra.gmra.mxu1 %vm601_vm0, %v6759_v60  ;;  %5928 = vmatprep.subr.mxu1 %v6108_v7 }
0x1e1d   : > { %5930 = vmatprep.mubr.msk.f32.mxu1 %vm6109_vm1, %v6108_v7  ;;  %5929 = vmatpush3.msra.mxu1 %v5293_v28 }
0x1e1e   : > { %5944 = vmatprep.subr.mxu1 %v6108_v7 }
0x1ecc   : > { %v4203_v62 = vpop.f32.mrf.mxu1 }
0x1ecd   : > { %5883 = vmatmul.mubr.msk.f32.vlgmr.msra.gmra.mxu0 %vm877_vm2, %v4203_v62  ;;  %v5308_v62 = vld [vmem:[%s7212_s15 + $0x50] sm:$0xff] }
0x1ece   : > { %5897 = vmatpush3.msra.mxu0 %v5279_v61  ;;  %v5879_v1 = vpop.f32.mrf.mxu1  ;;  %5904 = vmatprep.mubr.msk.f32.mxu0 %vm6109_vm1, %v6108_v7 }
0x1ecf   : > { %5898 = vmatprep.subr.mxu0 %v6108_v7  ;;  %v5306_v1 = vld [vmem:[%s7212_s15 + $0x40] sm:$0xff] }
0x1ed0   : > { %5899 = vmatpush3.msra.mxu0 %v5278_v63  ;;  %v5307_v63 = vld [vmem:[%s7212_s15 + $0x48] sm:$0xff] }
0x1ed1   : > { %5900 = vmatprep.subr.mxu0 %v6108_v7 }
0x1ed2   : > { %5901 = vmatpush3.msra.mxu0 %v5277_v2  ;;  %v5304_v2 = vld [vmem:[%s7211_s14 + $0x1] ss:$0 sm:$0xff] }
0x1ed3   : > { %5902 = vmatprep.subr.mxu0 %v6108_v7 }
0x1ed4   : > { %v4362_v4 = vpop.f32.mrf.mxu1  ;;  %5903 = vmatpush3.msra.mxu0 %v5276_v3 }
0x1ed5   : > { %5905 = vmatmul.mubr.msk.f32.vlgmr.msra.gmra.mxu0 %vm601_vm0, %v6759_v60  ;;  %5918 = vmatprep.subr.mxu0 %v6108_v7  ;;  %v5274_v60 = vld [vmem:[%s7248_s6 + $0x7] ss:$0 sm:$0xff] }
0x1ed6   : > { %v5895_v5 = vpop.f32.mrf.mxu1  ;;  %5920 = vmatprep.mubr.msk.f32.mxu0 %vm6109_vm1, %v6108_v7  ;;  %v4363_v16 = vadd.f32 %v5274_v60, %v4362_v4 }
0x1edc   : > { %v4528_v6 = vpop.f32.mrf.mxu1 }
0x1edd   : > { %v4529_v17 = vadd.f32 %v5288_v14, %v4528_v6 }
0x1ede   : > { %v5917_v8 = vpop.f32.mrf.mxu1 }
0x1edf   : > { %v5315_v8 = vld [vmem:[%s7213_s16 + $0x1] ss:$0 sm:$0xff] }
0x1f8d   : > { %v4278_v0 = vpop.f32.mrf.mxu0 }
0x1f8e   : > { %v4282_v9 = vadd.f32 %v4278_v0, %v6969_v29 }
0x1f8f   : > { %v5884_v10 = vpop.f32.mrf.mxu0 }
0x1f95   : > { %v4445_v12 = vpop.f32.mrf.mxu0 }
0x1f96   : > { %v4446_v13 = vadd.f32 %v5281_v11, %v4445_v12 }
0x1f97   : > { %v5906_v15 = vpop.f32.mrf.mxu0 }
0x1f98   : > { %5919 = vmatpush3.xpose.msk.msra.mxu0 %vm877_vm2, %v4446_v13 }
0x1f99   : > { %5923 = vmatprep.subr.mxu0 %v6108_v7 }
0x1f9b   : > { %5921 = vmatmul.mubr.msk.f32.vlgmr.msra.gmra.mxu0 %vm877_vm2, %v4363_v16 }
0x1f9c   : > { %5924 = vmatpush3.msra.mxu0 %v4529_v17  ;;  %5925 = vmatprep.mubr.msk.f32.mxu0 %vm6109_vm1, %v6108_v7 }
0x1f9d   : > { %5933 = vmatprep.subr.mxu0 %v6108_v7 }
0x205b   : > { %v4604_v18 = vpop.f32.mrf.mxu0 }
0x205c   : > { %v4608_v19 = vmul.f32 0.35355338, %v4604_v18 }
0x205d   : > { %v5922_v20 = vpop.f32.mrf.mxu0 }
0x205e   : > { %v4609_v21 = vsel %vm877_vm2, %v4608_v19, -inf  ;;  %v5317_v20 = vld [vmem:[%s7214_s17] ss:$0 sm:$0xff] }
0x205f   : > { %4610 = vmax.xlane.f32.xlu0 %v4609_v21 }
0x20e8   : > { %v4611_v22 = vpop.xlane.xlu0 %4610 }
0x20e9   : > { %v4612_v23 = vsub.f32 %v4608_v19, %v4611_v22  ;;  %v5318_v22 = vld [vmem:[%s7215_s18] ss:$0 sm:$0xff] }
0x20eb   : > { %v4613_v25 = vmul.f32 1.442695, %v4612_v23 }
0x20ed   : > { %6038 = vpow2.f32 %v4613_v25 }
0x20fa   : > { %v6039_v26 = vpop.eup %6038 }
0x20fb   : > { %v4615_v27 = vsel %vm877_vm2, %v6039_v26, 0.0 }
0x20fc   : > { %4616 = vadd.xlane.f32.xlu1 %v4615_v27 }
0x2185   : > { %v4617_v29 = vpop.xlane.xlu1 %4616 }
0x2186   : > { %6040 = vrcp.f32 %v4617_v29 }
0x2193   : > { %v6041_v30 = vpop.eup %6040 }
0x2194   : > { %v4619_v31 = vmul.f32 %v6041_v30, %v6039_v26 }
0x2196   : > { %5926 = vmatmul.mubr.msk.f32.vlgmr.msra.gmra.mxu0 %vm877_vm2, %v4619_v31 }
0x2197   : > { %5941 = vmatprep.mubr.msk.f32.mxu0 %vm6109_vm1, %v6108_v7  ;;  %5934 = vmatpush3.msra.mxu0 %v5302_v44 }
0x2198   : > { %5935 = vmatprep.subr.mxu0 %v6108_v7 }
0x2256   : > { %v4689_v32 = vpop.f32.mrf.mxu0 }
0x2257   : > { %5931 = vmatmul.mubr.msk.f32.vlgmr.msra.gmra.mxu1 %vm877_vm2, %v4689_v32 }
0x2258   : > { %v5927_v33 = vpop.f32.mrf.mxu0  ;;  %5960 = vmatprep.mubr.msk.f32.mxu1 %vm6109_vm1, %v6108_v7  ;;  %5945 = vmatpush3.msra.mxu1 %v5313_v47 }
0x2259   : > { %5946 = vmatprep.subr.mxu1 %v6108_v7 }
0x225a   : > { %5947 = vmatpush3.msra.mxu1 %v5312_v48 }
0x225b   : > { %5948 = vmatprep.subr.mxu1 %v6108_v7 }
0x225c   : > { %5949 = vmatpush3.msra.mxu1 %v5311_v49 }
0x225d   : > { %5950 = vmatprep.subr.mxu1 %v6108_v7 }
0x225e   : > { %5951 = vmatpush3.msra.mxu1 %v5310_v50 }
0x225f   : > { %5952 = vmatprep.subr.mxu1 %v6108_v7 }
0x2260   : > { %5953 = vmatpush3.msra.mxu1 %v5309_v51 }
0x2261   : > { %5954 = vmatprep.subr.mxu1 %v6108_v7 }
0x2262   : > { %5955 = vmatpush3.msra.mxu1 %v5308_v62 }
0x2263   : > { %5956 = vmatprep.subr.mxu1 %v6108_v7 }
0x2264   : > { %5957 = vmatpush3.msra.mxu1 %v5307_v63 }
0x2265   : > { %5958 = vmatprep.subr.mxu1 %v6108_v7 }
0x2266   : > { %5959 = vmatpush3.msra.mxu1 %v5306_v1 }
0x2317   : > { %v4764_v34 = vpop.f32.mrf.mxu1 }
0x2318   : > { %v4768_v35 = vadd.f32 %v4764_v34, %v4282_v9 }
0x2319   : > { %v5932_v36 = vpop.f32.mrf.mxu1 }
0x231a   : > { %v7087_v37 = vadd.f32 %v4768_v35, %v6715_v38  ;;  %v5301_v38 = vld [vmem:[%s7210_s13 + $0x30] sm:$0xff] }
0x231b   : > { %5936 = vmatpush3.msra.mxu0 %v5301_v38 }
0x231c   : > { %v4774_v39 = vsel %vm601_vm0, %v7087_v37, 0.0  ;;  %5937 = vmatprep.subr.mxu0 %v6108_v7 }
0x231d   : > { %4775 = vadd.xlane.f32.xlu0 %v4774_v39  ;;  %5938 = vmatpush3.msra.mxu0 %v5300_v45 }
0x231e   : > { %5939 = vmatprep.subr.mxu0 %v6108_v7 }
0x231f   : > { %5940 = vmatpush3.msra.mxu0 %v5299_v46 }
0x23a6   : > { %v4776_v24 = vpop.xlane.xlu0 %4775 }
0x23a7   : > { %v4777_v40 = vmul.f32 0.03125, %v4776_v24 }
0x23a9   : > { %v4778_v41 = vsub.f32 %v7087_v37, %v4777_v40 }
0x23ab   : > { %v4779_v42 = vmul.f32 %v4778_v41, %v4778_v41 }
0x23ad   : > { %v4780_v43 = vsel %vm601_vm0, %v4779_v42, 0.0 }
0x23ae   : > { %4781 = vadd.xlane.f32.xlu1 %v4780_v43 }
0x2437   : > { %v4782_v52 = vpop.xlane.xlu1 %4781 }
0x2438   : > { %v4783_v53 = vmul.f32 0.03125, %v4782_v52 }
0x243a   : > { %v4784_v54 = vadd.f32 1e-05, %v4783_v53 }
0x243c   : > { %6042 = vrsqrt.f32 %v4784_v54 }
0x2449   : > { %v6043_v55 = vpop.eup %6042 }
0x244a   : > { %v4786_v57 = vmul.f32 %v6043_v55, %v4778_v41 }
0x244c   : > { %v4793_v59 = vmul.f32 %v5297_v56, %v4786_v57 }
0x244e   : > { %v4800_v61 = vadd.f32 %v5298_v58, %v4793_v59 }
0x2450   : > { %5942 = vmatmul.mubr.msk.f32.vlgmr.msra.gmra.mxu0 %vm601_vm0, %v4800_v61 }
0x2510   : > { %v4883_v3 = vpop.f32.mrf.mxu0 }
0x2511   : > { %v4884_v4 = vadd.f32 %v5304_v2, %v4883_v3 }
0x2512   : > { %v5943_v5 = vpop.f32.mrf.mxu0 }
0x2513   : > { %v4887_v6 = vmax.f32 %v4884_v4, 0.0 }
0x2515   : > { %5961 = vmatmul.mubr.msk.f32.vlgmr.msra.gmra.mxu1 %vm2708_vm3, %v4887_v6 }
0x25d5   : > { %v4974_v7 = vpop.f32.mrf.mxu1 }
0x25d6   : > { %v4975_v0 = vadd.f32 %v5315_v8, %v4974_v7 }
0x25d7   : > { %v5962_v9 = vpop.f32.mrf.mxu1 }
0x25d8   : > { %v4978_v10 = vadd.f32 %v4975_v0, %v7087_v37 }
0x25da   : > { %v4981_v11 = vsel %vm601_vm0, %v4978_v10, 0.0 }
0x25db   : > { %4982 = vadd.xlane.f32.xlu0 %v4981_v11 }
0x2664   : > { %v4983_v12 = vpop.xlane.xlu0 %4982 }
0x2665   : > { %v4984_v60 = vmul.f32 0.03125, %v4983_v12 }
0x2667   : > { %v4985_v13 = vsub.f32 %v4978_v10, %v4984_v60 }
0x2669   : > { %v4986_v14 = vmul.f32 %v4985_v13, %v4985_v13 }
0x266b   : > { %v4987_v15 = vsel %vm601_vm0, %v4986_v14, 0.0 }
0x266c   : > { %4988 = vadd.xlane.f32.xlu1 %v4987_v15 }
0x26f5   : > { %v4989_v16 = vpop.xlane.xlu1 %4988 }
0x26f6   : > { %v4990_v17 = vmul.f32 0.03125, %v4989_v16 }
0x26f8   : > { %v4991_v18 = vadd.f32 1e-05, %v4990_v17 }
0x26fa   : > { %6044 = vrsqrt.f32 %v4991_v18 }
0x2707   : > { %v6045_v19 = vpop.eup %6044 }
0x2708   : > { %v4993_v21 = vmul.f32 %v6045_v19, %v4985_v13 }
0x270a   : > { %v5000_v23 = vmul.f32 %v5317_v20, %v4993_v21 }
0x270c   : > { %v5007_v25 = vadd.f32 %v5318_v22, %v5000_v23 }
0x270e   : > { %5008 = vst.msk [vmem:[%s593_s20] sm:$0xff] %vm601_vm0, %v5007_v25 }
0x270f   : > { %6059 = shalt.err (!%p6056_p3)
}
0x2710   : > { %s6060_s5 = scalar_lea.hbm %s5021_s7, 128  ;;  %s6064_s26 = scalar_lea.hbm %s7216_s19, 256 }
0x2711   : > { %p6061_p4 = scmp.ne.s32.totalorder %s5021_s7, %s6060_s5  ;;  %p6065_p9 = scmp.lt.s32.totalorder %s5021_s7, %s7216_s19 }
0x2712   : > { %p6066_p10 = scmp.lt.s32.totalorder %s6064_s26, %s6060_s5 }
0x2713   : > { %p6062_p7 = pnand %p6061_p4, %p6249_p5 }
0x2714   : > { %p6067_p11 = por %p6066_p10, %p6065_p9 }
0x2715   : > { %p6063_p8 = pneg %p6062_p7 }
0x2717   : > { %p6068_p12 = pnand %p6067_p11, %p6063_p8 }
0x2719   : > { %6071 = shalt.err (!%p6068_p12)
}
0x271a   : > { %5963 = dma.vmem_to_hbm [thread:$0]  (%p6249_p5), %s5024_s4, 128, %s5021_s7, %s5010_s8  }
0x271b PF: > { %s7250_s20 = sld [smem:[#allocation5_spill]]  ;;  %p5969_p13 = scmp.ge.s32.totalorder %s6106_s21, 2 }
0x271d   : > { %p5966_p0 = pnand %p5969_p13, %p6253_p6 }
0x271f   : > { %p5967_p1 = pneg %p5966_p0 }
0x2721   : > { %s5035_s29 = sand.u32 1, %s7250_s20  }
0x2722   : > { %s5036_s22 = scalar_lea.sflag [#allocation3], %s5035_s29 }
0x2723   : > { %6089 = dma.done.wait (%p5967_p1), %s5036_s22, 128  }
0x2724   : > { %6091 = vsyncadd (%p5967_p1), %s5036_s22, 4294967168  ;;  %s7252_s21 = sld [smem:[#allocation7_spill]]  ;;  %s7255_s0 = smov %s6098_s30 }
0x2725   : > { %s7253_s1 = sld [smem:[#allocation6_spill]] }
0x2726   : > { %s7254_s20 = sld [smem:[#allocation8_spill]] }
0x272a   : > { %p29_p2 = scmp.ge.s32.totalorder %s7252_s21, 4  }
0x272b   : > { %s7256_s30 = smov %s7253_s1 }
0x272c   :  { %31 = sbr.rel (!%p29_p2) target bundleno = 13 (0xd), region = 189 }
0x2731   :  { %5041 = vsyncpa [#allocation3], 1 }
0x2732   :  { %5043 = vsyncpa [#allocation3 + $0x1], 1 }

</bundles_post_ra>
